<compile_context>
chip_gen: v7x
topology: tpu7x:2x2x1
jax: 0.10.0
libtpu: 0.0.40
codegen_flags: <defaults>
</compile_context>

<pallas_src>
import functools

import jax
import jax.numpy as jnp
from jax.experimental import pallas as pl
from jax.experimental.pallas import tpu as pltpu

# ----- small config consistent with Classifier.__init__ -----
VOCAB = 50       # word_vocab_size
VOCAB_PAD = 64   # vocab padded for the one-hot matmul
EMB = 32         # word_embedding_dim
HID = 16         # hidden_dim  (bi-LSTM feature dim C = 2*HID)
TOPK = 3
FC1 = 128
FC2 = 64
TARGET = 8       # target_size
PAD_IDX = 0

S = 6            # tokens.shape[0]  (LSTM time axis)
N = 8            # tokens.shape[1]  (LSTM batch axis; torch.topk dim=1 pools over it)

_vmem_spec = functools.partial(pl.BlockSpec, memory_space=pltpu.MemorySpace.VMEM)


# --------------------------------------------------------------------------
# Bitonic sorting network over the sublane (row) axis.  n must be a power of 2.
# --------------------------------------------------------------------------
def _compare_exchange_stages(shape, n):
    """Precompute (distance, keep_min_mask) for each of the log2(n)*(log2(n)+1)/2 stages."""
    idx = jax.lax.broadcasted_iota(jnp.int32, shape, 0)
    stages = []
    k_ = 2
    while k_ <= n:
        j = k_ // 2
        while j >= 1:
            keep_min = ((idx & j) == 0) == ((idx & k_) == 0)
            stages.append((j, keep_min))
            j //= 2
        k_ *= 2
    return stages


def _bitonic_sort_rows(x, stages, n):
    """Sort the n rows (sublane axis) of x ascending.  x: (n, C)."""
    for j, keep_min in stages:
        # Partner of row i is row (i XOR j): swap the halves of each aligned 2j block.
        parts = []
        for start in range(0, n, 2 * j):
            parts.append(x[start + j:start + 2 * j, :])
            parts.append(x[start:start + j, :])
        partner = jnp.concatenate(parts, axis=0)
        x = jnp.where(keep_min, jnp.minimum(x, partner), jnp.maximum(x, partner))
    return x


# --------------------------------------------------------------------------
# Fused kernel: embedding (one-hot matmul) + bi-LSTM + top-k pooling + MLP head
# --------------------------------------------------------------------------
def _make_fused_kernel(s, n, h, k, vpad):
    c2 = 2 * h

    def kernel(tok_ref, wf_ref, wb_ref, blstm_ref, whh_ref,
               w1_hbm, b1_ref, w2_hbm, b2_ref, w3_ref, b3_ref,
               out_ref, w1_vmem, w2_vmem, dma_sem):
        # ---- kick off head-weight DMAs so they overlap the recurrence + pooling ----
        cp1 = pltpu.make_async_copy(w1_hbm, w1_vmem, dma_sem.at[0])
        cp2 = pltpu.make_async_copy(w2_hbm, w2_vmem, dma_sem.at[1])
        cp1.start()
        cp2.start()

        # ---- embedding lookup fused as a one-hot matmul (emb folded into wf/wb) ----
        tok = tok_ref[...]                                                   # (S, N) i32
        vi = jax.lax.broadcasted_iota(jnp.int32, (s, n, vpad), 2)
        oh = (tok[:, :, None] == vi).astype(jnp.float32).reshape(s * n, vpad)  # (S*N, V)
        # xwf[t*N+b] = emb[tok[t,b]] @ W_ih_fwd^T (interleaved gate cols, bwd cols zero)
        xwf = jnp.dot(oh, wf_ref[...],
                      preferred_element_type=jnp.float32) + blstm_ref[...]   # (S*N, 8H)
        xwb = jnp.dot(oh, wb_ref[...], preferred_element_type=jnp.float32)   # (S*N, 8H)

        whh = whh_ref[...]                                                   # (2H, 8H)

        # ---- bidirectional recurrence, fully unrolled; history stays in vregs ----
        hcat = jnp.zeros((n, c2), jnp.float32)   # [h_fwd || h_bwd]
        ccat = jnp.zeros((n, c2), jnp.float32)   # [c_fwd || c_bwd]
        fwd = [None] * s
        bwd = [None] * s
        for t in range(s):
            # forward direction consumes x[t], backward consumes x[s-1-t]
            gates = (xwf[t * n:(t + 1) * n, :]
                     + xwb[(s - 1 - t) * n:(s - t) * n, :]
                     + jnp.dot(hcat, whh, preferred_element_type=jnp.float32))  # (N, 8H)
            # column layout: [i_f,i_b | f_f,f_b | o_f,o_b] sigmoid block, [g_f,g_b] tanh
            sig = jax.nn.sigmoid(gates[:, :6 * h])                           # (N, 6H)
            g = jnp.tanh(gates[:, 6 * h:])                                   # (N, 2H)
            i_g = sig[:, :c2]
            f_g = sig[:, c2:2 * c2]
            o_g = sig[:, 2 * c2:3 * c2]
            ccat = f_g * ccat + i_g * g
            hcat = o_g * jnp.tanh(ccat)
            fwd[t] = hcat[:, 0:h]                 # forward output for time t
            bwd[s - 1 - t] = hcat[:, h:c2]        # backward output for time s-1-t

        # ---- exact top-k / bottom-k over the batch axis via a bitonic sublane sort ----
        stages = _compare_exchange_stages((n, c2), n)
        sorted_slabs = [
            _bitonic_sort_rows(jnp.concatenate([fwd[t], bwd[t]], axis=-1), stages, n)
            for t in range(s)
        ]                                                                    # s x (N, 2H)
        col_blocks = []
        for j in range(k):      # largest, 2nd largest, ... (descending, torch.topk order)
            col_blocks.append(jnp.concatenate(
                [ss[n - 1 - j:n - j, :] for ss in sorted_slabs], axis=0))    # (S, 2H)
        for j in range(k):      # smallest, 2nd smallest, ... (ascending)
            col_blocks.append(jnp.concatenate(
                [ss[j:j + 1, :] for ss in sorted_slabs], axis=0))            # (S, 2H)
        feats = jnp.concatenate(col_blocks, axis=-1)                         # (S, 4*k*H)

        # ---- classifier head (Dropout = identity at inference) ----
        cp1.wait()
        h1 = jnp.maximum(
            jnp.dot(feats, w1_vmem[...], preferred_element_type=jnp.float32)
            + b1_ref[...], 0.0)
        cp2.wait()
        h2 = jnp.maximum(
            jnp.dot(h1, w2_vmem[...], preferred_element_type=jnp.float32)
            + b2_ref[...], 0.0)
        out_ref[...] = jnp.dot(h2, w3_ref[...],
                               preferred_element_type=jnp.float32) + b3_ref[...]

    return kernel


# --------------------------------------------------------------------------
# Forward wrapper: a single fused pallas_call, tokens go straight into the kernel.
# --------------------------------------------------------------------------
def classifier_forward(tokens, kp):
    s, n = tokens.shape
    assert n & (n - 1) == 0, "batch axis must be a power of 2 for the sublane sort"

    kernel = _make_fused_kernel(s, n, HID, TOPK, VOCAB_PAD)
    feat_dim = 4 * TOPK * HID

    cost = pl.CostEstimate(
        flops=2_400_000,          # one-hot projections + recurrence + head
        transcendentals=8_000,    # sigmoid/tanh over the 6 unrolled steps
        bytes_accessed=220_000,   # all weights + tokens + output
    )

    return pl.pallas_call(
        kernel,
        out_shape=jax.ShapeDtypeStruct((s, TARGET), jnp.float32),
        in_specs=[
            _vmem_spec(),                        # tokens (S, N) int32
            _vmem_spec(),                        # wf   (VPAD, 8H)
            _vmem_spec(),                        # wb   (VPAD, 8H)
            _vmem_spec(),                        # combined LSTM bias (1, 8H)
            _vmem_spec(),                        # whh  (2H, 8H)
            pl.BlockSpec(memory_space=pl.ANY),   # w1 -> manual DMA, overlapped
            _vmem_spec(),                        # b1
            pl.BlockSpec(memory_space=pl.ANY),   # w2 -> manual DMA, overlapped
            _vmem_spec(),                        # b2
            _vmem_spec(),                        # w3
            _vmem_spec(),                        # b3
        ],
        out_specs=_vmem_spec(),
        scratch_shapes=[
            pltpu.VMEM((feat_dim, FC1), jnp.float32),   # w1 landing buffer
            pltpu.VMEM((FC1, FC2), jnp.float32),        # w2 landing buffer
            pltpu.SemaphoreType.DMA((2,)),
        ],
        cost_estimate=cost,
    )(tokens, kp['wf'], kp['wb'], kp['b_lstm'], kp['whh'],
      kp['w1'], kp['b1'], kp['w2'], kp['b2'], kp['w3'], kp['b3'])


# --------------------------------------------------------------------------
# Deterministic parameter init in PyTorch layout
#   nn.LSTM:  weight_* (4H, in) with gate order [i, f, g, o]; separate ih/hh biases
#   nn.Linear: weight (out, in), bias (out,)
# --------------------------------------------------------------------------
def init_params(key):
    ks = jax.random.split(key, 15)

    def u(k_, shape, scale=0.1):
        return jax.random.uniform(k_, shape, jnp.float32, -scale, scale)

    emb = u(ks[0], (VOCAB, EMB), 0.5).at[PAD_IDX].set(0.0)   # padding_idx row zeroed
    return dict(
        emb=emb,
        w_ih_f=u(ks[1], (4 * HID, EMB)), w_hh_f=u(ks[2], (4 * HID, HID)),
        b_ih_f=u(ks[3], (4 * HID,)), b_hh_f=u(ks[4], (4 * HID,)),
        w_ih_b=u(ks[5], (4 * HID, EMB)), w_hh_b=u(ks[6], (4 * HID, HID)),
        b_ih_b=u(ks[7], (4 * HID,)), b_hh_b=u(ks[8], (4 * HID,)),
        w1=u(ks[9], (FC1, 4 * TOPK * HID)), b1=u(ks[10], (FC1,)),
        w2=u(ks[11], (FC2, FC1)), b2=u(ks[12], (FC2,)),
        w3=u(ks[13], (TARGET, FC2)), b3=u(ks[14], (TARGET,)),
    )


# --------------------------------------------------------------------------
# One-time packing: PyTorch layout -> fused-kernel layout
#   * combined gate-column order: [i_f, i_b, f_f, f_b, o_f, o_b, g_f, g_b]
#   * the embedding table is folded into the per-direction input projections so the
#     in-kernel gather is a single one-hot matmul:
#        onehot(tok) @ (emb_pad @ rows_dir.T)  ==  emb[tok] @ rows_dir.T
# --------------------------------------------------------------------------
def prepare_params(p):
    h = HID

    def gates(w):   # split PyTorch [i, f, g, o] blocks along axis 0
        return w[0:h], w[h:2 * h], w[2 * h:3 * h], w[3 * h:4 * h]

    # input projection, zero-padded so each direction only sees its own time step
    i_f, f_f, g_f, o_f = gates(p['w_ih_f'])          # (H, E) each
    i_b, f_b, g_b, o_b = gates(p['w_ih_b'])
    ze = jnp.zeros((h, EMB), jnp.float32)
    rows_f = jnp.concatenate([i_f, ze, f_f, ze, o_f, ze, g_f, ze], axis=0)   # (8H, E)
    rows_b = jnp.concatenate([ze, i_b, ze, f_b, ze, o_b, ze, g_b], axis=0)   # (8H, E)

    emb_pad = jnp.zeros((VOCAB_PAD, EMB), jnp.float32).at[:VOCAB].set(p['emb'])
    wf = emb_pad @ rows_f.T                                                  # (VPAD, 8H)
    wb = emb_pad @ rows_b.T                                                  # (VPAD, 8H)

    # recurrent projection, block-diagonal over the two directions
    ih_f, fh_f, gh_f, oh_f = gates(p['w_hh_f'])      # (H, H) each
    ih_b, fh_b, gh_b, oh_b = gates(p['w_hh_b'])
    zh = jnp.zeros((h, h), jnp.float32)
    rhf = jnp.concatenate([ih_f, zh, fh_f, zh, oh_f, zh, gh_f, zh], axis=0)  # (8H, H)
    rhb = jnp.concatenate([zh, ih_b, zh, fh_b, zh, oh_b, zh, gh_b], axis=0)  # (8H, H)
    whh = jnp.concatenate([rhf.T, rhb.T], axis=0)                            # (2H, 8H)

    # combined bias (b_ih + b_hh) per direction in the interleaved column order
    bi_f, bf_f, bg_f, bo_f = gates(p['b_ih_f'] + p['b_hh_f'])
    bi_b, bf_b, bg_b, bo_b = gates(p['b_ih_b'] + p['b_hh_b'])
    b_lstm = jnp.concatenate(
        [bi_f, bi_b, bf_f, bf_b, bo_f, bo_b, bg_f, bg_b])[None, :]           # (1, 8H)

    return dict(
        wf=wf, wb=wb, whh=whh, b_lstm=b_lstm,
        w1=p['w1'].T, b1=p['b1'][None, :],
        w2=p['w2'].T, b2=p['b2'][None, :],
        w3=p['w3'].T, b3=p['b3'][None, :],
    )


# --------------------------------------------------------------------------
# Pure-JAX reference (PyTorch-layout params) for correctness check
# --------------------------------------------------------------------------
def reference_forward(tokens, p):
    x = jnp.take(p['emb'], tokens, axis=0)
    H = HID

    def run_dir(xseq, w_ih, w_hh, b_ih, b_hh):
        def step(carry, x_t):
            h_, c_ = carry
            g_all = x_t @ w_ih.T + h_ @ w_hh.T + b_ih + b_hh
            i = jax.nn.sigmoid(g_all[:, :H])
            f = jax.nn.sigmoid(g_all[:, H:2 * H])
            g = jnp.tanh(g_all[:, 2 * H:3 * H])
            o = jax.nn.sigmoid(g_all[:, 3 * H:])
            c_ = f * c_ + i * g
            h_ = o * jnp.tanh(c_)
            return (h_, c_), h_

        init = (jnp.zeros((xseq.shape[1], H), jnp.float32),
                jnp.zeros((xseq.shape[1], H), jnp.float32))
        return jax.lax.scan(step, init, xseq)[1]

    out_f = run_dir(x, p['w_ih_f'], p['w_hh_f'], p['b_ih_f'], p['b_hh_f'])
    out_b = run_dir(x[::-1], p['w_ih_b'], p['w_hh_b'], p['b_ih_b'], p['b_hh_b'])[::-1]
    h = jnp.concatenate([out_f, out_b], axis=-1)                             # (S, N, 2H)

    maxp = jax.lax.top_k(jnp.swapaxes(h, 1, 2), TOPK)[0]                     # (S, C, K) desc
    maxp = jnp.swapaxes(maxp, 1, 2).reshape(h.shape[0], -1)
    minp = -jax.lax.top_k(jnp.swapaxes(-h, 1, 2), TOPK)[0]                   # asc smallest
    minp = jnp.swapaxes(minp, 1, 2).reshape(h.shape[0], -1)
    feats = jnp.concatenate([maxp, minp], axis=1)

    h1 = jnp.maximum(feats @ p['w1'].T + p['b1'], 0.0)
    h2 = jnp.maximum(h1 @ p['w2'].T + p['b2'], 0.0)
    return h2 @ p['w3'].T + p['b3']


if __name__ == "__main__":
    key = jax.random.PRNGKey(0)
    pkey, tkey = jax.random.split(key)
    params = init_params(pkey)
    kparams = prepare_params(params)                  # one-time weight packing
    tokens = jax.random.randint(tkey, (S, N), 0, VOCAB, dtype=jnp.int32)

    out = jax.jit(classifier_forward)(tokens, kparams)
    out = jax.block_until_ready(out)

    ref = reference_forward(tokens, params)
    assert out.shape == (S, TARGET), out.shape
    assert bool(jnp.all(jnp.isfinite(out)))
    assert jnp.allclose(out, ref, atol=5e-3, rtol=5e-3), (out, ref)
    print("KERNEL_OK")
</pallas_src>

<mosaic_0001>
module attributes {stable_mosaic.version = 11 : i64} {
  func.func @kernel(%arg0: memref<6x8xi32, #tpu.memory_space<vmem>>, %arg1: memref<64x128xf32, #tpu.memory_space<vmem>>, %arg2: memref<64x128xf32, #tpu.memory_space<vmem>>, %arg3: memref<1x128xf32, #tpu.memory_space<vmem>>, %arg4: memref<32x128xf32, #tpu.memory_space<vmem>>, %arg5: memref<192x128xf32, #tpu.memory_space<any>>, %arg6: memref<1x128xf32, #tpu.memory_space<vmem>>, %arg7: memref<128x64xf32, #tpu.memory_space<any>>, %arg8: memref<1x64xf32, #tpu.memory_space<vmem>>, %arg9: memref<64x8xf32, #tpu.memory_space<vmem>>, %arg10: memref<1x8xf32, #tpu.memory_space<vmem>>, %arg11: memref<6x8xf32, #tpu.memory_space<vmem>>, %arg12: memref<192x128xf32, #tpu.memory_space<vmem>>, %arg13: memref<128x64xf32, #tpu.memory_space<vmem>>, %arg14: memref<2x!tpu.dma_semaphore, #tpu.memory_space<semaphore_mem>>) attributes {dimension_semantics = [], scalar_prefetch = 0 : i64, scratch_operands = 3 : i64, tpu.core_type = #tpu.core_type<tc>} {
    %c0_i32 = arith.constant 0 : i32
    %0 = tpu.memref_slice %arg14[%c0_i32] : memref<2x!tpu.dma_semaphore, #tpu.memory_space<semaphore_mem>> -> memref<1x!tpu.dma_semaphore, #tpu.memory_space<semaphore_mem>>
    %1 = tpu.memref_squeeze %0 : memref<1x!tpu.dma_semaphore, #tpu.memory_space<semaphore_mem>> -> memref<!tpu.dma_semaphore, #tpu.memory_space<semaphore_mem>>
    tpu.enqueue_dma source(%arg5 : memref<192x128xf32, #tpu.memory_space<any>>) target(%arg12 : memref<192x128xf32, #tpu.memory_space<vmem>>) target_semaphore(%1 : memref<!tpu.dma_semaphore, #tpu.memory_space<semaphore_mem>>)
    %c1_i32 = arith.constant 1 : i32
    %2 = tpu.memref_slice %arg14[%c1_i32] : memref<2x!tpu.dma_semaphore, #tpu.memory_space<semaphore_mem>> -> memref<1x!tpu.dma_semaphore, #tpu.memory_space<semaphore_mem>>
    %3 = tpu.memref_squeeze %2 : memref<1x!tpu.dma_semaphore, #tpu.memory_space<semaphore_mem>> -> memref<!tpu.dma_semaphore, #tpu.memory_space<semaphore_mem>>
    tpu.enqueue_dma source(%arg7 : memref<128x64xf32, #tpu.memory_space<any>>) target(%arg13 : memref<128x64xf32, #tpu.memory_space<vmem>>) target_semaphore(%3 : memref<!tpu.dma_semaphore, #tpu.memory_space<semaphore_mem>>)
    %c0 = arith.constant 0 : index
    %c0_0 = arith.constant 0 : index
    %4 = vector.load %arg0[%c0, %c0_0] : memref<6x8xi32, #tpu.memory_space<vmem>>, vector<6x8xi32>
    %5 = tpu.iota {dimensions = array<i32: 2>} : vector<6x8x64xi32>
    %6 = vector.shape_cast %4 : vector<6x8xi32> to vector<6x8x1xi32>
    %7 = vector.broadcast %6 : vector<6x8x1xi32> to vector<6x8x64xi32>
    %8 = arith.cmpi eq, %7, %5 : vector<6x8x64xi32>
    %9 = arith.extui %8 : vector<6x8x64xi1> to vector<6x8x64xi32>
    %10 = arith.sitofp %9 : vector<6x8x64xi32> to vector<6x8x64xf32>
    %11 = vector.shape_cast %10 : vector<6x8x64xf32> to vector<48x64xf32>
    %c0_1 = arith.constant 0 : index
    %c0_2 = arith.constant 0 : index
    %12 = vector.load %arg1[%c0_1, %c0_2] : memref<64x128xf32, #tpu.memory_space<vmem>>, vector<64x128xf32>
    %cst = arith.constant dense<0.000000e+00> : vector<48x128xf32>
    %13 = tpu.matmul %11, %12, %cst {dimension_numbers = #tpu.dot_dimension_numbers<[1], [0], [0], [1], [0, 0, 1, 1], [], []>} : vector<48x64xf32>, vector<64x128xf32>, vector<48x128xf32> -> vector<48x128xf32>
    %c0_3 = arith.constant 0 : index
    %c0_4 = arith.constant 0 : index
    %14 = vector.load %arg3[%c0_3, %c0_4] : memref<1x128xf32, #tpu.memory_space<vmem>>, vector<1x128xf32>
    %15 = vector.broadcast %14 : vector<1x128xf32> to vector<48x128xf32>
    %16 = arith.addf %13, %15 : vector<48x128xf32>
    %c0_5 = arith.constant 0 : index
    %c0_6 = arith.constant 0 : index
    %17 = vector.load %arg2[%c0_5, %c0_6] : memref<64x128xf32, #tpu.memory_space<vmem>>, vector<64x128xf32>
    %cst_7 = arith.constant dense<0.000000e+00> : vector<48x128xf32>
    %18 = tpu.matmul %11, %17, %cst_7 {dimension_numbers = #tpu.dot_dimension_numbers<[1], [0], [0], [1], [0, 0, 1, 1], [], []>} : vector<48x64xf32>, vector<64x128xf32>, vector<48x128xf32> -> vector<48x128xf32>
    %c0_8 = arith.constant 0 : index
    %c0_9 = arith.constant 0 : index
    %19 = vector.load %arg4[%c0_8, %c0_9] : memref<32x128xf32, #tpu.memory_space<vmem>>, vector<32x128xf32>
    %cst_10 = arith.constant 0.000000e+00 : f32
    %20 = vector.broadcast %cst_10 : f32 to vector<8x32xf32>
    %cst_11 = arith.constant 0.000000e+00 : f32
    %21 = vector.broadcast %cst_11 : f32 to vector<8x32xf32>
    %22 = vector.extract_strided_slice %16 {offsets = [0, 0], sizes = [8, 128], strides = [1, 1]} : vector<48x128xf32> to vector<8x128xf32>
    %23 = vector.extract_strided_slice %18 {offsets = [40, 0], sizes = [8, 128], strides = [1, 1]} : vector<48x128xf32> to vector<8x128xf32>
    %24 = arith.addf %22, %23 : vector<8x128xf32>
    %cst_12 = arith.constant dense<0.000000e+00> : vector<8x128xf32>
    %25 = tpu.matmul %20, %19, %cst_12 {dimension_numbers = #tpu.dot_dimension_numbers<[1], [0], [0], [1], [0, 0, 1, 1], [], []>} : vector<8x32xf32>, vector<32x128xf32>, vector<8x128xf32> -> vector<8x128xf32>
    %26 = arith.addf %24, %25 : vector<8x128xf32>
    %27 = vector.extract_strided_slice %26 {offsets = [0, 0], sizes = [8, 96], strides = [1, 1]} : vector<8x128xf32> to vector<8x96xf32>
    %28 = arith.negf %27 : vector<8x96xf32>
    %29 = math.exp %28 : vector<8x96xf32>
    %cst_13 = arith.constant 1.000000e+00 : f32
    %30 = vector.broadcast %cst_13 : f32 to vector<8x96xf32>
    %31 = arith.addf %30, %29 : vector<8x96xf32>
    %32 = arith.divf %30, %31 : vector<8x96xf32>
    %33 = vector.extract_strided_slice %26 {offsets = [0, 96], sizes = [8, 32], strides = [1, 1]} : vector<8x128xf32> to vector<8x32xf32>
    %34 = math.tanh %33 : vector<8x32xf32>
    %35 = vector.extract_strided_slice %32 {offsets = [0, 0], sizes = [8, 32], strides = [1, 1]} : vector<8x96xf32> to vector<8x32xf32>
    %36 = vector.extract_strided_slice %32 {offsets = [0, 32], sizes = [8, 32], strides = [1, 1]} : vector<8x96xf32> to vector<8x32xf32>
    %37 = vector.extract_strided_slice %32 {offsets = [0, 64], sizes = [8, 32], strides = [1, 1]} : vector<8x96xf32> to vector<8x32xf32>
    %38 = arith.mulf %36, %21 : vector<8x32xf32>
    %39 = arith.mulf %35, %34 : vector<8x32xf32>
    %40 = arith.addf %38, %39 : vector<8x32xf32>
    %41 = math.tanh %40 : vector<8x32xf32>
    %42 = arith.mulf %37, %41 : vector<8x32xf32>
    %43 = vector.extract_strided_slice %42 {offsets = [0, 0], sizes = [8, 16], strides = [1, 1]} : vector<8x32xf32> to vector<8x16xf32>
    %44 = vector.extract_strided_slice %42 {offsets = [0, 16], sizes = [8, 16], strides = [1, 1]} : vector<8x32xf32> to vector<8x16xf32>
    %45 = vector.extract_strided_slice %16 {offsets = [8, 0], sizes = [8, 128], strides = [1, 1]} : vector<48x128xf32> to vector<8x128xf32>
    %46 = vector.extract_strided_slice %18 {offsets = [32, 0], sizes = [8, 128], strides = [1, 1]} : vector<48x128xf32> to vector<8x128xf32>
    %47 = arith.addf %45, %46 : vector<8x128xf32>
    %cst_14 = arith.constant dense<0.000000e+00> : vector<8x128xf32>
    %48 = tpu.matmul %42, %19, %cst_14 {dimension_numbers = #tpu.dot_dimension_numbers<[1], [0], [0], [1], [0, 0, 1, 1], [], []>} : vector<8x32xf32>, vector<32x128xf32>, vector<8x128xf32> -> vector<8x128xf32>
    %49 = arith.addf %47, %48 : vector<8x128xf32>
    %50 = vector.extract_strided_slice %49 {offsets = [0, 0], sizes = [8, 96], strides = [1, 1]} : vector<8x128xf32> to vector<8x96xf32>
    %51 = arith.negf %50 : vector<8x96xf32>
    %52 = math.exp %51 : vector<8x96xf32>
    %cst_15 = arith.constant 1.000000e+00 : f32
    %53 = vector.broadcast %cst_15 : f32 to vector<8x96xf32>
    %54 = arith.addf %53, %52 : vector<8x96xf32>
    %55 = arith.divf %53, %54 : vector<8x96xf32>
    %56 = vector.extract_strided_slice %49 {offsets = [0, 96], sizes = [8, 32], strides = [1, 1]} : vector<8x128xf32> to vector<8x32xf32>
    %57 = math.tanh %56 : vector<8x32xf32>
    %58 = vector.extract_strided_slice %55 {offsets = [0, 0], sizes = [8, 32], strides = [1, 1]} : vector<8x96xf32> to vector<8x32xf32>
    %59 = vector.extract_strided_slice %55 {offsets = [0, 32], sizes = [8, 32], strides = [1, 1]} : vector<8x96xf32> to vector<8x32xf32>
    %60 = vector.extract_strided_slice %55 {offsets = [0, 64], sizes = [8, 32], strides = [1, 1]} : vector<8x96xf32> to vector<8x32xf32>
    %61 = arith.mulf %59, %40 : vector<8x32xf32>
    %62 = arith.mulf %58, %57 : vector<8x32xf32>
    %63 = arith.addf %61, %62 : vector<8x32xf32>
    %64 = math.tanh %63 : vector<8x32xf32>
    %65 = arith.mulf %60, %64 : vector<8x32xf32>
    %66 = vector.extract_strided_slice %65 {offsets = [0, 0], sizes = [8, 16], strides = [1, 1]} : vector<8x32xf32> to vector<8x16xf32>
    %67 = vector.extract_strided_slice %65 {offsets = [0, 16], sizes = [8, 16], strides = [1, 1]} : vector<8x32xf32> to vector<8x16xf32>
    %68 = vector.extract_strided_slice %16 {offsets = [16, 0], sizes = [8, 128], strides = [1, 1]} : vector<48x128xf32> to vector<8x128xf32>
    %69 = vector.extract_strided_slice %18 {offsets = [24, 0], sizes = [8, 128], strides = [1, 1]} : vector<48x128xf32> to vector<8x128xf32>
    %70 = arith.addf %68, %69 : vector<8x128xf32>
    %cst_16 = arith.constant dense<0.000000e+00> : vector<8x128xf32>
    %71 = tpu.matmul %65, %19, %cst_16 {dimension_numbers = #tpu.dot_dimension_numbers<[1], [0], [0], [1], [0, 0, 1, 1], [], []>} : vector<8x32xf32>, vector<32x128xf32>, vector<8x128xf32> -> vector<8x128xf32>
    %72 = arith.addf %70, %71 : vector<8x128xf32>
    %73 = vector.extract_strided_slice %72 {offsets = [0, 0], sizes = [8, 96], strides = [1, 1]} : vector<8x128xf32> to vector<8x96xf32>
    %74 = arith.negf %73 : vector<8x96xf32>
    %75 = math.exp %74 : vector<8x96xf32>
    %cst_17 = arith.constant 1.000000e+00 : f32
    %76 = vector.broadcast %cst_17 : f32 to vector<8x96xf32>
    %77 = arith.addf %76, %75 : vector<8x96xf32>
    %78 = arith.divf %76, %77 : vector<8x96xf32>
    %79 = vector.extract_strided_slice %72 {offsets = [0, 96], sizes = [8, 32], strides = [1, 1]} : vector<8x128xf32> to vector<8x32xf32>
    %80 = math.tanh %79 : vector<8x32xf32>
    %81 = vector.extract_strided_slice %78 {offsets = [0, 0], sizes = [8, 32], strides = [1, 1]} : vector<8x96xf32> to vector<8x32xf32>
    %82 = vector.extract_strided_slice %78 {offsets = [0, 32], sizes = [8, 32], strides = [1, 1]} : vector<8x96xf32> to vector<8x32xf32>
    %83 = vector.extract_strided_slice %78 {offsets = [0, 64], sizes = [8, 32], strides = [1, 1]} : vector<8x96xf32> to vector<8x32xf32>
    %84 = arith.mulf %82, %63 : vector<8x32xf32>
    %85 = arith.mulf %81, %80 : vector<8x32xf32>
    %86 = arith.addf %84, %85 : vector<8x32xf32>
    %87 = math.tanh %86 : vector<8x32xf32>
    %88 = arith.mulf %83, %87 : vector<8x32xf32>
    %89 = vector.extract_strided_slice %88 {offsets = [0, 0], sizes = [8, 16], strides = [1, 1]} : vector<8x32xf32> to vector<8x16xf32>
    %90 = vector.extract_strided_slice %88 {offsets = [0, 16], sizes = [8, 16], strides = [1, 1]} : vector<8x32xf32> to vector<8x16xf32>
    %91 = vector.extract_strided_slice %16 {offsets = [24, 0], sizes = [8, 128], strides = [1, 1]} : vector<48x128xf32> to vector<8x128xf32>
    %92 = vector.extract_strided_slice %18 {offsets = [16, 0], sizes = [8, 128], strides = [1, 1]} : vector<48x128xf32> to vector<8x128xf32>
    %93 = arith.addf %91, %92 : vector<8x128xf32>
    %cst_18 = arith.constant dense<0.000000e+00> : vector<8x128xf32>
    %94 = tpu.matmul %88, %19, %cst_18 {dimension_numbers = #tpu.dot_dimension_numbers<[1], [0], [0], [1], [0, 0, 1, 1], [], []>} : vector<8x32xf32>, vector<32x128xf32>, vector<8x128xf32> -> vector<8x128xf32>
    %95 = arith.addf %93, %94 : vector<8x128xf32>
    %96 = vector.extract_strided_slice %95 {offsets = [0, 0], sizes = [8, 96], strides = [1, 1]} : vector<8x128xf32> to vector<8x96xf32>
    %97 = arith.negf %96 : vector<8x96xf32>
    %98 = math.exp %97 : vector<8x96xf32>
    %cst_19 = arith.constant 1.000000e+00 : f32
    %99 = vector.broadcast %cst_19 : f32 to vector<8x96xf32>
    %100 = arith.addf %99, %98 : vector<8x96xf32>
    %101 = arith.divf %99, %100 : vector<8x96xf32>
    %102 = vector.extract_strided_slice %95 {offsets = [0, 96], sizes = [8, 32], strides = [1, 1]} : vector<8x128xf32> to vector<8x32xf32>
    %103 = math.tanh %102 : vector<8x32xf32>
    %104 = vector.extract_strided_slice %101 {offsets = [0, 0], sizes = [8, 32], strides = [1, 1]} : vector<8x96xf32> to vector<8x32xf32>
    %105 = vector.extract_strided_slice %101 {offsets = [0, 32], sizes = [8, 32], strides = [1, 1]} : vector<8x96xf32> to vector<8x32xf32>
    %106 = vector.extract_strided_slice %101 {offsets = [0, 64], sizes = [8, 32], strides = [1, 1]} : vector<8x96xf32> to vector<8x32xf32>
    %107 = arith.mulf %105, %86 : vector<8x32xf32>
    %108 = arith.mulf %104, %103 : vector<8x32xf32>
    %109 = arith.addf %107, %108 : vector<8x32xf32>
    %110 = math.tanh %109 : vector<8x32xf32>
    %111 = arith.mulf %106, %110 : vector<8x32xf32>
    %112 = vector.extract_strided_slice %111 {offsets = [0, 0], sizes = [8, 16], strides = [1, 1]} : vector<8x32xf32> to vector<8x16xf32>
    %113 = vector.extract_strided_slice %111 {offsets = [0, 16], sizes = [8, 16], strides = [1, 1]} : vector<8x32xf32> to vector<8x16xf32>
    %114 = vector.extract_strided_slice %16 {offsets = [32, 0], sizes = [8, 128], strides = [1, 1]} : vector<48x128xf32> to vector<8x128xf32>
    %115 = vector.extract_strided_slice %18 {offsets = [8, 0], sizes = [8, 128], strides = [1, 1]} : vector<48x128xf32> to vector<8x128xf32>
    %116 = arith.addf %114, %115 : vector<8x128xf32>
    %cst_20 = arith.constant dense<0.000000e+00> : vector<8x128xf32>
    %117 = tpu.matmul %111, %19, %cst_20 {dimension_numbers = #tpu.dot_dimension_numbers<[1], [0], [0], [1], [0, 0, 1, 1], [], []>} : vector<8x32xf32>, vector<32x128xf32>, vector<8x128xf32> -> vector<8x128xf32>
    %118 = arith.addf %116, %117 : vector<8x128xf32>
    %119 = vector.extract_strided_slice %118 {offsets = [0, 0], sizes = [8, 96], strides = [1, 1]} : vector<8x128xf32> to vector<8x96xf32>
    %120 = arith.negf %119 : vector<8x96xf32>
    %121 = math.exp %120 : vector<8x96xf32>
    %cst_21 = arith.constant 1.000000e+00 : f32
    %122 = vector.broadcast %cst_21 : f32 to vector<8x96xf32>
    %123 = arith.addf %122, %121 : vector<8x96xf32>
    %124 = arith.divf %122, %123 : vector<8x96xf32>
    %125 = vector.extract_strided_slice %118 {offsets = [0, 96], sizes = [8, 32], strides = [1, 1]} : vector<8x128xf32> to vector<8x32xf32>
    %126 = math.tanh %125 : vector<8x32xf32>
    %127 = vector.extract_strided_slice %124 {offsets = [0, 0], sizes = [8, 32], strides = [1, 1]} : vector<8x96xf32> to vector<8x32xf32>
    %128 = vector.extract_strided_slice %124 {offsets = [0, 32], sizes = [8, 32], strides = [1, 1]} : vector<8x96xf32> to vector<8x32xf32>
    %129 = vector.extract_strided_slice %124 {offsets = [0, 64], sizes = [8, 32], strides = [1, 1]} : vector<8x96xf32> to vector<8x32xf32>
    %130 = arith.mulf %128, %109 : vector<8x32xf32>
    %131 = arith.mulf %127, %126 : vector<8x32xf32>
    %132 = arith.addf %130, %131 : vector<8x32xf32>
    %133 = math.tanh %132 : vector<8x32xf32>
    %134 = arith.mulf %129, %133 : vector<8x32xf32>
    %135 = vector.extract_strided_slice %134 {offsets = [0, 0], sizes = [8, 16], strides = [1, 1]} : vector<8x32xf32> to vector<8x16xf32>
    %136 = vector.extract_strided_slice %134 {offsets = [0, 16], sizes = [8, 16], strides = [1, 1]} : vector<8x32xf32> to vector<8x16xf32>
    %137 = vector.extract_strided_slice %16 {offsets = [40, 0], sizes = [8, 128], strides = [1, 1]} : vector<48x128xf32> to vector<8x128xf32>
    %138 = vector.extract_strided_slice %18 {offsets = [0, 0], sizes = [8, 128], strides = [1, 1]} : vector<48x128xf32> to vector<8x128xf32>
    %139 = arith.addf %137, %138 : vector<8x128xf32>
    %cst_22 = arith.constant dense<0.000000e+00> : vector<8x128xf32>
    %140 = tpu.matmul %134, %19, %cst_22 {dimension_numbers = #tpu.dot_dimension_numbers<[1], [0], [0], [1], [0, 0, 1, 1], [], []>} : vector<8x32xf32>, vector<32x128xf32>, vector<8x128xf32> -> vector<8x128xf32>
    %141 = arith.addf %139, %140 : vector<8x128xf32>
    %142 = vector.extract_strided_slice %141 {offsets = [0, 0], sizes = [8, 96], strides = [1, 1]} : vector<8x128xf32> to vector<8x96xf32>
    %143 = arith.negf %142 : vector<8x96xf32>
    %144 = math.exp %143 : vector<8x96xf32>
    %cst_23 = arith.constant 1.000000e+00 : f32
    %145 = vector.broadcast %cst_23 : f32 to vector<8x96xf32>
    %146 = arith.addf %145, %144 : vector<8x96xf32>
    %147 = arith.divf %145, %146 : vector<8x96xf32>
    %148 = vector.extract_strided_slice %141 {offsets = [0, 96], sizes = [8, 32], strides = [1, 1]} : vector<8x128xf32> to vector<8x32xf32>
    %149 = math.tanh %148 : vector<8x32xf32>
    %150 = vector.extract_strided_slice %147 {offsets = [0, 0], sizes = [8, 32], strides = [1, 1]} : vector<8x96xf32> to vector<8x32xf32>
    %151 = vector.extract_strided_slice %147 {offsets = [0, 32], sizes = [8, 32], strides = [1, 1]} : vector<8x96xf32> to vector<8x32xf32>
    %152 = vector.extract_strided_slice %147 {offsets = [0, 64], sizes = [8, 32], strides = [1, 1]} : vector<8x96xf32> to vector<8x32xf32>
    %153 = arith.mulf %151, %132 : vector<8x32xf32>
    %154 = arith.mulf %150, %149 : vector<8x32xf32>
    %155 = arith.addf %153, %154 : vector<8x32xf32>
    %156 = math.tanh %155 : vector<8x32xf32>
    %157 = arith.mulf %152, %156 : vector<8x32xf32>
    %158 = vector.extract_strided_slice %157 {offsets = [0, 0], sizes = [8, 16], strides = [1, 1]} : vector<8x32xf32> to vector<8x16xf32>
    %159 = vector.extract_strided_slice %157 {offsets = [0, 16], sizes = [8, 16], strides = [1, 1]} : vector<8x32xf32> to vector<8x16xf32>
    %160 = tpu.iota {dimensions = array<i32: 0>} : vector<8x32xi32>
    %c1_i32_24 = arith.constant 1 : i32
    %161 = vector.broadcast %c1_i32_24 : i32 to vector<8x32xi32>
    %162 = arith.andi %160, %161 : vector<8x32xi32>
    %c0_i32_25 = arith.constant 0 : i32
    %163 = vector.broadcast %c0_i32_25 : i32 to vector<8x32xi32>
    %164 = arith.cmpi eq, %162, %163 : vector<8x32xi32>
    %c2_i32 = arith.constant 2 : i32
    %165 = vector.broadcast %c2_i32 : i32 to vector<8x32xi32>
    %166 = arith.andi %160, %165 : vector<8x32xi32>
    %c0_i32_26 = arith.constant 0 : i32
    %167 = vector.broadcast %c0_i32_26 : i32 to vector<8x32xi32>
    %168 = arith.cmpi eq, %166, %167 : vector<8x32xi32>
    %169 = arith.xori %164, %168 : vector<8x32xi1>
    %cst_27 = arith.constant dense<true> : vector<8x32xi1>
    %170 = arith.xori %169, %cst_27 : vector<8x32xi1>
    %c2_i32_28 = arith.constant 2 : i32
    %171 = vector.broadcast %c2_i32_28 : i32 to vector<8x32xi32>
    %172 = arith.andi %160, %171 : vector<8x32xi32>
    %c0_i32_29 = arith.constant 0 : i32
    %173 = vector.broadcast %c0_i32_29 : i32 to vector<8x32xi32>
    %174 = arith.cmpi eq, %172, %173 : vector<8x32xi32>
    %c4_i32 = arith.constant 4 : i32
    %175 = vector.broadcast %c4_i32 : i32 to vector<8x32xi32>
    %176 = arith.andi %160, %175 : vector<8x32xi32>
    %c0_i32_30 = arith.constant 0 : i32
    %177 = vector.broadcast %c0_i32_30 : i32 to vector<8x32xi32>
    %178 = arith.cmpi eq, %176, %177 : vector<8x32xi32>
    %179 = arith.xori %174, %178 : vector<8x32xi1>
    %cst_31 = arith.constant dense<true> : vector<8x32xi1>
    %180 = arith.xori %179, %cst_31 : vector<8x32xi1>
    %c1_i32_32 = arith.constant 1 : i32
    %181 = vector.broadcast %c1_i32_32 : i32 to vector<8x32xi32>
    %182 = arith.andi %160, %181 : vector<8x32xi32>
    %c0_i32_33 = arith.constant 0 : i32
    %183 = vector.broadcast %c0_i32_33 : i32 to vector<8x32xi32>
    %184 = arith.cmpi eq, %182, %183 : vector<8x32xi32>
    %c4_i32_34 = arith.constant 4 : i32
    %185 = vector.broadcast %c4_i32_34 : i32 to vector<8x32xi32>
    %186 = arith.andi %160, %185 : vector<8x32xi32>
    %c0_i32_35 = arith.constant 0 : i32
    %187 = vector.broadcast %c0_i32_35 : i32 to vector<8x32xi32>
    %188 = arith.cmpi eq, %186, %187 : vector<8x32xi32>
    %189 = arith.xori %184, %188 : vector<8x32xi1>
    %cst_36 = arith.constant dense<true> : vector<8x32xi1>
    %190 = arith.xori %189, %cst_36 : vector<8x32xi1>
    %c4_i32_37 = arith.constant 4 : i32
    %191 = vector.broadcast %c4_i32_37 : i32 to vector<8x32xi32>
    %192 = arith.andi %160, %191 : vector<8x32xi32>
    %c0_i32_38 = arith.constant 0 : i32
    %193 = vector.broadcast %c0_i32_38 : i32 to vector<8x32xi32>
    %194 = arith.cmpi eq, %192, %193 : vector<8x32xi32>
    %c8_i32 = arith.constant 8 : i32
    %195 = vector.broadcast %c8_i32 : i32 to vector<8x32xi32>
    %196 = arith.andi %160, %195 : vector<8x32xi32>
    %c0_i32_39 = arith.constant 0 : i32
    %197 = vector.broadcast %c0_i32_39 : i32 to vector<8x32xi32>
    %198 = arith.cmpi eq, %196, %197 : vector<8x32xi32>
    %199 = arith.xori %194, %198 : vector<8x32xi1>
    %cst_40 = arith.constant dense<true> : vector<8x32xi1>
    %200 = arith.xori %199, %cst_40 : vector<8x32xi1>
    %c2_i32_41 = arith.constant 2 : i32
    %201 = vector.broadcast %c2_i32_41 : i32 to vector<8x32xi32>
    %202 = arith.andi %160, %201 : vector<8x32xi32>
    %c0_i32_42 = arith.constant 0 : i32
    %203 = vector.broadcast %c0_i32_42 : i32 to vector<8x32xi32>
    %204 = arith.cmpi eq, %202, %203 : vector<8x32xi32>
    %c8_i32_43 = arith.constant 8 : i32
    %205 = vector.broadcast %c8_i32_43 : i32 to vector<8x32xi32>
    %206 = arith.andi %160, %205 : vector<8x32xi32>
    %c0_i32_44 = arith.constant 0 : i32
    %207 = vector.broadcast %c0_i32_44 : i32 to vector<8x32xi32>
    %208 = arith.cmpi eq, %206, %207 : vector<8x32xi32>
    %209 = arith.xori %204, %208 : vector<8x32xi1>
    %cst_45 = arith.constant dense<true> : vector<8x32xi1>
    %210 = arith.xori %209, %cst_45 : vector<8x32xi1>
    %c1_i32_46 = arith.constant 1 : i32
    %211 = vector.broadcast %c1_i32_46 : i32 to vector<8x32xi32>
    %212 = arith.andi %160, %211 : vector<8x32xi32>
    %c0_i32_47 = arith.constant 0 : i32
    %213 = vector.broadcast %c0_i32_47 : i32 to vector<8x32xi32>
    %214 = arith.cmpi eq, %212, %213 : vector<8x32xi32>
    %c8_i32_48 = arith.constant 8 : i32
    %215 = vector.broadcast %c8_i32_48 : i32 to vector<8x32xi32>
    %216 = arith.andi %160, %215 : vector<8x32xi32>
    %c0_i32_49 = arith.constant 0 : i32
    %217 = vector.broadcast %c0_i32_49 : i32 to vector<8x32xi32>
    %218 = arith.cmpi eq, %216, %217 : vector<8x32xi32>
    %219 = arith.xori %214, %218 : vector<8x32xi1>
    %cst_50 = arith.constant dense<true> : vector<8x32xi1>
    %220 = arith.xori %219, %cst_50 : vector<8x32xi1>
    %221 = tpu.concatenate %43, %159 in 1 : vector<8x16xf32>, vector<8x16xf32> -> vector<8x32xf32>
    %222 = vector.extract_strided_slice %221 {offsets = [1, 0], sizes = [1, 32], strides = [1, 1]} : vector<8x32xf32> to vector<1x32xf32>
    %223 = vector.extract_strided_slice %221 {offsets = [0, 0], sizes = [1, 32], strides = [1, 1]} : vector<8x32xf32> to vector<1x32xf32>
    %224 = vector.extract_strided_slice %221 {offsets = [3, 0], sizes = [1, 32], strides = [1, 1]} : vector<8x32xf32> to vector<1x32xf32>
    %225 = vector.extract_strided_slice %221 {offsets = [2, 0], sizes = [1, 32], strides = [1, 1]} : vector<8x32xf32> to vector<1x32xf32>
    %226 = vector.extract_strided_slice %221 {offsets = [5, 0], sizes = [1, 32], strides = [1, 1]} : vector<8x32xf32> to vector<1x32xf32>
    %227 = vector.extract_strided_slice %221 {offsets = [4, 0], sizes = [1, 32], strides = [1, 1]} : vector<8x32xf32> to vector<1x32xf32>
    %228 = vector.extract_strided_slice %221 {offsets = [7, 0], sizes = [1, 32], strides = [1, 1]} : vector<8x32xf32> to vector<1x32xf32>
    %229 = vector.extract_strided_slice %221 {offsets = [6, 0], sizes = [1, 32], strides = [1, 1]} : vector<8x32xf32> to vector<1x32xf32>
    %230 = tpu.concatenate %222, %223, %224, %225, %226, %227, %228, %229 in 0 : vector<1x32xf32>, vector<1x32xf32>, vector<1x32xf32>, vector<1x32xf32>, vector<1x32xf32>, vector<1x32xf32>, vector<1x32xf32>, vector<1x32xf32> -> vector<8x32xf32>
    %231 = arith.minimumf %221, %230 : vector<8x32xf32>
    %232 = arith.maximumf %221, %230 : vector<8x32xf32>
    %233 = arith.select %170, %231, %232 : vector<8x32xi1>, vector<8x32xf32>
    %234 = vector.extract_strided_slice %233 {offsets = [2, 0], sizes = [2, 32], strides = [1, 1]} : vector<8x32xf32> to vector<2x32xf32>
    %235 = vector.extract_strided_slice %233 {offsets = [0, 0], sizes = [2, 32], strides = [1, 1]} : vector<8x32xf32> to vector<2x32xf32>
    %236 = vector.extract_strided_slice %233 {offsets = [6, 0], sizes = [2, 32], strides = [1, 1]} : vector<8x32xf32> to vector<2x32xf32>
    %237 = vector.extract_strided_slice %233 {offsets = [4, 0], sizes = [2, 32], strides = [1, 1]} : vector<8x32xf32> to vector<2x32xf32>
    %238 = tpu.concatenate %234, %235, %236, %237 in 0 : vector<2x32xf32>, vector<2x32xf32>, vector<2x32xf32>, vector<2x32xf32> -> vector<8x32xf32>
    %239 = arith.minimumf %233, %238 : vector<8x32xf32>
    %240 = arith.maximumf %233, %238 : vector<8x32xf32>
    %241 = arith.select %180, %239, %240 : vector<8x32xi1>, vector<8x32xf32>
    %242 = vector.extract_strided_slice %241 {offsets = [1, 0], sizes = [1, 32], strides = [1, 1]} : vector<8x32xf32> to vector<1x32xf32>
    %243 = vector.extract_strided_slice %241 {offsets = [0, 0], sizes = [1, 32], strides = [1, 1]} : vector<8x32xf32> to vector<1x32xf32>
    %244 = vector.extract_strided_slice %241 {offsets = [3, 0], sizes = [1, 32], strides = [1, 1]} : vector<8x32xf32> to vector<1x32xf32>
    %245 = vector.extract_strided_slice %241 {offsets = [2, 0], sizes = [1, 32], strides = [1, 1]} : vector<8x32xf32> to vector<1x32xf32>
    %246 = vector.extract_strided_slice %241 {offsets = [5, 0], sizes = [1, 32], strides = [1, 1]} : vector<8x32xf32> to vector<1x32xf32>
    %247 = vector.extract_strided_slice %241 {offsets = [4, 0], sizes = [1, 32], strides = [1, 1]} : vector<8x32xf32> to vector<1x32xf32>
    %248 = vector.extract_strided_slice %241 {offsets = [7, 0], sizes = [1, 32], strides = [1, 1]} : vector<8x32xf32> to vector<1x32xf32>
    %249 = vector.extract_strided_slice %241 {offsets = [6, 0], sizes = [1, 32], strides = [1, 1]} : vector<8x32xf32> to vector<1x32xf32>
    %250 = tpu.concatenate %242, %243, %244, %245, %246, %247, %248, %249 in 0 : vector<1x32xf32>, vector<1x32xf32>, vector<1x32xf32>, vector<1x32xf32>, vector<1x32xf32>, vector<1x32xf32>, vector<1x32xf32>, vector<1x32xf32> -> vector<8x32xf32>
    %251 = arith.minimumf %241, %250 : vector<8x32xf32>
    %252 = arith.maximumf %241, %250 : vector<8x32xf32>
    %253 = arith.select %190, %251, %252 : vector<8x32xi1>, vector<8x32xf32>
    %254 = vector.extract_strided_slice %253 {offsets = [4, 0], sizes = [4, 32], strides = [1, 1]} : vector<8x32xf32> to vector<4x32xf32>
    %255 = vector.extract_strided_slice %253 {offsets = [0, 0], sizes = [4, 32], strides = [1, 1]} : vector<8x32xf32> to vector<4x32xf32>
    %256 = tpu.concatenate %254, %255 in 0 : vector<4x32xf32>, vector<4x32xf32> -> vector<8x32xf32>
    %257 = arith.minimumf %253, %256 : vector<8x32xf32>
    %258 = arith.maximumf %253, %256 : vector<8x32xf32>
    %259 = arith.select %200, %257, %258 : vector<8x32xi1>, vector<8x32xf32>
    %260 = vector.extract_strided_slice %259 {offsets = [2, 0], sizes = [2, 32], strides = [1, 1]} : vector<8x32xf32> to vector<2x32xf32>
    %261 = vector.extract_strided_slice %259 {offsets = [0, 0], sizes = [2, 32], strides = [1, 1]} : vector<8x32xf32> to vector<2x32xf32>
    %262 = vector.extract_strided_slice %259 {offsets = [6, 0], sizes = [2, 32], strides = [1, 1]} : vector<8x32xf32> to vector<2x32xf32>
    %263 = vector.extract_strided_slice %259 {offsets = [4, 0], sizes = [2, 32], strides = [1, 1]} : vector<8x32xf32> to vector<2x32xf32>
    %264 = tpu.concatenate %260, %261, %262, %263 in 0 : vector<2x32xf32>, vector<2x32xf32>, vector<2x32xf32>, vector<2x32xf32> -> vector<8x32xf32>
    %265 = arith.minimumf %259, %264 : vector<8x32xf32>
    %266 = arith.maximumf %259, %264 : vector<8x32xf32>
    %267 = arith.select %210, %265, %266 : vector<8x32xi1>, vector<8x32xf32>
    %268 = vector.extract_strided_slice %267 {offsets = [1, 0], sizes = [1, 32], strides = [1, 1]} : vector<8x32xf32> to vector<1x32xf32>
    %269 = vector.extract_strided_slice %267 {offsets = [0, 0], sizes = [1, 32], strides = [1, 1]} : vector<8x32xf32> to vector<1x32xf32>
    %270 = vector.extract_strided_slice %267 {offsets = [3, 0], sizes = [1, 32], strides = [1, 1]} : vector<8x32xf32> to vector<1x32xf32>
    %271 = vector.extract_strided_slice %267 {offsets = [2, 0], sizes = [1, 32], strides = [1, 1]} : vector<8x32xf32> to vector<1x32xf32>
    %272 = vector.extract_strided_slice %267 {offsets = [5, 0], sizes = [1, 32], strides = [1, 1]} : vector<8x32xf32> to vector<1x32xf32>
    %273 = vector.extract_strided_slice %267 {offsets = [4, 0], sizes = [1, 32], strides = [1, 1]} : vector<8x32xf32> to vector<1x32xf32>
    %274 = vector.extract_strided_slice %267 {offsets = [7, 0], sizes = [1, 32], strides = [1, 1]} : vector<8x32xf32> to vector<1x32xf32>
    %275 = vector.extract_strided_slice %267 {offsets = [6, 0], sizes = [1, 32], strides = [1, 1]} : vector<8x32xf32> to vector<1x32xf32>
    %276 = tpu.concatenate %268, %269, %270, %271, %272, %273, %274, %275 in 0 : vector<1x32xf32>, vector<1x32xf32>, vector<1x32xf32>, vector<1x32xf32>, vector<1x32xf32>, vector<1x32xf32>, vector<1x32xf32>, vector<1x32xf32> -> vector<8x32xf32>
    %277 = arith.minimumf %267, %276 : vector<8x32xf32>
    %278 = arith.maximumf %267, %276 : vector<8x32xf32>
    %279 = arith.select %220, %277, %278 : vector<8x32xi1>, vector<8x32xf32>
    %280 = tpu.concatenate %66, %136 in 1 : vector<8x16xf32>, vector<8x16xf32> -> vector<8x32xf32>
    %281 = vector.extract_strided_slice %280 {offsets = [1, 0], sizes = [1, 32], strides = [1, 1]} : vector<8x32xf32> to vector<1x32xf32>
    %282 = vector.extract_strided_slice %280 {offsets = [0, 0], sizes = [1, 32], strides = [1, 1]} : vector<8x32xf32> to vector<1x32xf32>
    %283 = vector.extract_strided_slice %280 {offsets = [3, 0], sizes = [1, 32], strides = [1, 1]} : vector<8x32xf32> to vector<1x32xf32>
    %284 = vector.extract_strided_slice %280 {offsets = [2, 0], sizes = [1, 32], strides = [1, 1]} : vector<8x32xf32> to vector<1x32xf32>
    %285 = vector.extract_strided_slice %280 {offsets = [5, 0], sizes = [1, 32], strides = [1, 1]} : vector<8x32xf32> to vector<1x32xf32>
    %286 = vector.extract_strided_slice %280 {offsets = [4, 0], sizes = [1, 32], strides = [1, 1]} : vector<8x32xf32> to vector<1x32xf32>
    %287 = vector.extract_strided_slice %280 {offsets = [7, 0], sizes = [1, 32], strides = [1, 1]} : vector<8x32xf32> to vector<1x32xf32>
    %288 = vector.extract_strided_slice %280 {offsets = [6, 0], sizes = [1, 32], strides = [1, 1]} : vector<8x32xf32> to vector<1x32xf32>
    %289 = tpu.concatenate %281, %282, %283, %284, %285, %286, %287, %288 in 0 : vector<1x32xf32>, vector<1x32xf32>, vector<1x32xf32>, vector<1x32xf32>, vector<1x32xf32>, vector<1x32xf32>, vector<1x32xf32>, vector<1x32xf32> -> vector<8x32xf32>
    %290 = arith.minimumf %280, %289 : vector<8x32xf32>
    %291 = arith.maximumf %280, %289 : vector<8x32xf32>
    %292 = arith.select %170, %290, %291 : vector<8x32xi1>, vector<8x32xf32>
    %293 = vector.extract_strided_slice %292 {offsets = [2, 0], sizes = [2, 32], strides = [1, 1]} : vector<8x32xf32> to vector<2x32xf32>
    %294 = vector.extract_strided_slice %292 {offsets = [0, 0], sizes = [2, 32], strides = [1, 1]} : vector<8x32xf32> to vector<2x32xf32>
    %295 = vector.extract_strided_slice %292 {offsets = [6, 0], sizes = [2, 32], strides = [1, 1]} : vector<8x32xf32> to vector<2x32xf32>
    %296 = vector.extract_strided_slice %292 {offsets = [4, 0], sizes = [2, 32], strides = [1, 1]} : vector<8x32xf32> to vector<2x32xf32>
    %297 = tpu.concatenate %293, %294, %295, %296 in 0 : vector<2x32xf32>, vector<2x32xf32>, vector<2x32xf32>, vector<2x32xf32> -> vector<8x32xf32>
    %298 = arith.minimumf %292, %297 : vector<8x32xf32>
    %299 = arith.maximumf %292, %297 : vector<8x32xf32>
    %300 = arith.select %180, %298, %299 : vector<8x32xi1>, vector<8x32xf32>
    %301 = vector.extract_strided_slice %300 {offsets = [1, 0], sizes = [1, 32], strides = [1, 1]} : vector<8x32xf32> to vector<1x32xf32>
    %302 = vector.extract_strided_slice %300 {offsets = [0, 0], sizes = [1, 32], strides = [1, 1]} : vector<8x32xf32> to vector<1x32xf32>
    %303 = vector.extract_strided_slice %300 {offsets = [3, 0], sizes = [1, 32], strides = [1, 1]} : vector<8x32xf32> to vector<1x32xf32>
    %304 = vector.extract_strided_slice %300 {offsets = [2, 0], sizes = [1, 32], strides = [1, 1]} : vector<8x32xf32> to vector<1x32xf32>
    %305 = vector.extract_strided_slice %300 {offsets = [5, 0], sizes = [1, 32], strides = [1, 1]} : vector<8x32xf32> to vector<1x32xf32>
    %306 = vector.extract_strided_slice %300 {offsets = [4, 0], sizes = [1, 32], strides = [1, 1]} : vector<8x32xf32> to vector<1x32xf32>
    %307 = vector.extract_strided_slice %300 {offsets = [7, 0], sizes = [1, 32], strides = [1, 1]} : vector<8x32xf32> to vector<1x32xf32>
    %308 = vector.extract_strided_slice %300 {offsets = [6, 0], sizes = [1, 32], strides = [1, 1]} : vector<8x32xf32> to vector<1x32xf32>
    %309 = tpu.concatenate %301, %302, %303, %304, %305, %306, %307, %308 in 0 : vector<1x32xf32>, vector<1x32xf32>, vector<1x32xf32>, vector<1x32xf32>, vector<1x32xf32>, vector<1x32xf32>, vector<1x32xf32>, vector<1x32xf32> -> vector<8x32xf32>
    %310 = arith.minimumf %300, %309 : vector<8x32xf32>
    %311 = arith.maximumf %300, %309 : vector<8x32xf32>
    %312 = arith.select %190, %310, %311 : vector<8x32xi1>, vector<8x32xf32>
    %313 = vector.extract_strided_slice %312 {offsets = [4, 0], sizes = [4, 32], strides = [1, 1]} : vector<8x32xf32> to vector<4x32xf32>
    %314 = vector.extract_strided_slice %312 {offsets = [0, 0], sizes = [4, 32], strides = [1, 1]} : vector<8x32xf32> to vector<4x32xf32>
    %315 = tpu.concatenate %313, %314 in 0 : vector<4x32xf32>, vector<4x32xf32> -> vector<8x32xf32>
    %316 = arith.minimumf %312, %315 : vector<8x32xf32>
    %317 = arith.maximumf %312, %315 : vector<8x32xf32>
    %318 = arith.select %200, %316, %317 : vector<8x32xi1>, vector<8x32xf32>
    %319 = vector.extract_strided_slice %318 {offsets = [2, 0], sizes = [2, 32], strides = [1, 1]} : vector<8x32xf32> to vector<2x32xf32>
    %320 = vector.extract_strided_slice %318 {offsets = [0, 0], sizes = [2, 32], strides = [1, 1]} : vector<8x32xf32> to vector<2x32xf32>
    %321 = vector.extract_strided_slice %318 {offsets = [6, 0], sizes = [2, 32], strides = [1, 1]} : vector<8x32xf32> to vector<2x32xf32>
    %322 = vector.extract_strided_slice %318 {offsets = [4, 0], sizes = [2, 32], strides = [1, 1]} : vector<8x32xf32> to vector<2x32xf32>
    %323 = tpu.concatenate %319, %320, %321, %322 in 0 : vector<2x32xf32>, vector<2x32xf32>, vector<2x32xf32>, vector<2x32xf32> -> vector<8x32xf32>
    %324 = arith.minimumf %318, %323 : vector<8x32xf32>
    %325 = arith.maximumf %318, %323 : vector<8x32xf32>
    %326 = arith.select %210, %324, %325 : vector<8x32xi1>, vector<8x32xf32>
    %327 = vector.extract_strided_slice %326 {offsets = [1, 0], sizes = [1, 32], strides = [1, 1]} : vector<8x32xf32> to vector<1x32xf32>
    %328 = vector.extract_strided_slice %326 {offsets = [0, 0], sizes = [1, 32], strides = [1, 1]} : vector<8x32xf32> to vector<1x32xf32>
    %329 = vector.extract_strided_slice %326 {offsets = [3, 0], sizes = [1, 32], strides = [1, 1]} : vector<8x32xf32> to vector<1x32xf32>
    %330 = vector.extract_strided_slice %326 {offsets = [2, 0], sizes = [1, 32], strides = [1, 1]} : vector<8x32xf32> to vector<1x32xf32>
    %331 = vector.extract_strided_slice %326 {offsets = [5, 0], sizes = [1, 32], strides = [1, 1]} : vector<8x32xf32> to vector<1x32xf32>
    %332 = vector.extract_strided_slice %326 {offsets = [4, 0], sizes = [1, 32], strides = [1, 1]} : vector<8x32xf32> to vector<1x32xf32>
    %333 = vector.extract_strided_slice %326 {offsets = [7, 0], sizes = [1, 32], strides = [1, 1]} : vector<8x32xf32> to vector<1x32xf32>
    %334 = vector.extract_strided_slice %326 {offsets = [6, 0], sizes = [1, 32], strides = [1, 1]} : vector<8x32xf32> to vector<1x32xf32>
    %335 = tpu.concatenate %327, %328, %329, %330, %331, %332, %333, %334 in 0 : vector<1x32xf32>, vector<1x32xf32>, vector<1x32xf32>, vector<1x32xf32>, vector<1x32xf32>, vector<1x32xf32>, vector<1x32xf32>, vector<1x32xf32> -> vector<8x32xf32>
    %336 = arith.minimumf %326, %335 : vector<8x32xf32>
    %337 = arith.maximumf %326, %335 : vector<8x32xf32>
    %338 = arith.select %220, %336, %337 : vector<8x32xi1>, vector<8x32xf32>
    %339 = tpu.concatenate %89, %113 in 1 : vector<8x16xf32>, vector<8x16xf32> -> vector<8x32xf32>
    %340 = vector.extract_strided_slice %339 {offsets = [1, 0], sizes = [1, 32], strides = [1, 1]} : vector<8x32xf32> to vector<1x32xf32>
    %341 = vector.extract_strided_slice %339 {offsets = [0, 0], sizes = [1, 32], strides = [1, 1]} : vector<8x32xf32> to vector<1x32xf32>
    %342 = vector.extract_strided_slice %339 {offsets = [3, 0], sizes = [1, 32], strides = [1, 1]} : vector<8x32xf32> to vector<1x32xf32>
    %343 = vector.extract_strided_slice %339 {offsets = [2, 0], sizes = [1, 32], strides = [1, 1]} : vector<8x32xf32> to vector<1x32xf32>
    %344 = vector.extract_strided_slice %339 {offsets = [5, 0], sizes = [1, 32], strides = [1, 1]} : vector<8x32xf32> to vector<1x32xf32>
    %345 = vector.extract_strided_slice %339 {offsets = [4, 0], sizes = [1, 32], strides = [1, 1]} : vector<8x32xf32> to vector<1x32xf32>
    %346 = vector.extract_strided_slice %339 {offsets = [7, 0], sizes = [1, 32], strides = [1, 1]} : vector<8x32xf32> to vector<1x32xf32>
    %347 = vector.extract_strided_slice %339 {offsets = [6, 0], sizes = [1, 32], strides = [1, 1]} : vector<8x32xf32> to vector<1x32xf32>
    %348 = tpu.concatenate %340, %341, %342, %343, %344, %345, %346, %347 in 0 : vector<1x32xf32>, vector<1x32xf32>, vector<1x32xf32>, vector<1x32xf32>, vector<1x32xf32>, vector<1x32xf32>, vector<1x32xf32>, vector<1x32xf32> -> vector<8x32xf32>
    %349 = arith.minimumf %339, %348 : vector<8x32xf32>
    %350 = arith.maximumf %339, %348 : vector<8x32xf32>
    %351 = arith.select %170, %349, %350 : vector<8x32xi1>, vector<8x32xf32>
    %352 = vector.extract_strided_slice %351 {offsets = [2, 0], sizes = [2, 32], strides = [1, 1]} : vector<8x32xf32> to vector<2x32xf32>
    %353 = vector.extract_strided_slice %351 {offsets = [0, 0], sizes = [2, 32], strides = [1, 1]} : vector<8x32xf32> to vector<2x32xf32>
    %354 = vector.extract_strided_slice %351 {offsets = [6, 0], sizes = [2, 32], strides = [1, 1]} : vector<8x32xf32> to vector<2x32xf32>
    %355 = vector.extract_strided_slice %351 {offsets = [4, 0], sizes = [2, 32], strides = [1, 1]} : vector<8x32xf32> to vector<2x32xf32>
    %356 = tpu.concatenate %352, %353, %354, %355 in 0 : vector<2x32xf32>, vector<2x32xf32>, vector<2x32xf32>, vector<2x32xf32> -> vector<8x32xf32>
    %357 = arith.minimumf %351, %356 : vector<8x32xf32>
    %358 = arith.maximumf %351, %356 : vector<8x32xf32>
    %359 = arith.select %180, %357, %358 : vector<8x32xi1>, vector<8x32xf32>
    %360 = vector.extract_strided_slice %359 {offsets = [1, 0], sizes = [1, 32], strides = [1, 1]} : vector<8x32xf32> to vector<1x32xf32>
    %361 = vector.extract_strided_slice %359 {offsets = [0, 0], sizes = [1, 32], strides = [1, 1]} : vector<8x32xf32> to vector<1x32xf32>
    %362 = vector.extract_strided_slice %359 {offsets = [3, 0], sizes = [1, 32], strides = [1, 1]} : vector<8x32xf32> to vector<1x32xf32>
    %363 = vector.extract_strided_slice %359 {offsets = [2, 0], sizes = [1, 32], strides = [1, 1]} : vector<8x32xf32> to vector<1x32xf32>
    %364 = vector.extract_strided_slice %359 {offsets = [5, 0], sizes = [1, 32], strides = [1, 1]} : vector<8x32xf32> to vector<1x32xf32>
    %365 = vector.extract_strided_slice %359 {offsets = [4, 0], sizes = [1, 32], strides = [1, 1]} : vector<8x32xf32> to vector<1x32xf32>
    %366 = vector.extract_strided_slice %359 {offsets = [7, 0], sizes = [1, 32], strides = [1, 1]} : vector<8x32xf32> to vector<1x32xf32>
    %367 = vector.extract_strided_slice %359 {offsets = [6, 0], sizes = [1, 32], strides = [1, 1]} : vector<8x32xf32> to vector<1x32xf32>
    %368 = tpu.concatenate %360, %361, %362, %363, %364, %365, %366, %367 in 0 : vector<1x32xf32>, vector<1x32xf32>, vector<1x32xf32>, vector<1x32xf32>, vector<1x32xf32>, vector<1x32xf32>, vector<1x32xf32>, vector<1x32xf32> -> vector<8x32xf32>
    %369 = arith.minimumf %359, %368 : vector<8x32xf32>
    %370 = arith.maximumf %359, %368 : vector<8x32xf32>
    %371 = arith.select %190, %369, %370 : vector<8x32xi1>, vector<8x32xf32>
    %372 = vector.extract_strided_slice %371 {offsets = [4, 0], sizes = [4, 32], strides = [1, 1]} : vector<8x32xf32> to vector<4x32xf32>
    %373 = vector.extract_strided_slice %371 {offsets = [0, 0], sizes = [4, 32], strides = [1, 1]} : vector<8x32xf32> to vector<4x32xf32>
    %374 = tpu.concatenate %372, %373 in 0 : vector<4x32xf32>, vector<4x32xf32> -> vector<8x32xf32>
    %375 = arith.minimumf %371, %374 : vector<8x32xf32>
    %376 = arith.maximumf %371, %374 : vector<8x32xf32>
    %377 = arith.select %200, %375, %376 : vector<8x32xi1>, vector<8x32xf32>
    %378 = vector.extract_strided_slice %377 {offsets = [2, 0], sizes = [2, 32], strides = [1, 1]} : vector<8x32xf32> to vector<2x32xf32>
    %379 = vector.extract_strided_slice %377 {offsets = [0, 0], sizes = [2, 32], strides = [1, 1]} : vector<8x32xf32> to vector<2x32xf32>
    %380 = vector.extract_strided_slice %377 {offsets = [6, 0], sizes = [2, 32], strides = [1, 1]} : vector<8x32xf32> to vector<2x32xf32>
    %381 = vector.extract_strided_slice %377 {offsets = [4, 0], sizes = [2, 32], strides = [1, 1]} : vector<8x32xf32> to vector<2x32xf32>
    %382 = tpu.concatenate %378, %379, %380, %381 in 0 : vector<2x32xf32>, vector<2x32xf32>, vector<2x32xf32>, vector<2x32xf32> -> vector<8x32xf32>
    %383 = arith.minimumf %377, %382 : vector<8x32xf32>
    %384 = arith.maximumf %377, %382 : vector<8x32xf32>
    %385 = arith.select %210, %383, %384 : vector<8x32xi1>, vector<8x32xf32>
    %386 = vector.extract_strided_slice %385 {offsets = [1, 0], sizes = [1, 32], strides = [1, 1]} : vector<8x32xf32> to vector<1x32xf32>
    %387 = vector.extract_strided_slice %385 {offsets = [0, 0], sizes = [1, 32], strides = [1, 1]} : vector<8x32xf32> to vector<1x32xf32>
    %388 = vector.extract_strided_slice %385 {offsets = [3, 0], sizes = [1, 32], strides = [1, 1]} : vector<8x32xf32> to vector<1x32xf32>
    %389 = vector.extract_strided_slice %385 {offsets = [2, 0], sizes = [1, 32], strides = [1, 1]} : vector<8x32xf32> to vector<1x32xf32>
    %390 = vector.extract_strided_slice %385 {offsets = [5, 0], sizes = [1, 32], strides = [1, 1]} : vector<8x32xf32> to vector<1x32xf32>
    %391 = vector.extract_strided_slice %385 {offsets = [4, 0], sizes = [1, 32], strides = [1, 1]} : vector<8x32xf32> to vector<1x32xf32>
    %392 = vector.extract_strided_slice %385 {offsets = [7, 0], sizes = [1, 32], strides = [1, 1]} : vector<8x32xf32> to vector<1x32xf32>
    %393 = vector.extract_strided_slice %385 {offsets = [6, 0], sizes = [1, 32], strides = [1, 1]} : vector<8x32xf32> to vector<1x32xf32>
    %394 = tpu.concatenate %386, %387, %388, %389, %390, %391, %392, %393 in 0 : vector<1x32xf32>, vector<1x32xf32>, vector<1x32xf32>, vector<1x32xf32>, vector<1x32xf32>, vector<1x32xf32>, vector<1x32xf32>, vector<1x32xf32> -> vector<8x32xf32>
    %395 = arith.minimumf %385, %394 : vector<8x32xf32>
    %396 = arith.maximumf %385, %394 : vector<8x32xf32>
    %397 = arith.select %220, %395, %396 : vector<8x32xi1>, vector<8x32xf32>
    %398 = tpu.concatenate %112, %90 in 1 : vector<8x16xf32>, vector<8x16xf32> -> vector<8x32xf32>
    %399 = vector.extract_strided_slice %398 {offsets = [1, 0], sizes = [1, 32], strides = [1, 1]} : vector<8x32xf32> to vector<1x32xf32>
    %400 = vector.extract_strided_slice %398 {offsets = [0, 0], sizes = [1, 32], strides = [1, 1]} : vector<8x32xf32> to vector<1x32xf32>
    %401 = vector.extract_strided_slice %398 {offsets = [3, 0], sizes = [1, 32], strides = [1, 1]} : vector<8x32xf32> to vector<1x32xf32>
    %402 = vector.extract_strided_slice %398 {offsets = [2, 0], sizes = [1, 32], strides = [1, 1]} : vector<8x32xf32> to vector<1x32xf32>
    %403 = vector.extract_strided_slice %398 {offsets = [5, 0], sizes = [1, 32], strides = [1, 1]} : vector<8x32xf32> to vector<1x32xf32>
    %404 = vector.extract_strided_slice %398 {offsets = [4, 0], sizes = [1, 32], strides = [1, 1]} : vector<8x32xf32> to vector<1x32xf32>
    %405 = vector.extract_strided_slice %398 {offsets = [7, 0], sizes = [1, 32], strides = [1, 1]} : vector<8x32xf32> to vector<1x32xf32>
    %406 = vector.extract_strided_slice %398 {offsets = [6, 0], sizes = [1, 32], strides = [1, 1]} : vector<8x32xf32> to vector<1x32xf32>
    %407 = tpu.concatenate %399, %400, %401, %402, %403, %404, %405, %406 in 0 : vector<1x32xf32>, vector<1x32xf32>, vector<1x32xf32>, vector<1x32xf32>, vector<1x32xf32>, vector<1x32xf32>, vector<1x32xf32>, vector<1x32xf32> -> vector<8x32xf32>
    %408 = arith.minimumf %398, %407 : vector<8x32xf32>
    %409 = arith.maximumf %398, %407 : vector<8x32xf32>
    %410 = arith.select %170, %408, %409 : vector<8x32xi1>, vector<8x32xf32>
    %411 = vector.extract_strided_slice %410 {offsets = [2, 0], sizes = [2, 32], strides = [1, 1]} : vector<8x32xf32> to vector<2x32xf32>
    %412 = vector.extract_strided_slice %410 {offsets = [0, 0], sizes = [2, 32], strides = [1, 1]} : vector<8x32xf32> to vector<2x32xf32>
    %413 = vector.extract_strided_slice %410 {offsets = [6, 0], sizes = [2, 32], strides = [1, 1]} : vector<8x32xf32> to vector<2x32xf32>
    %414 = vector.extract_strided_slice %410 {offsets = [4, 0], sizes = [2, 32], strides = [1, 1]} : vector<8x32xf32> to vector<2x32xf32>
    %415 = tpu.concatenate %411, %412, %413, %414 in 0 : vector<2x32xf32>, vector<2x32xf32>, vector<2x32xf32>, vector<2x32xf32> -> vector<8x32xf32>
    %416 = arith.minimumf %410, %415 : vector<8x32xf32>
    %417 = arith.maximumf %410, %415 : vector<8x32xf32>
    %418 = arith.select %180, %416, %417 : vector<8x32xi1>, vector<8x32xf32>
    %419 = vector.extract_strided_slice %418 {offsets = [1, 0], sizes = [1, 32], strides = [1, 1]} : vector<8x32xf32> to vector<1x32xf32>
    %420 = vector.extract_strided_slice %418 {offsets = [0, 0], sizes = [1, 32], strides = [1, 1]} : vector<8x32xf32> to vector<1x32xf32>
    %421 = vector.extract_strided_slice %418 {offsets = [3, 0], sizes = [1, 32], strides = [1, 1]} : vector<8x32xf32> to vector<1x32xf32>
    %422 = vector.extract_strided_slice %418 {offsets = [2, 0], sizes = [1, 32], strides = [1, 1]} : vector<8x32xf32> to vector<1x32xf32>
    %423 = vector.extract_strided_slice %418 {offsets = [5, 0], sizes = [1, 32], strides = [1, 1]} : vector<8x32xf32> to vector<1x32xf32>
    %424 = vector.extract_strided_slice %418 {offsets = [4, 0], sizes = [1, 32], strides = [1, 1]} : vector<8x32xf32> to vector<1x32xf32>
    %425 = vector.extract_strided_slice %418 {offsets = [7, 0], sizes = [1, 32], strides = [1, 1]} : vector<8x32xf32> to vector<1x32xf32>
    %426 = vector.extract_strided_slice %418 {offsets = [6, 0], sizes = [1, 32], strides = [1, 1]} : vector<8x32xf32> to vector<1x32xf32>
    %427 = tpu.concatenate %419, %420, %421, %422, %423, %424, %425, %426 in 0 : vector<1x32xf32>, vector<1x32xf32>, vector<1x32xf32>, vector<1x32xf32>, vector<1x32xf32>, vector<1x32xf32>, vector<1x32xf32>, vector<1x32xf32> -> vector<8x32xf32>
    %428 = arith.minimumf %418, %427 : vector<8x32xf32>
    %429 = arith.maximumf %418, %427 : vector<8x32xf32>
    %430 = arith.select %190, %428, %429 : vector<8x32xi1>, vector<8x32xf32>
    %431 = vector.extract_strided_slice %430 {offsets = [4, 0], sizes = [4, 32], strides = [1, 1]} : vector<8x32xf32> to vector<4x32xf32>
    %432 = vector.extract_strided_slice %430 {offsets = [0, 0], sizes = [4, 32], strides = [1, 1]} : vector<8x32xf32> to vector<4x32xf32>
    %433 = tpu.concatenate %431, %432 in 0 : vector<4x32xf32>, vector<4x32xf32> -> vector<8x32xf32>
    %434 = arith.minimumf %430, %433 : vector<8x32xf32>
    %435 = arith.maximumf %430, %433 : vector<8x32xf32>
    %436 = arith.select %200, %434, %435 : vector<8x32xi1>, vector<8x32xf32>
    %437 = vector.extract_strided_slice %436 {offsets = [2, 0], sizes = [2, 32], strides = [1, 1]} : vector<8x32xf32> to vector<2x32xf32>
    %438 = vector.extract_strided_slice %436 {offsets = [0, 0], sizes = [2, 32], strides = [1, 1]} : vector<8x32xf32> to vector<2x32xf32>
    %439 = vector.extract_strided_slice %436 {offsets = [6, 0], sizes = [2, 32], strides = [1, 1]} : vector<8x32xf32> to vector<2x32xf32>
    %440 = vector.extract_strided_slice %436 {offsets = [4, 0], sizes = [2, 32], strides = [1, 1]} : vector<8x32xf32> to vector<2x32xf32>
    %441 = tpu.concatenate %437, %438, %439, %440 in 0 : vector<2x32xf32>, vector<2x32xf32>, vector<2x32xf32>, vector<2x32xf32> -> vector<8x32xf32>
    %442 = arith.minimumf %436, %441 : vector<8x32xf32>
    %443 = arith.maximumf %436, %441 : vector<8x32xf32>
    %444 = arith.select %210, %442, %443 : vector<8x32xi1>, vector<8x32xf32>
    %445 = vector.extract_strided_slice %444 {offsets = [1, 0], sizes = [1, 32], strides = [1, 1]} : vector<8x32xf32> to vector<1x32xf32>
    %446 = vector.extract_strided_slice %444 {offsets = [0, 0], sizes = [1, 32], strides = [1, 1]} : vector<8x32xf32> to vector<1x32xf32>
    %447 = vector.extract_strided_slice %444 {offsets = [3, 0], sizes = [1, 32], strides = [1, 1]} : vector<8x32xf32> to vector<1x32xf32>
    %448 = vector.extract_strided_slice %444 {offsets = [2, 0], sizes = [1, 32], strides = [1, 1]} : vector<8x32xf32> to vector<1x32xf32>
    %449 = vector.extract_strided_slice %444 {offsets = [5, 0], sizes = [1, 32], strides = [1, 1]} : vector<8x32xf32> to vector<1x32xf32>
    %450 = vector.extract_strided_slice %444 {offsets = [4, 0], sizes = [1, 32], strides = [1, 1]} : vector<8x32xf32> to vector<1x32xf32>
    %451 = vector.extract_strided_slice %444 {offsets = [7, 0], sizes = [1, 32], strides = [1, 1]} : vector<8x32xf32> to vector<1x32xf32>
    %452 = vector.extract_strided_slice %444 {offsets = [6, 0], sizes = [1, 32], strides = [1, 1]} : vector<8x32xf32> to vector<1x32xf32>
    %453 = tpu.concatenate %445, %446, %447, %448, %449, %450, %451, %452 in 0 : vector<1x32xf32>, vector<1x32xf32>, vector<1x32xf32>, vector<1x32xf32>, vector<1x32xf32>, vector<1x32xf32>, vector<1x32xf32>, vector<1x32xf32> -> vector<8x32xf32>
    %454 = arith.minimumf %444, %453 : vector<8x32xf32>
    %455 = arith.maximumf %444, %453 : vector<8x32xf32>
    %456 = arith.select %220, %454, %455 : vector<8x32xi1>, vector<8x32xf32>
    %457 = tpu.concatenate %135, %67 in 1 : vector<8x16xf32>, vector<8x16xf32> -> vector<8x32xf32>
    %458 = vector.extract_strided_slice %457 {offsets = [1, 0], sizes = [1, 32], strides = [1, 1]} : vector<8x32xf32> to vector<1x32xf32>
    %459 = vector.extract_strided_slice %457 {offsets = [0, 0], sizes = [1, 32], strides = [1, 1]} : vector<8x32xf32> to vector<1x32xf32>
    %460 = vector.extract_strided_slice %457 {offsets = [3, 0], sizes = [1, 32], strides = [1, 1]} : vector<8x32xf32> to vector<1x32xf32>
    %461 = vector.extract_strided_slice %457 {offsets = [2, 0], sizes = [1, 32], strides = [1, 1]} : vector<8x32xf32> to vector<1x32xf32>
    %462 = vector.extract_strided_slice %457 {offsets = [5, 0], sizes = [1, 32], strides = [1, 1]} : vector<8x32xf32> to vector<1x32xf32>
    %463 = vector.extract_strided_slice %457 {offsets = [4, 0], sizes = [1, 32], strides = [1, 1]} : vector<8x32xf32> to vector<1x32xf32>
    %464 = vector.extract_strided_slice %457 {offsets = [7, 0], sizes = [1, 32], strides = [1, 1]} : vector<8x32xf32> to vector<1x32xf32>
    %465 = vector.extract_strided_slice %457 {offsets = [6, 0], sizes = [1, 32], strides = [1, 1]} : vector<8x32xf32> to vector<1x32xf32>
    %466 = tpu.concatenate %458, %459, %460, %461, %462, %463, %464, %465 in 0 : vector<1x32xf32>, vector<1x32xf32>, vector<1x32xf32>, vector<1x32xf32>, vector<1x32xf32>, vector<1x32xf32>, vector<1x32xf32>, vector<1x32xf32> -> vector<8x32xf32>
    %467 = arith.minimumf %457, %466 : vector<8x32xf32>
    %468 = arith.maximumf %457, %466 : vector<8x32xf32>
    %469 = arith.select %170, %467, %468 : vector<8x32xi1>, vector<8x32xf32>
    %470 = vector.extract_strided_slice %469 {offsets = [2, 0], sizes = [2, 32], strides = [1, 1]} : vector<8x32xf32> to vector<2x32xf32>
    %471 = vector.extract_strided_slice %469 {offsets = [0, 0], sizes = [2, 32], strides = [1, 1]} : vector<8x32xf32> to vector<2x32xf32>
    %472 = vector.extract_strided_slice %469 {offsets = [6, 0], sizes = [2, 32], strides = [1, 1]} : vector<8x32xf32> to vector<2x32xf32>
    %473 = vector.extract_strided_slice %469 {offsets = [4, 0], sizes = [2, 32], strides = [1, 1]} : vector<8x32xf32> to vector<2x32xf32>
    %474 = tpu.concatenate %470, %471, %472, %473 in 0 : vector<2x32xf32>, vector<2x32xf32>, vector<2x32xf32>, vector<2x32xf32> -> vector<8x32xf32>
    %475 = arith.minimumf %469, %474 : vector<8x32xf32>
    %476 = arith.maximumf %469, %474 : vector<8x32xf32>
    %477 = arith.select %180, %475, %476 : vector<8x32xi1>, vector<8x32xf32>
    %478 = vector.extract_strided_slice %477 {offsets = [1, 0], sizes = [1, 32], strides = [1, 1]} : vector<8x32xf32> to vector<1x32xf32>
    %479 = vector.extract_strided_slice %477 {offsets = [0, 0], sizes = [1, 32], strides = [1, 1]} : vector<8x32xf32> to vector<1x32xf32>
    %480 = vector.extract_strided_slice %477 {offsets = [3, 0], sizes = [1, 32], strides = [1, 1]} : vector<8x32xf32> to vector<1x32xf32>
    %481 = vector.extract_strided_slice %477 {offsets = [2, 0], sizes = [1, 32], strides = [1, 1]} : vector<8x32xf32> to vector<1x32xf32>
    %482 = vector.extract_strided_slice %477 {offsets = [5, 0], sizes = [1, 32], strides = [1, 1]} : vector<8x32xf32> to vector<1x32xf32>
    %483 = vector.extract_strided_slice %477 {offsets = [4, 0], sizes = [1, 32], strides = [1, 1]} : vector<8x32xf32> to vector<1x32xf32>
    %484 = vector.extract_strided_slice %477 {offsets = [7, 0], sizes = [1, 32], strides = [1, 1]} : vector<8x32xf32> to vector<1x32xf32>
    %485 = vector.extract_strided_slice %477 {offsets = [6, 0], sizes = [1, 32], strides = [1, 1]} : vector<8x32xf32> to vector<1x32xf32>
    %486 = tpu.concatenate %478, %479, %480, %481, %482, %483, %484, %485 in 0 : vector<1x32xf32>, vector<1x32xf32>, vector<1x32xf32>, vector<1x32xf32>, vector<1x32xf32>, vector<1x32xf32>, vector<1x32xf32>, vector<1x32xf32> -> vector<8x32xf32>
    %487 = arith.minimumf %477, %486 : vector<8x32xf32>
    %488 = arith.maximumf %477, %486 : vector<8x32xf32>
    %489 = arith.select %190, %487, %488 : vector<8x32xi1>, vector<8x32xf32>
    %490 = vector.extract_strided_slice %489 {offsets = [4, 0], sizes = [4, 32], strides = [1, 1]} : vector<8x32xf32> to vector<4x32xf32>
    %491 = vector.extract_strided_slice %489 {offsets = [0, 0], sizes = [4, 32], strides = [1, 1]} : vector<8x32xf32> to vector<4x32xf32>
    %492 = tpu.concatenate %490, %491 in 0 : vector<4x32xf32>, vector<4x32xf32> -> vector<8x32xf32>
    %493 = arith.minimumf %489, %492 : vector<8x32xf32>
    %494 = arith.maximumf %489, %492 : vector<8x32xf32>
    %495 = arith.select %200, %493, %494 : vector<8x32xi1>, vector<8x32xf32>
    %496 = vector.extract_strided_slice %495 {offsets = [2, 0], sizes = [2, 32], strides = [1, 1]} : vector<8x32xf32> to vector<2x32xf32>
    %497 = vector.extract_strided_slice %495 {offsets = [0, 0], sizes = [2, 32], strides = [1, 1]} : vector<8x32xf32> to vector<2x32xf32>
    %498 = vector.extract_strided_slice %495 {offsets = [6, 0], sizes = [2, 32], strides = [1, 1]} : vector<8x32xf32> to vector<2x32xf32>
    %499 = vector.extract_strided_slice %495 {offsets = [4, 0], sizes = [2, 32], strides = [1, 1]} : vector<8x32xf32> to vector<2x32xf32>
    %500 = tpu.concatenate %496, %497, %498, %499 in 0 : vector<2x32xf32>, vector<2x32xf32>, vector<2x32xf32>, vector<2x32xf32> -> vector<8x32xf32>
    %501 = arith.minimumf %495, %500 : vector<8x32xf32>
    %502 = arith.maximumf %495, %500 : vector<8x32xf32>
    %503 = arith.select %210, %501, %502 : vector<8x32xi1>, vector<8x32xf32>
    %504 = vector.extract_strided_slice %503 {offsets = [1, 0], sizes = [1, 32], strides = [1, 1]} : vector<8x32xf32> to vector<1x32xf32>
    %505 = vector.extract_strided_slice %503 {offsets = [0, 0], sizes = [1, 32], strides = [1, 1]} : vector<8x32xf32> to vector<1x32xf32>
    %506 = vector.extract_strided_slice %503 {offsets = [3, 0], sizes = [1, 32], strides = [1, 1]} : vector<8x32xf32> to vector<1x32xf32>
    %507 = vector.extract_strided_slice %503 {offsets = [2, 0], sizes = [1, 32], strides = [1, 1]} : vector<8x32xf32> to vector<1x32xf32>
    %508 = vector.extract_strided_slice %503 {offsets = [5, 0], sizes = [1, 32], strides = [1, 1]} : vector<8x32xf32> to vector<1x32xf32>
    %509 = vector.extract_strided_slice %503 {offsets = [4, 0], sizes = [1, 32], strides = [1, 1]} : vector<8x32xf32> to vector<1x32xf32>
    %510 = vector.extract_strided_slice %503 {offsets = [7, 0], sizes = [1, 32], strides = [1, 1]} : vector<8x32xf32> to vector<1x32xf32>
    %511 = vector.extract_strided_slice %503 {offsets = [6, 0], sizes = [1, 32], strides = [1, 1]} : vector<8x32xf32> to vector<1x32xf32>
    %512 = tpu.concatenate %504, %505, %506, %507, %508, %509, %510, %511 in 0 : vector<1x32xf32>, vector<1x32xf32>, vector<1x32xf32>, vector<1x32xf32>, vector<1x32xf32>, vector<1x32xf32>, vector<1x32xf32>, vector<1x32xf32> -> vector<8x32xf32>
    %513 = arith.minimumf %503, %512 : vector<8x32xf32>
    %514 = arith.maximumf %503, %512 : vector<8x32xf32>
    %515 = arith.select %220, %513, %514 : vector<8x32xi1>, vector<8x32xf32>
    %516 = tpu.concatenate %158, %44 in 1 : vector<8x16xf32>, vector<8x16xf32> -> vector<8x32xf32>
    %517 = vector.extract_strided_slice %516 {offsets = [1, 0], sizes = [1, 32], strides = [1, 1]} : vector<8x32xf32> to vector<1x32xf32>
    %518 = vector.extract_strided_slice %516 {offsets = [0, 0], sizes = [1, 32], strides = [1, 1]} : vector<8x32xf32> to vector<1x32xf32>
    %519 = vector.extract_strided_slice %516 {offsets = [3, 0], sizes = [1, 32], strides = [1, 1]} : vector<8x32xf32> to vector<1x32xf32>
    %520 = vector.extract_strided_slice %516 {offsets = [2, 0], sizes = [1, 32], strides = [1, 1]} : vector<8x32xf32> to vector<1x32xf32>
    %521 = vector.extract_strided_slice %516 {offsets = [5, 0], sizes = [1, 32], strides = [1, 1]} : vector<8x32xf32> to vector<1x32xf32>
    %522 = vector.extract_strided_slice %516 {offsets = [4, 0], sizes = [1, 32], strides = [1, 1]} : vector<8x32xf32> to vector<1x32xf32>
    %523 = vector.extract_strided_slice %516 {offsets = [7, 0], sizes = [1, 32], strides = [1, 1]} : vector<8x32xf32> to vector<1x32xf32>
    %524 = vector.extract_strided_slice %516 {offsets = [6, 0], sizes = [1, 32], strides = [1, 1]} : vector<8x32xf32> to vector<1x32xf32>
    %525 = tpu.concatenate %517, %518, %519, %520, %521, %522, %523, %524 in 0 : vector<1x32xf32>, vector<1x32xf32>, vector<1x32xf32>, vector<1x32xf32>, vector<1x32xf32>, vector<1x32xf32>, vector<1x32xf32>, vector<1x32xf32> -> vector<8x32xf32>
    %526 = arith.minimumf %516, %525 : vector<8x32xf32>
    %527 = arith.maximumf %516, %525 : vector<8x32xf32>
    %528 = arith.select %170, %526, %527 : vector<8x32xi1>, vector<8x32xf32>
    %529 = vector.extract_strided_slice %528 {offsets = [2, 0], sizes = [2, 32], strides = [1, 1]} : vector<8x32xf32> to vector<2x32xf32>
    %530 = vector.extract_strided_slice %528 {offsets = [0, 0], sizes = [2, 32], strides = [1, 1]} : vector<8x32xf32> to vector<2x32xf32>
    %531 = vector.extract_strided_slice %528 {offsets = [6, 0], sizes = [2, 32], strides = [1, 1]} : vector<8x32xf32> to vector<2x32xf32>
    %532 = vector.extract_strided_slice %528 {offsets = [4, 0], sizes = [2, 32], strides = [1, 1]} : vector<8x32xf32> to vector<2x32xf32>
    %533 = tpu.concatenate %529, %530, %531, %532 in 0 : vector<2x32xf32>, vector<2x32xf32>, vector<2x32xf32>, vector<2x32xf32> -> vector<8x32xf32>
    %534 = arith.minimumf %528, %533 : vector<8x32xf32>
    %535 = arith.maximumf %528, %533 : vector<8x32xf32>
    %536 = arith.select %180, %534, %535 : vector<8x32xi1>, vector<8x32xf32>
    %537 = vector.extract_strided_slice %536 {offsets = [1, 0], sizes = [1, 32], strides = [1, 1]} : vector<8x32xf32> to vector<1x32xf32>
    %538 = vector.extract_strided_slice %536 {offsets = [0, 0], sizes = [1, 32], strides = [1, 1]} : vector<8x32xf32> to vector<1x32xf32>
    %539 = vector.extract_strided_slice %536 {offsets = [3, 0], sizes = [1, 32], strides = [1, 1]} : vector<8x32xf32> to vector<1x32xf32>
    %540 = vector.extract_strided_slice %536 {offsets = [2, 0], sizes = [1, 32], strides = [1, 1]} : vector<8x32xf32> to vector<1x32xf32>
    %541 = vector.extract_strided_slice %536 {offsets = [5, 0], sizes = [1, 32], strides = [1, 1]} : vector<8x32xf32> to vector<1x32xf32>
    %542 = vector.extract_strided_slice %536 {offsets = [4, 0], sizes = [1, 32], strides = [1, 1]} : vector<8x32xf32> to vector<1x32xf32>
    %543 = vector.extract_strided_slice %536 {offsets = [7, 0], sizes = [1, 32], strides = [1, 1]} : vector<8x32xf32> to vector<1x32xf32>
    %544 = vector.extract_strided_slice %536 {offsets = [6, 0], sizes = [1, 32], strides = [1, 1]} : vector<8x32xf32> to vector<1x32xf32>
    %545 = tpu.concatenate %537, %538, %539, %540, %541, %542, %543, %544 in 0 : vector<1x32xf32>, vector<1x32xf32>, vector<1x32xf32>, vector<1x32xf32>, vector<1x32xf32>, vector<1x32xf32>, vector<1x32xf32>, vector<1x32xf32> -> vector<8x32xf32>
    %546 = arith.minimumf %536, %545 : vector<8x32xf32>
    %547 = arith.maximumf %536, %545 : vector<8x32xf32>
    %548 = arith.select %190, %546, %547 : vector<8x32xi1>, vector<8x32xf32>
    %549 = vector.extract_strided_slice %548 {offsets = [4, 0], sizes = [4, 32], strides = [1, 1]} : vector<8x32xf32> to vector<4x32xf32>
    %550 = vector.extract_strided_slice %548 {offsets = [0, 0], sizes = [4, 32], strides = [1, 1]} : vector<8x32xf32> to vector<4x32xf32>
    %551 = tpu.concatenate %549, %550 in 0 : vector<4x32xf32>, vector<4x32xf32> -> vector<8x32xf32>
    %552 = arith.minimumf %548, %551 : vector<8x32xf32>
    %553 = arith.maximumf %548, %551 : vector<8x32xf32>
    %554 = arith.select %200, %552, %553 : vector<8x32xi1>, vector<8x32xf32>
    %555 = vector.extract_strided_slice %554 {offsets = [2, 0], sizes = [2, 32], strides = [1, 1]} : vector<8x32xf32> to vector<2x32xf32>
    %556 = vector.extract_strided_slice %554 {offsets = [0, 0], sizes = [2, 32], strides = [1, 1]} : vector<8x32xf32> to vector<2x32xf32>
    %557 = vector.extract_strided_slice %554 {offsets = [6, 0], sizes = [2, 32], strides = [1, 1]} : vector<8x32xf32> to vector<2x32xf32>
    %558 = vector.extract_strided_slice %554 {offsets = [4, 0], sizes = [2, 32], strides = [1, 1]} : vector<8x32xf32> to vector<2x32xf32>
    %559 = tpu.concatenate %555, %556, %557, %558 in 0 : vector<2x32xf32>, vector<2x32xf32>, vector<2x32xf32>, vector<2x32xf32> -> vector<8x32xf32>
    %560 = arith.minimumf %554, %559 : vector<8x32xf32>
    %561 = arith.maximumf %554, %559 : vector<8x32xf32>
    %562 = arith.select %210, %560, %561 : vector<8x32xi1>, vector<8x32xf32>
    %563 = vector.extract_strided_slice %562 {offsets = [1, 0], sizes = [1, 32], strides = [1, 1]} : vector<8x32xf32> to vector<1x32xf32>
    %564 = vector.extract_strided_slice %562 {offsets = [0, 0], sizes = [1, 32], strides = [1, 1]} : vector<8x32xf32> to vector<1x32xf32>
    %565 = vector.extract_strided_slice %562 {offsets = [3, 0], sizes = [1, 32], strides = [1, 1]} : vector<8x32xf32> to vector<1x32xf32>
    %566 = vector.extract_strided_slice %562 {offsets = [2, 0], sizes = [1, 32], strides = [1, 1]} : vector<8x32xf32> to vector<1x32xf32>
    %567 = vector.extract_strided_slice %562 {offsets = [5, 0], sizes = [1, 32], strides = [1, 1]} : vector<8x32xf32> to vector<1x32xf32>
    %568 = vector.extract_strided_slice %562 {offsets = [4, 0], sizes = [1, 32], strides = [1, 1]} : vector<8x32xf32> to vector<1x32xf32>
    %569 = vector.extract_strided_slice %562 {offsets = [7, 0], sizes = [1, 32], strides = [1, 1]} : vector<8x32xf32> to vector<1x32xf32>
    %570 = vector.extract_strided_slice %562 {offsets = [6, 0], sizes = [1, 32], strides = [1, 1]} : vector<8x32xf32> to vector<1x32xf32>
    %571 = tpu.concatenate %563, %564, %565, %566, %567, %568, %569, %570 in 0 : vector<1x32xf32>, vector<1x32xf32>, vector<1x32xf32>, vector<1x32xf32>, vector<1x32xf32>, vector<1x32xf32>, vector<1x32xf32>, vector<1x32xf32> -> vector<8x32xf32>
    %572 = arith.minimumf %562, %571 : vector<8x32xf32>
    %573 = arith.maximumf %562, %571 : vector<8x32xf32>
    %574 = arith.select %220, %572, %573 : vector<8x32xi1>, vector<8x32xf32>
    %575 = vector.extract_strided_slice %279 {offsets = [7, 0], sizes = [1, 32], strides = [1, 1]} : vector<8x32xf32> to vector<1x32xf32>
    %576 = vector.extract_strided_slice %338 {offsets = [7, 0], sizes = [1, 32], strides = [1, 1]} : vector<8x32xf32> to vector<1x32xf32>
    %577 = vector.extract_strided_slice %397 {offsets = [7, 0], sizes = [1, 32], strides = [1, 1]} : vector<8x32xf32> to vector<1x32xf32>
    %578 = vector.extract_strided_slice %456 {offsets = [7, 0], sizes = [1, 32], strides = [1, 1]} : vector<8x32xf32> to vector<1x32xf32>
    %579 = vector.extract_strided_slice %515 {offsets = [7, 0], sizes = [1, 32], strides = [1, 1]} : vector<8x32xf32> to vector<1x32xf32>
    %580 = vector.extract_strided_slice %574 {offsets = [7, 0], sizes = [1, 32], strides = [1, 1]} : vector<8x32xf32> to vector<1x32xf32>
    %581 = tpu.concatenate %575, %576, %577, %578, %579, %580 in 0 : vector<1x32xf32>, vector<1x32xf32>, vector<1x32xf32>, vector<1x32xf32>, vector<1x32xf32>, vector<1x32xf32> -> vector<6x32xf32>
    %582 = vector.extract_strided_slice %279 {offsets = [6, 0], sizes = [1, 32], strides = [1, 1]} : vector<8x32xf32> to vector<1x32xf32>
    %583 = vector.extract_strided_slice %338 {offsets = [6, 0], sizes = [1, 32], strides = [1, 1]} : vector<8x32xf32> to vector<1x32xf32>
    %584 = vector.extract_strided_slice %397 {offsets = [6, 0], sizes = [1, 32], strides = [1, 1]} : vector<8x32xf32> to vector<1x32xf32>
    %585 = vector.extract_strided_slice %456 {offsets = [6, 0], sizes = [1, 32], strides = [1, 1]} : vector<8x32xf32> to vector<1x32xf32>
    %586 = vector.extract_strided_slice %515 {offsets = [6, 0], sizes = [1, 32], strides = [1, 1]} : vector<8x32xf32> to vector<1x32xf32>
    %587 = vector.extract_strided_slice %574 {offsets = [6, 0], sizes = [1, 32], strides = [1, 1]} : vector<8x32xf32> to vector<1x32xf32>
    %588 = tpu.concatenate %582, %583, %584, %585, %586, %587 in 0 : vector<1x32xf32>, vector<1x32xf32>, vector<1x32xf32>, vector<1x32xf32>, vector<1x32xf32>, vector<1x32xf32> -> vector<6x32xf32>
    %589 = vector.extract_strided_slice %279 {offsets = [5, 0], sizes = [1, 32], strides = [1, 1]} : vector<8x32xf32> to vector<1x32xf32>
    %590 = vector.extract_strided_slice %338 {offsets = [5, 0], sizes = [1, 32], strides = [1, 1]} : vector<8x32xf32> to vector<1x32xf32>
    %591 = vector.extract_strided_slice %397 {offsets = [5, 0], sizes = [1, 32], strides = [1, 1]} : vector<8x32xf32> to vector<1x32xf32>
    %592 = vector.extract_strided_slice %456 {offsets = [5, 0], sizes = [1, 32], strides = [1, 1]} : vector<8x32xf32> to vector<1x32xf32>
    %593 = vector.extract_strided_slice %515 {offsets = [5, 0], sizes = [1, 32], strides = [1, 1]} : vector<8x32xf32> to vector<1x32xf32>
    %594 = vector.extract_strided_slice %574 {offsets = [5, 0], sizes = [1, 32], strides = [1, 1]} : vector<8x32xf32> to vector<1x32xf32>
    %595 = tpu.concatenate %589, %590, %591, %592, %593, %594 in 0 : vector<1x32xf32>, vector<1x32xf32>, vector<1x32xf32>, vector<1x32xf32>, vector<1x32xf32>, vector<1x32xf32> -> vector<6x32xf32>
    %596 = vector.extract_strided_slice %279 {offsets = [0, 0], sizes = [1, 32], strides = [1, 1]} : vector<8x32xf32> to vector<1x32xf32>
    %597 = vector.extract_strided_slice %338 {offsets = [0, 0], sizes = [1, 32], strides = [1, 1]} : vector<8x32xf32> to vector<1x32xf32>
    %598 = vector.extract_strided_slice %397 {offsets = [0, 0], sizes = [1, 32], strides = [1, 1]} : vector<8x32xf32> to vector<1x32xf32>
    %599 = vector.extract_strided_slice %456 {offsets = [0, 0], sizes = [1, 32], strides = [1, 1]} : vector<8x32xf32> to vector<1x32xf32>
    %600 = vector.extract_strided_slice %515 {offsets = [0, 0], sizes = [1, 32], strides = [1, 1]} : vector<8x32xf32> to vector<1x32xf32>
    %601 = vector.extract_strided_slice %574 {offsets = [0, 0], sizes = [1, 32], strides = [1, 1]} : vector<8x32xf32> to vector<1x32xf32>
    %602 = tpu.concatenate %596, %597, %598, %599, %600, %601 in 0 : vector<1x32xf32>, vector<1x32xf32>, vector<1x32xf32>, vector<1x32xf32>, vector<1x32xf32>, vector<1x32xf32> -> vector<6x32xf32>
    %603 = vector.extract_strided_slice %279 {offsets = [1, 0], sizes = [1, 32], strides = [1, 1]} : vector<8x32xf32> to vector<1x32xf32>
    %604 = vector.extract_strided_slice %338 {offsets = [1, 0], sizes = [1, 32], strides = [1, 1]} : vector<8x32xf32> to vector<1x32xf32>
    %605 = vector.extract_strided_slice %397 {offsets = [1, 0], sizes = [1, 32], strides = [1, 1]} : vector<8x32xf32> to vector<1x32xf32>
    %606 = vector.extract_strided_slice %456 {offsets = [1, 0], sizes = [1, 32], strides = [1, 1]} : vector<8x32xf32> to vector<1x32xf32>
    %607 = vector.extract_strided_slice %515 {offsets = [1, 0], sizes = [1, 32], strides = [1, 1]} : vector<8x32xf32> to vector<1x32xf32>
    %608 = vector.extract_strided_slice %574 {offsets = [1, 0], sizes = [1, 32], strides = [1, 1]} : vector<8x32xf32> to vector<1x32xf32>
    %609 = tpu.concatenate %603, %604, %605, %606, %607, %608 in 0 : vector<1x32xf32>, vector<1x32xf32>, vector<1x32xf32>, vector<1x32xf32>, vector<1x32xf32>, vector<1x32xf32> -> vector<6x32xf32>
    %610 = vector.extract_strided_slice %279 {offsets = [2, 0], sizes = [1, 32], strides = [1, 1]} : vector<8x32xf32> to vector<1x32xf32>
    %611 = vector.extract_strided_slice %338 {offsets = [2, 0], sizes = [1, 32], strides = [1, 1]} : vector<8x32xf32> to vector<1x32xf32>
    %612 = vector.extract_strided_slice %397 {offsets = [2, 0], sizes = [1, 32], strides = [1, 1]} : vector<8x32xf32> to vector<1x32xf32>
    %613 = vector.extract_strided_slice %456 {offsets = [2, 0], sizes = [1, 32], strides = [1, 1]} : vector<8x32xf32> to vector<1x32xf32>
    %614 = vector.extract_strided_slice %515 {offsets = [2, 0], sizes = [1, 32], strides = [1, 1]} : vector<8x32xf32> to vector<1x32xf32>
    %615 = vector.extract_strided_slice %574 {offsets = [2, 0], sizes = [1, 32], strides = [1, 1]} : vector<8x32xf32> to vector<1x32xf32>
    %616 = tpu.concatenate %610, %611, %612, %613, %614, %615 in 0 : vector<1x32xf32>, vector<1x32xf32>, vector<1x32xf32>, vector<1x32xf32>, vector<1x32xf32>, vector<1x32xf32> -> vector<6x32xf32>
    %617 = tpu.concatenate %581, %588, %595, %602, %609, %616 in 1 : vector<6x32xf32>, vector<6x32xf32>, vector<6x32xf32>, vector<6x32xf32>, vector<6x32xf32>, vector<6x32xf32> -> vector<6x192xf32>
    %c0_i32_51 = arith.constant 0 : i32
    %618 = tpu.memref_slice %arg14[%c0_i32_51] : memref<2x!tpu.dma_semaphore, #tpu.memory_space<semaphore_mem>> -> memref<1x!tpu.dma_semaphore, #tpu.memory_space<semaphore_mem>>
    %619 = tpu.memref_squeeze %618 : memref<1x!tpu.dma_semaphore, #tpu.memory_space<semaphore_mem>> -> memref<!tpu.dma_semaphore, #tpu.memory_space<semaphore_mem>>
    tpu.wait_dma2 semaphore(%619 : memref<!tpu.dma_semaphore, #tpu.memory_space<semaphore_mem>>) src(%arg5 : memref<192x128xf32, #tpu.memory_space<any>>) dst(%arg12 : memref<192x128xf32, #tpu.memory_space<vmem>>)
    %c0_52 = arith.constant 0 : index
    %c0_53 = arith.constant 0 : index
    %620 = vector.load %arg12[%c0_52, %c0_53] : memref<192x128xf32, #tpu.memory_space<vmem>>, vector<192x128xf32>
    %cst_54 = arith.constant dense<0.000000e+00> : vector<6x128xf32>
    %621 = tpu.matmul %617, %620, %cst_54 {dimension_numbers = #tpu.dot_dimension_numbers<[1], [0], [0], [1], [0, 0, 1, 1], [], []>} : vector<6x192xf32>, vector<192x128xf32>, vector<6x128xf32> -> vector<6x128xf32>
    %c0_55 = arith.constant 0 : index
    %c0_56 = arith.constant 0 : index
    %622 = vector.load %arg6[%c0_55, %c0_56] : memref<1x128xf32, #tpu.memory_space<vmem>>, vector<1x128xf32>
    %623 = vector.broadcast %622 : vector<1x128xf32> to vector<6x128xf32>
    %624 = arith.addf %621, %623 : vector<6x128xf32>
    %cst_57 = arith.constant 0.000000e+00 : f32
    %625 = vector.broadcast %cst_57 : f32 to vector<6x128xf32>
    %626 = arith.maximumf %624, %625 : vector<6x128xf32>
    %c1_i32_58 = arith.constant 1 : i32
    %627 = tpu.memref_slice %arg14[%c1_i32_58] : memref<2x!tpu.dma_semaphore, #tpu.memory_space<semaphore_mem>> -> memref<1x!tpu.dma_semaphore, #tpu.memory_space<semaphore_mem>>
    %628 = tpu.memref_squeeze %627 : memref<1x!tpu.dma_semaphore, #tpu.memory_space<semaphore_mem>> -> memref<!tpu.dma_semaphore, #tpu.memory_space<semaphore_mem>>
    tpu.wait_dma2 semaphore(%628 : memref<!tpu.dma_semaphore, #tpu.memory_space<semaphore_mem>>) src(%arg7 : memref<128x64xf32, #tpu.memory_space<any>>) dst(%arg13 : memref<128x64xf32, #tpu.memory_space<vmem>>)
    %c0_59 = arith.constant 0 : index
    %c0_60 = arith.constant 0 : index
    %629 = vector.load %arg13[%c0_59, %c0_60] : memref<128x64xf32, #tpu.memory_space<vmem>>, vector<128x64xf32>
    %cst_61 = arith.constant dense<0.000000e+00> : vector<6x64xf32>
    %630 = tpu.matmul %626, %629, %cst_61 {dimension_numbers = #tpu.dot_dimension_numbers<[1], [0], [0], [1], [0, 0, 1, 1], [], []>} : vector<6x128xf32>, vector<128x64xf32>, vector<6x64xf32> -> vector<6x64xf32>
    %c0_62 = arith.constant 0 : index
    %c0_63 = arith.constant 0 : index
    %631 = vector.load %arg8[%c0_62, %c0_63] : memref<1x64xf32, #tpu.memory_space<vmem>>, vector<1x64xf32>
    %632 = vector.broadcast %631 : vector<1x64xf32> to vector<6x64xf32>
    %633 = arith.addf %630, %632 : vector<6x64xf32>
    %cst_64 = arith.constant 0.000000e+00 : f32
    %634 = vector.broadcast %cst_64 : f32 to vector<6x64xf32>
    %635 = arith.maximumf %633, %634 : vector<6x64xf32>
    %c0_65 = arith.constant 0 : index
    %c0_66 = arith.constant 0 : index
    %636 = vector.load %arg9[%c0_65, %c0_66] : memref<64x8xf32, #tpu.memory_space<vmem>>, vector<64x8xf32>
    %cst_67 = arith.constant dense<0.000000e+00> : vector<6x8xf32>
    %637 = tpu.matmul %635, %636, %cst_67 {dimension_numbers = #tpu.dot_dimension_numbers<[1], [0], [0], [1], [0, 0, 1, 1], [], []>} : vector<6x64xf32>, vector<64x8xf32>, vector<6x8xf32> -> vector<6x8xf32>
    %c0_68 = arith.constant 0 : index
    %c0_69 = arith.constant 0 : index
    %638 = vector.load %arg10[%c0_68, %c0_69] : memref<1x8xf32, #tpu.memory_space<vmem>>, vector<1x8xf32>
    %639 = vector.broadcast %638 : vector<1x8xf32> to vector<6x8xf32>
    %640 = arith.addf %637, %639 : vector<6x8xf32>
    %c0_70 = arith.constant 0 : index
    %c0_71 = arith.constant 0 : index
    %641 = vector.load %arg11[%c0_70, %c0_71] : memref<6x8xf32, #tpu.memory_space<vmem>>, vector<6x8xf32>
    tpu.vector_store %arg11[%c0_70, %c0_71], %640 {strides = array<i32>} : memref<6x8xf32, #tpu.memory_space<vmem>>, vector<6x8xf32>,
    return
  }
}

</mosaic_0001>

<bundles_post_ra>
// kernel: classifier_forward.1
= control target key start
LH: loop header
LB: loop body
LE: loop exit
PB: predicated region body
PF: predicated region fallthrough
CT: control target
= control target key end

     0   :  { %16 = vsyncpa [#allocation6], 0  ;;  %s3803_s0 = inlined_call_operand.hbm [shape: s32[6,8], index: 0, kind: input, shape index: {}]   ;;  %s3804_s1 = inlined_call_operand.hbm [shape: f32[64,128], index: 1, kind: input, shape index: {}]   ;;  %s3805_s2 = inlined_call_operand.hbm [shape: f32[64,128], index: 2, kind: input, shape index: {}]   ;;  %s3806_s3 = inlined_call_operand.vmem [shape: f32[1,128], index: 3, kind: input, shape index: {}]   ;;  %s3807_s4 = inlined_call_operand.vmem [shape: f32[32,128], index: 4, kind: input, shape index: {}]   ;;  %s3808_s5 = inlined_call_operand.vmem [shape: f32[192,128], index: 5, kind: input, shape index: {}]   ;;  %s3809_s6 = inlined_call_operand.vmem [shape: f32[1,128], index: 6, kind: input, shape index: {}]   ;;  %s3810_s7 = inlined_call_operand.vmem [shape: f32[128,64], index: 7, kind: input, shape index: {}]   ;;  %s3811_s8 = inlined_call_operand.hbm [shape: f32[1,64], index: 8, kind: input, shape index: {}]   ;;  %s3812_s9 = inlined_call_operand.vmem [shape: f32[64,8], index: 9, kind: input, shape index: {}]   ;;  %s3813_s10 = inlined_call_operand.hbm [shape: f32[1,8], index: 10, kind: input, shape index: {}]   ;;  %s3814_s11 = inlined_call_operand.hbm [shape: f32[6,8], index: 11, kind: output, shape index: {}]  }
   0x1   :  { %17 = vsyncpa [#allocation9], 0 }
   0x2   :  { %18 = vsyncpa [#allocation12], 0 }
   0x3   :  { %19 = vsyncpa [#allocation7], 0  ;;  %s2751_s17 = smov [#allocation8]   ;;  %s2607_s21 = scalar_lea.hbm %s3804_s1, 1024 }
   0x4   :  { %s35_s18 = sshll.u32 %s2751_s17, 4  ;;  %p2608_p0 = scmp.ne.s32.totalorder %s3804_s1, %s2607_s21  ;;  %s36_s18 = int_to_ptr.vmem [resolvable:$true] %s35_s18 }
   0x5   :  { %p2611_p1 = scmp.lt.u32.totalorder %s2607_s21, %s3804_s1 }
   0x7   :  { %p2613_p2 = pnand %p2611_p1, %p2608_p0 }
   0x9   :  { %2616 = shalt.err (!%p2613_p2)
}
   0xa   :  { %s2617_s26 = scalar_lea.vmem %s36_s18, 1024  ;;  %p2622_p4 = scmp.lt.s32.totalorder %s36_s18, %s36_s18 }
   0xb   :  { %p2618_p3 = scmp.ne.s32.totalorder %s36_s18, %s2617_s26  ;;  %p2623_p5 = scmp.lt.s32.totalorder %s2617_s26, %s2617_s26 }
   0xd   :  { %p2624_p6 = por %p2623_p5, %p2622_p4 }
   0xf   :  { %p2625_p7 = pnand %p2624_p6, %p2618_p3 }
  0x11   :  { %2628 = shalt.err (!%p2625_p7)
}
  0x12   :  { %s2752_s27 = smov 128   ;;  %s2753_s28 = smov 8  }
  0x13   :  { %41 = dma.hbm_to_vmem [thread:$0]  %s3804_s1, 1024, %s36_s18, [#allocation9], %s2752_s27, %s2752_s27, %s2753_s28  }
  0x14   :  { %s2754_s12 = smov [#allocation11]   ;;  %s2755_s14 = smov [#allocation5]  }
  0x15   :  { %s66_s13 = sshll.u32 %s2754_s12, 4  ;;  %s26_s15 = sshll.u32 %s2755_s14, 4  ;;  %s67_s13 = int_to_ptr.vmem [resolvable:$true] %s66_s13  ;;  %s27_s15 = int_to_ptr.vmem [resolvable:$true] %s26_s15 }
  0x16   :  { %s2629_s19 = scalar_lea.hbm %s3811_s8, 16 }
  0x17   :  { %p2630_p8 = scmp.ne.s32.totalorder %s3811_s8, %s2629_s19  ;;  %p2633_p9 = scmp.lt.u32.totalorder %s2629_s19, %s3811_s8 }
  0x19   :  { %p2635_p10 = pnand %p2633_p9, %p2630_p8 }
  0x1b   :  { %2638 = shalt.err (!%p2635_p10)
}
  0x1c   :  { %s2639_s1 = scalar_lea.vmem %s67_s13, 16  ;;  %s2643_s18 = scalar_lea.vmem %s67_s13, 32 }
  0x1d   :  { %p2640_p11 = scmp.ne.s32.totalorder %s67_s13, %s2639_s1  ;;  %p2644_p12 = scmp.lt.s32.totalorder %s67_s13, %s67_s13 }
  0x1e   :  { %p2645_p13 = scmp.lt.s32.totalorder %s2643_s18, %s2639_s1 }
  0x20   :  { %p2646_p0 = por %p2645_p13, %p2644_p12 }
  0x22   :  { %p2647_p1 = pnand %p2646_p0, %p2640_p11 }
  0x24   :  { %2650 = shalt.err (!%p2647_p1)
}
  0x25   :  { %69 = dma.hbm_to_vmem [thread:$0]  %s3811_s8, 16, %s67_s13, [#allocation12]  }
  0x26   :  { %s2651_s30 = scalar_lea.hbm %s3803_s0, 128 }
  0x27   :  { %p2652_p2 = scmp.ne.s32.totalorder %s3803_s0, %s2651_s30  ;;  %p2655_p3 = scmp.lt.u32.totalorder %s2651_s30, %s3803_s0 }
  0x29   :  { %p2657_p4 = pnand %p2655_p3, %p2652_p2 }
  0x2b   :  { %2660 = shalt.err (!%p2657_p4)
}
  0x2c   :  { %s2661_s19 = scalar_lea.vmem %s27_s15, 128  ;;  %p2666_p6 = scmp.lt.s32.totalorder %s27_s15, %s27_s15 }
  0x2d   :  { %p2662_p5 = scmp.ne.s32.totalorder %s27_s15, %s2661_s19  ;;  %p2667_p7 = scmp.lt.s32.totalorder %s2661_s19, %s2661_s19 }
  0x2f   :  { %p2668_p8 = por %p2667_p7, %p2666_p6 }
  0x31   :  { %p2669_p9 = pnand %p2668_p8, %p2662_p5 }
  0x33   :  { %2672 = shalt.err (!%p2669_p9)
}
  0x34   :  { %29 = dma.hbm_to_vmem [thread:$0]  %s3803_s0, 128, %s27_s15, [#allocation6]  }
  0x35   :  { %s2756_s20 = smov [#allocation10]   ;;  %s2757_s22 = smov [#allocation13]  }
  0x36   :  { %s47_s21 = sshll.u32 %s2756_s20, 4  ;;  %s78_s23 = sshll.u32 %s2757_s22, 4  ;;  %s48_s21 = int_to_ptr.vmem [resolvable:$true] %s47_s21  ;;  %s79_s23 = int_to_ptr.vmem [resolvable:$true] %s78_s23 }
  0x37   :  { %s2673_s24 = scalar_lea.hbm %s3805_s2, 1024 }
  0x38   :  { %p2674_p10 = scmp.ne.s32.totalorder %s3805_s2, %s2673_s24  ;;  %p2677_p11 = scmp.lt.u32.totalorder %s2673_s24, %s3805_s2 }
  0x3a   :  { %p2679_p12 = pnand %p2677_p11, %p2674_p10 }
  0x3c   :  { %2682 = shalt.err (!%p2679_p12)
}
  0x3d   :  { %s2683_s0 = scalar_lea.vmem %s48_s21, 1024  ;;  %p2688_p0 = scmp.lt.s32.totalorder %s48_s21, %s48_s21 }
  0x3e   :  { %p2684_p13 = scmp.ne.s32.totalorder %s48_s21, %s2683_s0  ;;  %p2689_p1 = scmp.lt.s32.totalorder %s2683_s0, %s2683_s0 }
  0x40   :  { %p2690_p2 = por %p2689_p1, %p2688_p0 }
  0x42   :  { %p2691_p3 = pnand %p2690_p2, %p2684_p13 }
  0x44   :  { %2694 = shalt.err (!%p2691_p3)
}
  0x45   :  { %53 = dma.hbm_to_vmem [thread:$0]  %s3805_s2, 1024, %s48_s21, [#allocation9], %s2752_s27, %s2752_s27, %s2753_s28  }
  0x46   :  { %s2695_s17 = scalar_lea.hbm %s3813_s10, 16 }
  0x47   :  { %p2696_p4 = scmp.ne.s32.totalorder %s3813_s10, %s2695_s17  ;;  %p2699_p5 = scmp.lt.u32.totalorder %s2695_s17, %s3813_s10 }
  0x49   :  { %p2701_p6 = pnand %p2699_p5, %p2696_p4 }
  0x4b   :  { %2704 = shalt.err (!%p2701_p6)
}
  0x4c   :  { %s2705_s22 = scalar_lea.vmem %s79_s23, 16  ;;  %s2709_s1 = scalar_lea.vmem %s79_s23, 32 }
  0x4d   :  { %p2706_p7 = scmp.ne.s32.totalorder %s79_s23, %s2705_s22  ;;  %p2710_p8 = scmp.lt.s32.totalorder %s79_s23, %s79_s23 }
  0x4e   :  { %p2711_p9 = scmp.lt.s32.totalorder %s2709_s1, %s2705_s22 }
  0x50   :  { %p2712_p10 = por %p2711_p9, %p2710_p8 }
  0x52   :  { %p2713_p11 = pnand %p2712_p10, %p2706_p7 }
  0x54   :  { %2716 = shalt.err (!%p2713_p11)
}
  0x55   :  { %81 = dma.hbm_to_vmem [thread:$0]  %s3813_s10, 16, %s79_s23, [#allocation12]  }
  0x56   :  { %2739 = dma.done.wait [#allocation6], 128  }
  0x57   :  { %2740 = vsyncadd [#allocation6], 4294967168 }
  0x58   :  { %2741 = dma.done.wait [#allocation9], 2048  }
  0x59   :  { %2742 = vsyncadd [#allocation9], 4294965248 }
  0x5a   :  { %2743 = dma.done.wait [#allocation12], 32  }
  0x5b   :  { %2744 = vsyncadd [#allocation12], 4294967264  ;;  %v2895_v0 = vld [vmem:[%s3808_s5] sm:$0xff]  ;;  %v2900_v1 = vld [vmem:[%s3808_s5 + $0x8] sm:$0xff] }
  0x5c   :  { %v2905_v2 = vld [vmem:[%s3808_s5 + $0x10] sm:$0xff]  ;;  %v2910_v3 = vld [vmem:[%s3808_s5 + $0x18] sm:$0xff]  ;;  %v2915_v4 = vld [vmem:[%s3808_s5 + $0x20] sm:$0xff] }
  0x5d   :  { %v2920_v5 = vld [vmem:[%s3808_s5 + $0x28] sm:$0xff]  ;;  %v2925_v6 = vld [vmem:[%s3808_s5 + $0x30] sm:$0xff]  ;;  %v2930_v7 = vld [vmem:[%s3808_s5 + $0x38] sm:$0xff] }
  0x5e   :  { %v2935_v8 = vld [vmem:[%s3808_s5 + $0x40] sm:$0xff]  ;;  %v2940_v9 = vld [vmem:[%s3808_s5 + $0x48] sm:$0xff]  ;;  %v2945_v10 = vld [vmem:[%s3808_s5 + $0x50] sm:$0xff] }
  0x5f   :  { %v2950_v11 = vld [vmem:[%s3808_s5 + $0x58] sm:$0xff]  ;;  %v2955_v12 = vld [vmem:[%s3808_s5 + $0x60] sm:$0xff]  ;;  %v2960_v13 = vld [vmem:[%s3808_s5 + $0x68] sm:$0xff] }
  0x60   :  { %v2965_v14 = vld [vmem:[%s3808_s5 + $0x70] sm:$0xff]  ;;  %v2970_v15 = vld [vmem:[%s3808_s5 + $0x78] sm:$0xff]  ;;  %v2975_v16 = vld [vmem:[%s3808_s5 + $0x80] sm:$0xff] }
  0x61   :  { %v2980_v17 = vld [vmem:[%s3808_s5 + $0x88] sm:$0xff]  ;;  %v2985_v18 = vld [vmem:[%s3808_s5 + $0x90] sm:$0xff]  ;;  %v2990_v19 = vld [vmem:[%s3808_s5 + $0x98] sm:$0xff] }
  0x62   :  { %v2995_v20 = vld [vmem:[%s3808_s5 + $0xa0] sm:$0xff]  ;;  %v3000_v21 = vld [vmem:[%s3808_s5 + $0xa8] sm:$0xff]  ;;  %v3005_v22 = vld [vmem:[%s3808_s5 + $0xb0] sm:$0xff] }
  0x63   :  { %v3010_v23 = vld [vmem:[%s3808_s5 + $0xb8] sm:$0xff] }
  0x64   :  { %184 = vsyncadd [#allocation4], 3072  ;;  %v3015_v24 = vld [vmem:[%s3810_s7] sm:$0xff]  ;;  %v3020_v25 = vld [vmem:[%s3810_s7 + $0x8] sm:$0xff]  ;;  %v3815_v40 = vlaneseq }
  0x65   :  { %v3025_v26 = vld [vmem:[%s3810_s7 + $0x10] sm:$0xff]  ;;  %v3030_v27 = vld [vmem:[%s3810_s7 + $0x18] sm:$0xff]  ;;  %v3035_v28 = vld [vmem:[%s3810_s7 + $0x20] sm:$0xff] }
  0x66   :  { %3826 = vst [vmem:[#allocation23_spill] sm:$0xff] %v3025_v26  ;;  %3827 = vst [vmem:[#allocation24_spill] sm:$0xff] %v3030_v27  ;;  %v3040_v29 = vld [vmem:[%s3810_s7 + $0x28] sm:$0xff]  ;;  %v3045_v30 = vld [vmem:[%s3810_s7 + $0x30] sm:$0xff] }
  0x67   :  { %3828 = vst [vmem:[#allocation25_spill] sm:$0xff] %v3035_v28  ;;  %3829 = vst [vmem:[#allocation26_spill] sm:$0xff] %v3040_v29  ;;  %v3050_v31 = vld [vmem:[%s3810_s7 + $0x38] sm:$0xff]  ;;  %v3055_v32 = vld [vmem:[%s3810_s7 + $0x40] sm:$0xff] }
  0x68   :  { %3830 = vst [vmem:[#allocation27_spill] sm:$0xff] %v3045_v30  ;;  %3831 = vst [vmem:[#allocation28_spill] sm:$0xff] %v3050_v31  ;;  %v3060_v33 = vld [vmem:[%s3810_s7 + $0x48] sm:$0xff]  ;;  %v3065_v34 = vld [vmem:[%s3810_s7 + $0x50] sm:$0xff] }
  0x69   :  { %3832 = vst [vmem:[#allocation29_spill] sm:$0xff] %v3055_v32  ;;  %3833 = vst [vmem:[#allocation30_spill] sm:$0xff] %v3060_v33  ;;  %v3070_v35 = vld [vmem:[%s3810_s7 + $0x58] sm:$0xff]  ;;  %v3075_v36 = vld [vmem:[%s3810_s7 + $0x60] sm:$0xff] }
  0x6a   :  { %3834 = vst [vmem:[#allocation31_spill] sm:$0xff] %v3065_v34  ;;  %3835 = vst [vmem:[#allocation32_spill] sm:$0xff] %v3070_v35  ;;  %v3080_v37 = vld [vmem:[%s3810_s7 + $0x68] sm:$0xff]  ;;  %v3085_v38 = vld [vmem:[%s3810_s7 + $0x70] sm:$0xff] }
  0x6b   :  { %3836 = vst [vmem:[#allocation33_spill] sm:$0xff] %v3075_v36  ;;  %3837 = vst [vmem:[#allocation34_spill] sm:$0xff] %v3080_v37  ;;  %v3090_v39 = vld [vmem:[%s3810_s7 + $0x78] sm:$0xff] }
  0x6c   :  { %3838 = vst [vmem:[#allocation35_spill] sm:$0xff] %v3085_v38  ;;  %3839 = vst [vmem:[#allocation36_spill] sm:$0xff] %v3090_v39 }
  0x6d   :  { %257 = vsyncadd [#allocation4 + $0x1], 2048  ;;  %v321_v41 = vld [vmem:[#allocation8] sm:$0xff]  ;;  %v258_v42 = vld [vmem:[#allocation5] sm:$0x3f]  ;;  %v3093_v46 = vshrl.u32 %v3815_v40, 7 }
  0x6e   :  { %v322_v43 = vld [vmem:[#allocation8 + $0x8] sm:$0xff]  ;;  %v450_v44 = vld [vmem:[#allocation10] sm:$0xff]  ;;  %v323_v49 = vld [vmem:[#allocation8 + $0x10] sm:$0xff]  ;;  %vm3822_vm0 = vcmask 523264   ;;  %vm3820_vm7 = vmmov 0   ;;  %s2762_s16 = smov 64  }
  0x6f   :  { %v451_v45 = vld [vmem:[#allocation10 + $0x8] sm:$0xff]  ;;  %v2404_v47 = vpack.c.bf16 %v322_v43, %v321_v41  ;;  %v324_v50 = vld [vmem:[#allocation8 + $0x18] sm:$0xff]  ;;  %v452_v51 = vld [vmem:[#allocation10 + $0x10] sm:$0xff]  ;;  %v263_v56 = vsub.s32 0, %v3093_v46  ;;  %v277_v57 = vsub.s32 2, %v3093_v46  ;;  %v270_v58 = vsub.s32 1, %v3093_v46 }
  0x70   :  { %v2420_v48 = vpack.c.bf16 %v451_v45, %v450_v44  ;;  %v2408_v52 = vpack.c.bf16 %v324_v50, %v323_v49  ;;  %v453_v53 = vld [vmem:[#allocation10 + $0x18] sm:$0xff]  ;;  %v325_v54 = vld [vmem:[#allocation8 + $0x20] sm:$0xff]  ;;  %v326_v55 = vld [vmem:[#allocation8 + $0x28] sm:$0xff]  ;;  %v284_v59 = vsub.s32 3, %v3093_v46  ;;  %v291_v37 = vsub.s32 4, %v3093_v46  ;;  %s2764_s17 = smov 96  }
  0x71   :  { %2405 = vmatprep.subr.bf16.mxu0 %v2404_v47  ;;  %v454_v60 = vld [vmem:[#allocation10 + $0x20] sm:$0xff]  ;;  %v455_v61 = vld [vmem:[#allocation10 + $0x28] sm:$0xff]  ;;  %v2424_v62 = vpack.c.bf16 %v453_v53, %v452_v51  ;;  %v264_v63 = vrot.slane %v258_v42, %v263_v56  ;;  %v278_v41 = vrot.slane %v258_v42, %v277_v57  ;;  %v2412_v43 = vpack.c.bf16 %v326_v55, %v325_v54  ;;  %v327_v44 = vld [vmem:[#allocation8 + $0x30] sm:$0xff] }
  0x72   :  { %2421 = vmatprep.subr.bf16.mxu1 %v2420_v48  ;;  %2407 = vmatpush3.bf16.msra.mxu0 %v2404_v47  ;;  %v2428_v45 = vpack.c.bf16 %v455_v61, %v454_v60  ;;  %v328_v49 = vld [vmem:[#allocation8 + $0x38] sm:$0xff]  ;;  %v456_v50 = vld [vmem:[#allocation10 + $0x30] sm:$0xff]  ;;  %v271_v39 = vrot.slane %v258_v42, %v270_v58  ;;  %v285_v38 = vrot.slane %v258_v42, %v284_v59  ;;  %v298_v47 = vsub.s32 5, %v3093_v46 }
  0x73   :  { %2423 = vmatpush3.bf16.msra.mxu1 %v2420_v48  ;;  %2409 = vmatprep.subr.bf16.mxu0 %v2408_v52  ;;  %v457_v40 = vld [vmem:[#allocation10 + $0x38] sm:$0xff]  ;;  %v2416_v48 = vpack.c.bf16 %v328_v49, %v327_v44  ;;  %v292_v53 = vrot.slane %v258_v42, %v291_v37  ;;  %v3816_v55 = vmov 0.0|0.0   ;;  %vm3823_vm8 = vcmask 261120  }
  0x74   :  { %2425 = vmatprep.subr.bf16.mxu1 %v2424_v62  ;;  %266 = vbcast.lane.b32.xlu0 %v264_v63, 256  ;;  %v2432_v51 = vpack.c.bf16 %v457_v40, %v456_v50  ;;  %v299_v54 = vrot.slane %v258_v42, %v298_v47  ;;  %v553_v37 = vld [vmem:[%s3807_s4] sm:$0xff]  ;;  %v3818_v42 = vmov 0.0   ;;  %v556_v63 = vld [vmem:[%s3807_s4 + $0x18] sm:$0xff]  ;;  %vm1189_vm9 = vcmask 130048  }
  0x75   :  { %280 = vbcast.lane.b32.xlu1 %v278_v41, 256  ;;  %vm1196_vm10 = vcmask 1040384   ;;  %vm1198_vm11 = vcmask 1041408   ;;  %vm3824_vm12 = vcmask 1042432   ;;  %vm1202_vm13 = vcmask 1043456  }
  0x76   :  { %2411 = vmatpush3.bf16.msra.mxu0 %v2408_v52  ;;  %v3840_v52 = vlaneseq  ;;  %vm1204_vm14 = vcmask 1044480   ;;  %vm1206_vm15 = vcmask 1045504  }
  0x77   :  { %2427 = vmatpush3.bf16.msra.mxu1 %v2424_v62  ;;  %2413 = vmatprep.subr.bf16.mxu0 %v2412_v43  ;;  %v555_v62 = vld [vmem:[%s3807_s4 + $0x10] sm:$0xff] }
  0x78   :  { %2429 = vmatprep.subr.bf16.mxu1 %v2428_v45  ;;  %273 = vbcast.lane.b32.xlu0 %v271_v39, 256  ;;  %v260_v56 = vand.u32 127, %v3840_v52  ;;  %v554_v39 = vld [vmem:[%s3807_s4 + $0x8] sm:$0xff]  ;;  %v3128_v49 = vpack.c.bf16 %v556_v63, %v555_v62 }
  0x79   :  { %287 = vbcast.lane.b32.xlu1 %v285_v38, 256  ;;  %v3113_v59 = vpack.c.bf16 %v554_v39, %v553_v37 }
  0x7a   :  { %2415 = vmatpush3.bf16.msra.mxu0 %v2412_v43 }
  0x7b   :  { %2431 = vmatpush3.bf16.msra.mxu1 %v2428_v45  ;;  %2417 = vmatprep.subr.bf16.mxu0 %v2416_v48 }
  0x7c   :  { %2433 = vmatprep.subr.bf16.mxu1 %v2432_v51  ;;  %294 = vbcast.lane.b32.xlu0 %v292_v53, 256 }
  0x7d   :  { %301 = vbcast.lane.b32.xlu1 %v299_v54, 256 }
  0x7e   :  { %2419 = vmatpush3.bf16.msra.mxu0 %v2416_v48  ;;  %v2119_v48 = vld [vmem:[%s3806_s3] ss:$0 sm:$0xff]  ;;  %s2761_s3 = smov 32  }
  0x7f   :  { %2435 = vmatpush3.bf16.msra.mxu1 %v2432_v51  ;;  %2436 = vmatprep.subr.bf16.mxu0 %v3816_v55 }
  0x80   :  { %2442 = vmatprep.subr.bf16.mxu1 %v3816_v55 }
  0xe6   :  { %v267_v40 = vpop.permute.xlu0 %266 }
  0xe7   :  { %v281_v38 = vpop.permute.xlu1 %280  ;;  %vm303_vm1 = vcmp.eq.s32.totalorder %v267_v40, %v260_v56 }
  0xe8   :  { %v2113_v57 = vsel %vm303_vm1, 1.0, %v3818_v42  ;;  %vm305_vm2 = vcmp.eq.s32.totalorder %v281_v38, %v260_v56  ;;  %vm1208_vm1 = vcmask 1046528  }
  0xe9   :  { %2250 = vmatprep.mubr.msk.f32.mxu0 %vm3822_vm0, %v2113_v57  ;;  %2275 = vmatprep.mubr.msk.f32.mxu1 %vm3822_vm0, %v2113_v57  ;;  %v2115_v61 = vsel %vm305_vm2, 1.0, %v3818_v42 }
  0xea   :  { %v274_v58 = vpop.permute.xlu0 %273 }
  0xeb   :  { %v288_v60 = vpop.permute.xlu1 %287  ;;  %vm304_vm3 = vcmp.eq.s32.totalorder %v274_v58, %v260_v56 }
  0xec   :  { %vm306_vm4 = vcmp.eq.s32.totalorder %v288_v60, %v260_v56  ;;  %v2114_v41 = vsel %vm304_vm3, 1.0, %v3818_v42 }
  0xed   :  { %2251 = vmatmul.mubr.msk.f32.vlgmr.msra.gmra.mrb[0].mxu0 %vm3822_vm0, %v2114_v41  ;;  %2276 = vmatmul.mubr.msk.f32.vlgmr.msra.gmra.mrb[0].mxu1 %vm3822_vm0, %v2114_v41  ;;  %v2116_v43 = vsel %vm306_vm4, 1.0, %v3818_v42 }
  0xee   :  { %2438 = vmatpush3.bf16.msra.mxu0 %v3113_v59  ;;  %2253 = vmatprep.mubr.msk.f32.mxu0 %vm3822_vm0, %v2115_v61  ;;  %v295_v44 = vpop.permute.xlu0 %294 }
  0xef   :  { %v302_v45 = vpop.permute.xlu1 %301  ;;  %2278 = vmatprep.mubr.msk.f32.mxu1 %vm3822_vm0, %v2115_v61  ;;  %vm307_vm5 = vcmp.eq.s32.totalorder %v295_v44, %v260_v56  ;;  %2439 = vmatprep.subr.bf16.mxu0 %v3816_v55 }
  0xf0   :  { %vm308_vm6 = vcmp.eq.s32.totalorder %v302_v45, %v260_v56  ;;  %v2117_v50 = vsel %vm307_vm5, 1.0, %v3818_v42  ;;  %2444 = vmatpush3.bf16.msra.mxu1 %v3113_v59  ;;  %vm2763_vm5 = vmmov 1  }
  0xf1   :  { %2254 = vmatmul.mubr.msk.f32.gmra.mrb[2].mxu0 %vm3822_vm0, %v2116_v43  ;;  %2279 = vmatmul.mubr.msk.f32.gmra.mrb[2].mxu1 %vm3822_vm0, %v2116_v43  ;;  %v2118_v47 = vsel %vm308_vm6, 1.0, %v3818_v42 }
  0xf2   :  { %2441 = vmatpush3.bf16.msra.mxu0 %v3128_v49  ;;  %2256 = vmatprep.mubr.msk.f32.mxu0 %vm3822_vm0, %v2117_v50 }
  0xf3   :  { %2281 = vmatprep.mubr.msk.f32.mxu1 %vm3822_vm0, %v2117_v50  ;;  %2445 = vmatprep.subr.bf16.mxu1 %v3816_v55 }
  0xf4   :  { %2447 = vmatpush3.bf16.msra.mxu1 %v3128_v49  ;;  %2448 = vmatprep.subr.bf16.mxu0 %v3816_v55 }
  0xf5   :  { %2257 = vmatmul.mubr.msk.f32.gmra.mrb[4].mxu0 %vm3822_vm0, %v2118_v47  ;;  %2282 = vmatmul.mubr.msk.f32.gmra.mrb[4].mxu1 %vm3822_vm0, %v2118_v47 }
  0xf6   :  { %2292 = vmatprep.mubr.msk.f32.mxu0 %vm3820_vm7, %v3818_v42  ;;  %2303 = vmatprep.mubr.msk.f32.mxu1 %vm3820_vm7, %v3818_v42 }
  0xf7   :  { %2454 = vmatprep.subr.bf16.mxu1 %v3816_v55 }
  0xf9   :  { %2293 = vmatmul.mubr.f32.vlgmr.msra.gmra.mrb[6].mxu0 %v3818_v42 }
  0xfa   :  { %2450 = vmatpush3.bf16.msra.mxu0 %v3113_v59  ;;  %2314 = vmatprep.mubr.msk.f32.mxu0 %vm3820_vm7, %v3818_v42 }
  0xfb   :  { %2451 = vmatprep.subr.bf16.mxu0 %v3816_v55 }
  0xfe   :  { %2453 = vmatpush3.bf16.msra.mxu0 %v3128_v49 }
  0xff   :  { %2460 = vmatprep.subr.bf16.mxu0 %v3816_v55 }
 0x1c0   :  { %v2252_v51 = vpop.f32.mrb[0].mxu0  ;;  %v2277_v53 = vpop.f32.mrb[0].mxu1 }
 0x1c1   :  { %v427_v54 = vadd.f32 %v2252_v51, %v2119_v48  ;;  %v421_v52 = vpop.f32.mrb[1].mxu0  ;;  %v524_v56 = vpop.f32.mrb[1].mxu1 }
 0x1c2   :  { %v422_v60 = vadd.f32 %v2119_v48, %v421_v52 }
 0x1c4   :  { %v2255_v40 = vpop.f32.mrb[2].mxu0  ;;  %v2280_v38 = vpop.f32.mrb[2].mxu1 }
 0x1c5   :  { %v437_v37 = vadd.f32 %v2255_v40, %v2119_v48  ;;  %v431_v39 = vpop.f32.mrb[3].mxu0  ;;  %v534_v57 = vpop.f32.mrb[3].mxu1 }
 0x1c6   :  { %v432_v58 = vadd.f32 %v2119_v48, %v431_v39 }
 0x1c7   :  { %v3160_v61 = vadd.f32 %v534_v57, %v437_v37 }
 0x1c8   :  { %v2258_v62 = vpop.f32.mrb[4].mxu0  ;;  %v2283_v63 = vpop.f32.mrb[4].mxu1  ;;  %v3162_v41 = vadd.f32 %v2280_v38, %v432_v58 }
 0x1c9   :  { %v447_v43 = vadd.f32 %v2258_v62, %v2119_v48  ;;  %v557_v44 = vadd.f32 %v2283_v63, %v422_v60  ;;  %v441_v45 = vpop.f32.mrb[5].mxu0  ;;  %v544_v50 = vpop.f32.mrb[5].mxu1 }
 0x1ca   :  { %v442_v47 = vadd.f32 %v2119_v48, %v441_v45  ;;  %v657_v51 = vadd.f32 %v544_v50, %v427_v54 }
 0x1cb   :  { %v3164_v55 = vadd.f32 %v524_v56, %v447_v43  ;;  %v3841_v43 = vmov 0.0  }
 0x1cc   :  { %v628_v42 = vpop.f32.mrb[6].mxu0  ;;  %v3166_v40 = vadd.f32 %v2277_v53, %v442_v47 }
 0x1cd   :  { %v632_v36 = vadd.f32 %v628_v42, %v557_v44  ;;  %v2294_v39 = vpop.f32.mrb[7].mxu0  ;;  %v3842_v44 = vmov 0.0|0.0  }
 0x1cf   :  { %2559 = vtanh.f32 %v632_v36  ;;  %v2132_v38 = vmul.f32 -1.442695, %v632_v36 }
 0x1d1   :  { %2561 = vpow2.f32 %v2132_v38 }
 0x1d9   :  { %v2560_v52 = vpop.eup %2559 }
 0x1da   :  { %642 = vrot.lane.b32.xlu0 %v2560_v52, %s2761_s3 }
 0x1db   :  { %v2562_v37 = vpop.eup %2561 }
 0x1dc   :  { %v636_v57 = vadd.f32 1.0, %v2562_v37 }
 0x1de   :  { %2563 = vrcp.f32 %v636_v57 }
 0x1e8   :  { %v2564_v58 = vpop.eup %2563 }
 0x1e9   :  { %v640_v56 = vmul.f32 0.0, %v2564_v58 }
 0x24c   :  { %v643_v48 = vpop.permute.xlu0 %642 }
 0x24d   :  { %v645_v54 = vmul.f32 %v2564_v58, %v643_v48 }
 0x24f   :  { %647 = vrot.lane.b32.xlu1 %v645_v54, %s2761_s3 }
 0x2c1   :  { %v648_v53 = vpop.permute.xlu1 %647 }
 0x2c2   :  { %v650_v60 = vadd.f32 %v648_v53, %v640_v56 }
 0x2c4   :  { %2565 = vtanh.f32 %v650_v60 }
 0x2ce   :  { %v2566_v42 = vpop.eup %2565 }
 0x2cf   :  { %653 = vrot.lane.b32.xlu0 %v2566_v42, %s2761_s3 }
 0x341   :  { %v654_v62 = vpop.permute.xlu0 %653 }
 0x342   :  { %v656_v63 = vmul.f32 %v2564_v58, %v654_v62 }
 0x344   :  { %659 = vrot.lane.b32.xlu1 %v656_v63, %s2762_s16 }
 0x3b6   :  { %v3172_v36 = vpop.permute.xlu1 %659 }
 0x3b7   :  { %2304 = vmatmul.mubr.msk.f32.vlgmr.msra.gmra.mrb[6].mxu1 %vm3823_vm8, %v3172_v36 }
 0x3b8   :  { %2456 = vmatpush3.bf16.msra.mxu1 %v3113_v59  ;;  %2325 = vmatprep.mubr.msk.f32.mxu1 %vm3820_vm7, %v3841_v43 }
 0x3b9   :  { %2457 = vmatprep.subr.bf16.mxu1 %v3842_v44 }
 0x3bc   :  { %2459 = vmatpush3.bf16.msra.mxu1 %v3128_v49 }
 0x3bd   :  { %2466 = vmatprep.subr.bf16.mxu1 %v3842_v44 }
 0x48a   :  { %v729_v45 = vpop.f32.mrb[6].mxu1 }
 0x48b   :  { %v733_v50 = vadd.f32 %v729_v45, %v657_v51  ;;  %v2305_v47 = vpop.f32.mrb[7].mxu1 }
 0x48d   :  { %2567 = vtanh.f32 %v733_v50  ;;  %v2134_v52 = vmul.f32 -1.442695, %v733_v50 }
 0x48f   :  { %2569 = vpow2.f32 %v2134_v52 }
 0x497   :  { %v2568_v39 = vpop.eup %2567 }
 0x498   :  { %743 = vrot.lane.b32.xlu0 %v2568_v39, %s2761_s3 }
 0x499   :  { %v2570_v38 = vpop.eup %2569 }
 0x49a   :  { %v737_v37 = vadd.f32 1.0, %v2570_v38 }
 0x49c   :  { %2571 = vrcp.f32 %v737_v37 }
 0x4a6   :  { %v2572_v57 = vpop.eup %2571 }
 0x4a7   :  { %v741_v54 = vmul.f32 %v2572_v57, %v650_v60 }
 0x50a   :  { %v744_v58 = vpop.permute.xlu0 %743 }
 0x50b   :  { %v746_v48 = vmul.f32 %v2572_v57, %v744_v58 }
 0x50d   :  { %748 = vrot.lane.b32.xlu1 %v746_v48, %s2761_s3 }
 0x57f   :  { %v749_v56 = vpop.permute.xlu1 %748 }
 0x580   :  { %v751_v53 = vadd.f32 %v749_v56, %v741_v54 }
 0x582   :  { %2573 = vtanh.f32 %v751_v53 }
 0x58c   :  { %v2574_v51 = vpop.eup %2573 }
 0x58d   :  { %754 = vrot.lane.b32.xlu0 %v2574_v51, %s2761_s3 }
 0x5ff   :  { %v755_v42 = vpop.permute.xlu0 %754 }
 0x600   :  { %v757_v62 = vmul.f32 %v2572_v57, %v755_v42 }
 0x602   :  { %760 = vrot.lane.b32.xlu1 %v757_v62, %s2762_s16 }
 0x674   :  { %v3186_v63 = vpop.permute.xlu1 %760 }
 0x675   :  { %2315 = vmatmul.mubr.msk.f32.vlgmr.msra.gmra.mrb[8].mxu0 %vm3823_vm8, %v3186_v63 }
 0x676   :  { %2462 = vmatpush3.bf16.msra.mxu0 %v3113_v59  ;;  %2336 = vmatprep.mubr.msk.f32.mxu0 %vm3820_vm7, %v3841_v43 }
 0x677   :  { %2463 = vmatprep.subr.bf16.mxu0 %v3842_v44 }
 0x67a   :  { %2465 = vmatpush3.bf16.msra.mxu0 %v3128_v49 }
 0x67b   :  { %2472 = vmatprep.subr.bf16.mxu0 %v3842_v44 }
 0x748   :  { %v830_v60 = vpop.f32.mrb[8].mxu0 }
 0x749   :  { %v834_v45 = vadd.f32 %v830_v60, %v3162_v41  ;;  %v2316_v50 = vpop.f32.mrb[9].mxu0 }
 0x74b   :  { %2575 = vtanh.f32 %v834_v45  ;;  %v2136_v39 = vmul.f32 -1.442695, %v834_v45 }
 0x74d   :  { %2577 = vpow2.f32 %v2136_v39 }
 0x755   :  { %v2576_v47 = vpop.eup %2575 }
 0x756   :  { %844 = vrot.lane.b32.xlu0 %v2576_v47, %s2761_s3 }
 0x757   :  { %v2578_v52 = vpop.eup %2577 }
 0x758   :  { %v838_v38 = vadd.f32 1.0, %v2578_v52 }
 0x75a   :  { %2579 = vrcp.f32 %v838_v38 }
 0x764   :  { %v2580_v37 = vpop.eup %2579 }
 0x765   :  { %v842_v48 = vmul.f32 %v2580_v37, %v751_v53 }
 0x7c8   :  { %v845_v57 = vpop.permute.xlu0 %844 }
 0x7c9   :  { %v847_v58 = vmul.f32 %v2580_v37, %v845_v57 }
 0x7cb   :  { %849 = vrot.lane.b32.xlu1 %v847_v58, %s2761_s3 }
 0x83d   :  { %v850_v54 = vpop.permute.xlu1 %849 }
 0x83e   :  { %v852_v56 = vadd.f32 %v850_v54, %v842_v48 }
 0x840   :  { %2581 = vtanh.f32 %v852_v56 }
 0x84a   :  { %v2582_v41 = vpop.eup %2581 }
 0x84b   :  { %855 = vrot.lane.b32.xlu0 %v2582_v41, %s2761_s3 }
 0x8bd   :  { %v856_v51 = vpop.permute.xlu0 %855 }
 0x8be   :  { %v858_v42 = vmul.f32 %v2580_v37, %v856_v51 }
 0x8c0   :  { %861 = vrot.lane.b32.xlu1 %v858_v42, %s2762_s16 }
 0x932   :  { %v3200_v62 = vpop.permute.xlu1 %861 }
 0x933   :  { %2326 = vmatmul.mubr.msk.f32.vlgmr.msra.gmra.mrb[8].mxu1 %vm3823_vm8, %v3200_v62 }
 0x934   :  { %2468 = vmatpush3.bf16.msra.mxu1 %v3113_v59  ;;  %2347 = vmatprep.mubr.msk.f32.mxu1 %vm3820_vm7, %v3841_v43 }
 0x935   :  { %2469 = vmatprep.subr.bf16.mxu1 %v3842_v44 }
 0x938   :  { %2471 = vmatpush3.bf16.msra.mxu1 %v3128_v49 }
 0xa06   :  { %v931_v53 = vpop.f32.mrb[8].mxu1 }
 0xa07   :  { %v935_v60 = vadd.f32 %v931_v53, %v3160_v61  ;;  %v2327_v45 = vpop.f32.mrb[9].mxu1 }
 0xa09   :  { %2583 = vtanh.f32 %v935_v60  ;;  %v2138_v47 = vmul.f32 -1.442695, %v935_v60 }
 0xa0b   :  { %2585 = vpow2.f32 %v2138_v47 }
 0xa13   :  { %v2584_v50 = vpop.eup %2583 }
 0xa14   :  { %945 = vrot.lane.b32.xlu0 %v2584_v50, %s2761_s3 }
 0xa15   :  { %v2586_v39 = vpop.eup %2585 }
 0xa16   :  { %v939_v52 = vadd.f32 1.0, %v2586_v39 }
 0xa18   :  { %2587 = vrcp.f32 %v939_v52 }
 0xa22   :  { %v2588_v59 = vpop.eup %2587 }
 0xa23   :  { %v943_v57 = vmul.f32 %v2588_v59, %v852_v56 }
 0xa86   :  { %v946_v38 = vpop.permute.xlu0 %945 }
 0xa87   :  { %v948_v37 = vmul.f32 %v2588_v59, %v946_v38 }
 0xa89   :  { %950 = vrot.lane.b32.xlu1 %v948_v37, %s2761_s3 }
 0xafb   :  { %v951_v49 = vpop.permute.xlu1 %950 }
 0xafc   :  { %v953_v58 = vadd.f32 %v951_v49, %v943_v57 }
 0xafe   :  { %2589 = vtanh.f32 %v953_v58 }
 0xb08   :  { %v2590_v61 = vpop.eup %2589 }
 0xb09   :  { %956 = vrot.lane.b32.xlu0 %v2590_v61, %s2761_s3 }
 0xb7b   :  { %v957_v48 = vpop.permute.xlu0 %956 }
 0xb7c   :  { %v959_v54 = vmul.f32 %v2588_v59, %v957_v48 }
 0xb7e   :  { %962 = vrot.lane.b32.xlu1 %v959_v54, %s2762_s16 }
 0xbf0   :  { %v963_v41 = vpop.permute.xlu1 %962 }
 0xbf1   :  { %2337 = vmatmul.mubr.msk.f32.vlgmr.msra.gmra.mrb[10].mxu0 %vm3823_vm8, %v963_v41 }
 0xcc4   :  { %v1032_v51 = vpop.f32.mrb[10].mxu0 }
 0xcc5   :  { %v1036_v42 = vadd.f32 %v1032_v51, %v3166_v40  ;;  %v2338_v53 = vpop.f32.mrb[11].mxu0 }
 0xcc7   :  { %2591 = vtanh.f32 %v1036_v42  ;;  %v2140_v56 = vmul.f32 -1.442695, %v1036_v42 }
 0xcc9   :  { %2593 = vpow2.f32 %v2140_v56 }
 0xcd1   :  { %v2592_v60 = vpop.eup %2591 }
 0xcd2   :  { %1046 = vrot.lane.b32.xlu0 %v2592_v60, %s2761_s3 }
 0xcd3   :  { %v2594_v45 = vpop.eup %2593 }
 0xcd4   :  { %v1040_v50 = vadd.f32 1.0, %v2594_v45 }
 0xcd6   :  { %2595 = vrcp.f32 %v1040_v50 }
 0xce0   :  { %v2596_v47 = vpop.eup %2595 }
 0xce1   :  { %v1044_v59 = vmul.f32 %v2596_v47, %v953_v58 }
 0xd44   :  { %v1047_v39 = vpop.permute.xlu0 %1046 }
 0xd45   :  { %v1049_v52 = vmul.f32 %v2596_v47, %v1047_v39 }
 0xd47   :  { %1051 = vrot.lane.b32.xlu1 %v1049_v52, %s2761_s3 }
 0xdb9   :  { %v1052_v38 = vpop.permute.xlu1 %1051 }
 0xdba   :  { %v1054_v37 = vadd.f32 %v1052_v38, %v1044_v59 }
 0xdbc   :  { %2597 = vtanh.f32 %v1054_v37 }
 0xdc6   :  { %v2598_v40 = vpop.eup %2597 }
 0xdc7   :  { %1057 = vrot.lane.b32.xlu0 %v2598_v40, %s2761_s3  ;;  %v1351_v40 = vsel %vm1189_vm9, %v3200_v62, %v963_v41 }
 0xe39   :  { %v1058_v57 = vpop.permute.xlu0 %1057 }
 0xe3a   :  { %v1060_v49 = vmul.f32 %v2596_v47, %v1058_v57  ;;  %v1426_v57 = vsel %vm1189_vm9, %v963_v41, %v3200_v62 }
 0xe3c   :  { %1063 = vrot.lane.b32.xlu1 %v1060_v49, %s2762_s16  ;;  %v1353_v49 = vrot.slane %v1351_v40, 1 }
 0xeae   :  { %v1064_v61 = vpop.permute.xlu1 %1063 }
 0xeaf   :  { %2348 = vmatmul.mubr.msk.f32.vlgmr.msra.gmra.mrb[10].mxu1 %vm3823_vm8, %v1064_v61 }
 0xf82   :  { %v1133_v48 = vpop.f32.mrb[10].mxu1 }
 0xf83   :  { %v1137_v54 = vadd.f32 %v1133_v48, %v3164_v55  ;;  %v2349_v51 = vpop.f32.mrb[11].mxu1  ;;  %v1355_v48 = vrot.slane %v1351_v40, 7 }
 0xf85   :  { %2599 = vtanh.f32 %v1137_v54  ;;  %v2142_v58 = vmul.f32 -1.442695, %v1137_v54  ;;  %v1430_v54 = vrot.slane %v1426_v57, 7  ;;  %v1357_v51 = vsel %vm1196_vm10, %v1353_v49, %v1355_v48 }
 0xf87   :  { %2601 = vpow2.f32 %v2142_v58  ;;  %v1358_v58 = vsel %vm1198_vm11, %v1357_v51, %v1353_v49 }
 0xf88   :  { %v1359_v62 = vsel %vm3824_vm12, %v1358_v58, %v1355_v48 }
 0xf8f   :  { %v2600_v42 = vpop.eup %2599 }
 0xf90   :  { %1147 = vrot.lane.b32.xlu0 %v2600_v42, %s2761_s3 }
 0xf91   :  { %v2602_v53 = vpop.eup %2601 }
 0xf92   :  { %v1141_v60 = vadd.f32 1.0, %v2602_v53 }
 0xf94   :  { %2603 = vrcp.f32 %v1141_v60  ;;  %v3236_v60 = vsel %vm1189_vm9, %v3186_v63, %v1064_v61 }
 0xf9e   :  { %v2604_v56 = vpop.eup %2603 }
 0xf9f   :  { %v1145_v47 = vmul.f32 %v2604_v56, %v1054_v37  ;;  %v1428_v37 = vrot.slane %v1426_v57, 1 }
 0xfa1   :  { %v1432_v42 = vsel %vm1196_vm10, %v1428_v37, %v1430_v54 }
 0xfa2   :  { %v1433_v53 = vsel %vm1198_vm11, %v1432_v42, %v1428_v37 }
 0xfa3   :  { %v1434_v41 = vsel %vm3824_vm12, %v1433_v53, %v1430_v54 }
0x1002   :  { %v1148_v45 = vpop.permute.xlu0 %1147 }
0x1003   :  { %v1150_v50 = vmul.f32 %v2604_v56, %v1148_v45  ;;  %v1276_v45 = vrot.slane %v3236_v60, 1 }
0x1005   :  { %1152 = vrot.lane.b32.xlu1 %v1150_v50, %s2761_s3  ;;  %v1278_v50 = vrot.slane %v3236_v60, 7 }
0x1077   :  { %v1153_v39 = vpop.permute.xlu1 %1152 }
0x1078   :  { %v1155_v52 = vadd.f32 %v1153_v39, %v1145_v47  ;;  %v1360_v47 = vsel %vm1202_vm13, %v1359_v62, %v1353_v49  ;;  %v1435_v39 = vsel %vm1202_vm13, %v1434_v41, %v1428_v37 }
0x1079   :  { %v1436_v51 = vsel %vm1204_vm14, %v1435_v39, %v1430_v54 }
0x107a   :  { %2605 = vtanh.f32 %v1155_v52 }
0x1084   :  { %v2606_v55 = vpop.eup %2605 }
0x1085   :  { %1158 = vrot.lane.b32.xlu0 %v2606_v55, %s2761_s3 }
0x10f7   :  { %v1159_v59 = vpop.permute.xlu0 %1158 }
0x10f8   :  { %v1161_v38 = vmul.f32 %v2604_v56, %v1159_v59  ;;  %v3242_v56 = vsel %vm1189_vm9, %v1064_v61, %v3186_v63  ;;  %v1164_v59 = vand.u32 1, %v3093_v46  ;;  %v1361_v63 = vsel %vm1204_vm14, %v1360_v47, %v1355_v48 }
0x10f9   :  { %v1503_v52 = vrot.slane %v3242_v56, 1  ;;  %v1505_v55 = vrot.slane %v3242_v56, 7  ;;  %v1280_v61 = vsel %vm1196_vm10, %v1276_v45, %v1278_v50  ;;  %v1362_v58 = vsel %vm1206_vm15, %v1361_v63, %v1353_v49 }
0x10fa   :  { %1186 = vrot.lane.b32.xlu1 %v1161_v38, %s2762_s16  ;;  %v1166_v38 = vand.u32 2, %v3093_v46  ;;  %v1281_v53 = vsel %vm1198_vm11, %v1280_v61, %v1276_v45  ;;  %vm3258_vm2 = vcmp.eq.s32.totalorder %v1164_v59, 0  ;;  %v1437_v47 = vsel %vm1206_vm15, %v1436_v51, %v1428_v37 }
0x10fb   :  { %v1507_v42 = vsel %vm1196_vm10, %v1503_v52, %v1505_v55  ;;  %v1363_v39 = vsel %vm1208_vm1, %v1362_v58, %v1355_v48  ;;  %v1282_v34 = vsel %vm3824_vm12, %v1281_v53, %v1278_v50  ;;  %v1438_v49 = vsel %vm1208_vm1, %v1437_v47, %v1430_v54 }
0x10fc   :  { %vm3262_vm3 = vcmp.eq.s32.totalorder %v1166_v38, 0  ;;  %v1508_v35 = vsel %vm1198_vm11, %v1507_v42, %v1503_v52  ;;  %v1364_v38 = vmin.f32 %v1351_v40, %v1363_v39  ;;  %v1365_v63 = vmax.f32 %v1351_v40, %v1363_v39 }
0x10fd   :  { %vm1168_vm4 = vmxor %vm3258_vm2, %vm3262_vm3  ;;  %v1509_v59 = vsel %vm3824_vm12, %v1508_v35, %v1505_v55  ;;  %v1283_v61 = vsel %vm1202_vm13, %v1282_v34, %v1276_v45  ;;  %v1439_v48 = vmin.f32 %v1426_v57, %v1438_v49  ;;  %v1440_v51 = vmax.f32 %v1426_v57, %v1438_v49 }
0x10fe   :  { %vm3278_vm6 = vmxor %vm1168_vm4, %vm2763_vm5  ;;  %v1510_v42 = vsel %vm1202_vm13, %v1509_v59, %v1503_v52  ;;  %v1284_v58 = vsel %vm1204_vm14, %v1283_v61, %v1278_v50  ;;  %v1170_v59 = vand.u32 4, %v3093_v46 }
0x10ff   :  { %v1366_v54 = vsel %vm3278_vm6, %v1364_v38, %v1365_v63  ;;  %v1441_v35 = vsel %vm3278_vm6, %v1439_v48, %v1440_v51  ;;  %v1511_v34 = vsel %vm1204_vm14, %v1510_v42, %v1505_v55  ;;  %v1285_v40 = vsel %vm1206_vm15, %v1284_v58, %v1276_v45 }
0x1100   :  { %v1368_v53 = vrot.slane %v1366_v54, 2  ;;  %v1370_v47 = vrot.slane %v1366_v54, 6  ;;  %v1443_v39 = vrot.slane %v1441_v35, 2  ;;  %v1445_v33 = vrot.slane %v1441_v35, 6 }
0x1101   :  { %v1512_v57 = vsel %vm1206_vm15, %v1511_v34, %v1503_v52  ;;  %v1286_v49 = vsel %vm1208_vm1, %v1285_v40, %v1278_v50  ;;  %vm3301_vm4 = vcmp.eq.s32.totalorder %v1170_v59, 0 }
0x1102   :  { %v1372_v61 = vsel %vm1198_vm11, %v1368_v53, %v1370_v47  ;;  %v1513_v38 = vsel %vm1208_vm1, %v1512_v57, %v1505_v55  ;;  %v1447_v63 = vsel %vm1198_vm11, %v1443_v39, %v1445_v33  ;;  %v1287_v48 = vmin.f32 %v3236_v60, %v1286_v49  ;;  %vm1172_vm7 = vmxor %vm3262_vm3, %vm3301_vm4 }
0x1103   :  { %v1288_v45 = vmax.f32 %v3236_v60, %v1286_v49  ;;  %v1373_v51 = vsel %vm1202_vm13, %v1372_v61, %v1368_v53  ;;  %v1514_v42 = vmin.f32 %v3242_v56, %v1513_v38  ;;  %v1515_v52 = vmax.f32 %v3242_v56, %v1513_v38  ;;  %vm3317_vm0 = vmxor %vm1172_vm7, %vm2763_vm5 }
0x1104   :  { %v1448_v46 = vsel %vm1202_vm13, %v1447_v63, %v1443_v39  ;;  %v1374_v58 = vsel %vm1206_vm15, %v1373_v51, %v1370_v47  ;;  %vm1174_vm7 = vmxor %vm3258_vm2, %vm3301_vm4 }
0x1105   :  { %v1289_v55 = vsel %vm3278_vm6, %v1287_v48, %v1288_v45  ;;  %v1449_v60 = vsel %vm1206_vm15, %v1448_v46, %v1445_v33  ;;  %v1516_v56 = vsel %vm3278_vm6, %v1514_v42, %v1515_v52  ;;  %v1375_v53 = vmin.f32 %v1366_v54, %v1374_v58  ;;  %vm3361_vm8 = vmxor %vm1174_vm7, %vm2763_vm5 }
0x1106   :  { %v1291_v34 = vrot.slane %v1289_v55, 2  ;;  %v1293_v40 = vrot.slane %v1289_v55, 6  ;;  %v1376_v57 = vmax.f32 %v1366_v54, %v1374_v58  ;;  %v1450_v47 = vmin.f32 %v1441_v35, %v1449_v60  ;;  %vm1178_vm7 = vmxor %vm3301_vm4, %vm2763_vm5 }
0x1107   :  { %v1451_v49 = vmax.f32 %v1441_v35, %v1449_v60  ;;  %v1518_v59 = vrot.slane %v1516_v56, 2  ;;  %v1520_v61 = vrot.slane %v1516_v56, 6  ;;  %vm1180_vm4 = vmxor %vm3262_vm3, %vm2763_vm5  ;;  %vm3859_vm3 = vcmask 1042432  }
0x1108   :  { %v1295_v38 = vsel %vm1198_vm11, %v1291_v34, %v1293_v40  ;;  %v1377_v33 = vsel %vm3317_vm0, %v1375_v53, %v1376_v57 }
0x1109   :  { %v1452_v63 = vsel %vm3317_vm0, %v1450_v47, %v1451_v49  ;;  %v1522_v48 = vsel %vm1198_vm11, %v1518_v59, %v1520_v61  ;;  %v1296_v54 = vsel %vm1202_vm13, %v1295_v38, %v1291_v34  ;;  %v1379_v45 = vrot.slane %v1377_v33, 1 }
0x110a   :  { %v1381_v51 = vrot.slane %v1377_v33, 7  ;;  %v1454_v42 = vrot.slane %v1452_v63, 1  ;;  %v1456_v52 = vrot.slane %v1452_v63, 7  ;;  %v1523_v35 = vsel %vm1202_vm13, %v1522_v48, %v1518_v59 }
0x110b   :  { %v1297_v46 = vsel %vm1206_vm15, %v1296_v54, %v1293_v40  ;;  %v1524_v60 = vsel %vm1206_vm15, %v1523_v35, %v1520_v61 }
0x110c   :  { %v1383_v58 = vsel %vm1196_vm10, %v1379_v45, %v1381_v51  ;;  %v1458_v53 = vsel %vm1196_vm10, %v1454_v42, %v1456_v52  ;;  %v1298_v57 = vmin.f32 %v1289_v55, %v1297_v46  ;;  %v1299_v47 = vmax.f32 %v1289_v55, %v1297_v46 }
0x110d   :  { %v1384_v49 = vsel %vm1198_vm11, %v1383_v58, %v1379_v45  ;;  %v1525_v32 = vmin.f32 %v1516_v56, %v1524_v60  ;;  %v1526_v34 = vmax.f32 %v1516_v56, %v1524_v60  ;;  %v1459_v38 = vsel %vm1198_vm11, %v1458_v53, %v1454_v42 }
0x110e   :  { %v1300_v31 = vsel %vm3317_vm0, %v1298_v57, %v1299_v47  ;;  %v1385_v59 = vsel %vm3824_vm12, %v1384_v49, %v1381_v51  ;;  %v1460_v40 = vsel %vm3824_vm12, %v1459_v38, %v1456_v52 }
0x110f   :  { %v1527_v61 = vsel %vm3317_vm0, %v1525_v32, %v1526_v34  ;;  %v1302_v48 = vrot.slane %v1300_v31, 1  ;;  %v1304_v54 = vrot.slane %v1300_v31, 7  ;;  %v1386_v55 = vsel %vm1202_vm13, %v1385_v59, %v1379_v45 }
0x1110   :  { %v1461_v35 = vsel %vm1202_vm13, %v1460_v40, %v1454_v42  ;;  %v1529_v46 = vrot.slane %v1527_v61, 1  ;;  %v1531_v56 = vrot.slane %v1527_v61, 7  ;;  %v1387_v58 = vsel %vm1204_vm14, %v1386_v55, %v1381_v51 }
0x1111   :  { %v1306_v60 = vsel %vm1196_vm10, %v1302_v48, %v1304_v54  ;;  %v1462_v53 = vsel %vm1204_vm14, %v1461_v35, %v1456_v52  ;;  %v1388_v47 = vsel %vm1206_vm15, %v1387_v58, %v1379_v45 }
0x1112   :  { %v1533_v57 = vsel %vm1196_vm10, %v1529_v46, %v1531_v56  ;;  %v1307_v32 = vsel %vm1198_vm11, %v1306_v60, %v1302_v48  ;;  %v1463_v49 = vsel %vm1206_vm15, %v1462_v53, %v1454_v42  ;;  %v1389_v38 = vsel %vm1208_vm1, %v1388_v47, %v1381_v51 }
0x1113   :  { %v1534_v34 = vsel %vm1198_vm11, %v1533_v57, %v1529_v46  ;;  %v1308_v59 = vsel %vm3824_vm12, %v1307_v32, %v1304_v54  ;;  %v1464_v40 = vsel %vm1208_vm1, %v1463_v49, %v1456_v52  ;;  %v1390_v45 = vmin.f32 %v1377_v33, %v1389_v38 }
0x1114   :  { %v1535_v55 = vsel %vm3824_vm12, %v1534_v34, %v1531_v56  ;;  %v1391_v35 = vmax.f32 %v1377_v33, %v1389_v38  ;;  %v1309_v58 = vsel %vm1202_vm13, %v1308_v59, %v1302_v48  ;;  %v1465_v51 = vmin.f32 %v1452_v63, %v1464_v40  ;;  %vm3380_vm12 = vmxor %vm1178_vm7, %vm2763_vm5 }
0x1115   :  { %v1466_v60 = vmax.f32 %v1452_v63, %v1464_v40  ;;  %v1536_v53 = vsel %vm1202_vm13, %v1535_v55, %v1529_v46  ;;  %v1310_v57 = vsel %vm1204_vm14, %v1309_v58, %v1304_v54  ;;  %vm3860_vm7 = vmmov %vm3859_vm3 }
0x1116   :  { %v1392_v52 = vsel %vm3361_vm8, %v1390_v45, %v1391_v35  ;;  %v1537_v33 = vsel %vm1204_vm14, %v1536_v53, %v1531_v56  ;;  %v1311_v32 = vsel %vm1206_vm15, %v1310_v57, %v1302_v48 }
0x1117   :  { %v1467_v47 = vsel %vm3361_vm8, %v1465_v51, %v1466_v60  ;;  %v1394_v49 = vrot.slane %v1392_v52, 4  ;;  %v1538_v38 = vsel %vm1206_vm15, %v1537_v33, %v1529_v46  ;;  %v1312_v63 = vsel %vm1208_vm1, %v1311_v32, %v1304_v54 }
0x1118   :  { %v1469_v34 = vrot.slane %v1467_v47, 4  ;;  %v1539_v55 = vsel %vm1208_vm1, %v1538_v38, %v1531_v56  ;;  %v1313_v58 = vmin.f32 %v1300_v31, %v1312_v63  ;;  %v1314_v51 = vmax.f32 %v1300_v31, %v1312_v63 }
0x1119   :  { %v1397_v59 = vmin.f32 %v1392_v52, %v1394_v49  ;;  %v1398_v40 = vmax.f32 %v1392_v52, %v1394_v49  ;;  %v1540_v46 = vmin.f32 %v1527_v61, %v1539_v55  ;;  %v1541_v60 = vmax.f32 %v1527_v61, %v1539_v55 }
0x111a   :  { %v1472_v48 = vmin.f32 %v1467_v47, %v1469_v34  ;;  %v1473_v35 = vmax.f32 %v1467_v47, %v1469_v34  ;;  %v1315_v56 = vsel %vm3361_vm8, %v1313_v58, %v1314_v51 }
0x111b   :  { %v1399_v50 = vsel %vm3380_vm12, %v1397_v59, %v1398_v40  ;;  %v1542_v57 = vsel %vm3361_vm8, %v1540_v46, %v1541_v60  ;;  %v1317_v47 = vrot.slane %v1315_v56, 4 }
0x111c   :  { %v1474_v54 = vsel %vm3380_vm12, %v1472_v48, %v1473_v35  ;;  %v1401_v53 = vrot.slane %v1399_v50, 2  ;;  %v1403_v52 = vrot.slane %v1399_v50, 6  ;;  %v1544_v31 = vrot.slane %v1542_v57, 4 }
0x111d   :  { %v1476_v33 = vrot.slane %v1474_v54, 2  ;;  %v1478_v32 = vrot.slane %v1474_v54, 6  ;;  %v1320_v49 = vmin.f32 %v1315_v56, %v1317_v47  ;;  %v1321_v61 = vmax.f32 %v1315_v56, %v1317_v47 }
0x111e   :  { %v1405_v34 = vsel %vm1198_vm11, %v1401_v53, %v1403_v52  ;;  %v1547_v63 = vmin.f32 %v1542_v57, %v1544_v31  ;;  %v1548_v59 = vmax.f32 %v1542_v57, %v1544_v31 }
0x111f   :  { %v1480_v38 = vsel %vm1198_vm11, %v1476_v33, %v1478_v32  ;;  %v1406_v40 = vsel %vm1202_vm13, %v1405_v34, %v1401_v53  ;;  %v3398_v48 = vsel %vm3380_vm12, %v1320_v49, %v1321_v61 }
0x1120   :  { %v1481_v55 = vsel %vm1202_vm13, %v1480_v38, %v1476_v33  ;;  %v1407_v58 = vsel %vm1206_vm15, %v1406_v40, %v1403_v52  ;;  %v3404_v46 = vsel %vm3380_vm12, %v1547_v63, %v1548_v59  ;;  %v1324_v60 = vrot.slane %v3398_v48, 2 }
0x1121   :  { %v1482_v51 = vsel %vm1206_vm15, %v1481_v55, %v1478_v32  ;;  %v1326_v56 = vrot.slane %v3398_v48, 6  ;;  %v1551_v31 = vrot.slane %v3404_v46, 2  ;;  %v1553_v49 = vrot.slane %v3404_v46, 6 }
0x1122   :  { %v1408_v38 = vmin.f32 %v1399_v50, %v1407_v58  ;;  %v1409_v63 = vmax.f32 %v1399_v50, %v1407_v58  ;;  %v1483_v40 = vmin.f32 %v1474_v54, %v1482_v51  ;;  %v1484_v55 = vmax.f32 %v1474_v54, %v1482_v51 }
0x1123   :  { %v1328_v29 = vsel %vm1198_vm11, %v1324_v60, %v1326_v56  ;;  %v1555_v58 = vsel %vm1198_vm11, %v1551_v31, %v1553_v49 }
0x116c   :  { %v1187_v35 = vpop.permute.xlu1 %1186 }
0x116d   :  { %v1190_v53 = vsel %vm1189_vm9, %v3172_v36, %v1187_v35  ;;  %v1576_v57 = vsel %vm1189_vm9, %v1187_v35, %v3172_v36  ;;  %vm3420_vm9 = vmxor %vm1180_vm4, %vm2763_vm5 }
0x116e   :  { %v1192_v52 = vrot.slane %v1190_v53, 1  ;;  %v1194_v33 = vrot.slane %v1190_v53, 7  ;;  %v1578_v47 = vrot.slane %v1576_v57, 1  ;;  %v1580_v32 = vrot.slane %v1576_v57, 7 }
0x1170   :  { %v1197_v61 = vsel %vm1196_vm10, %v1192_v52, %v1194_v33  ;;  %v1582_v34 = vsel %vm1196_vm10, %v1578_v47, %v1580_v32 }
0x1171   :  { %v1199_v41 = vsel %vm1198_vm11, %v1197_v61, %v1192_v52  ;;  %v1583_v59 = vsel %vm1198_vm11, %v1582_v34, %v1578_v47  ;;  %v3436_v34 = vsel %vm3420_vm9, %v1408_v38, %v1409_v63 }
0x1172   :  { %v1201_v35 = vsel %vm3859_vm3, %v1199_v41, %v1194_v33  ;;  %v1584_v30 = vsel %vm3860_vm7, %v1583_v59, %v1580_v32  ;;  %v1329_v41 = vsel %vm1202_vm13, %v1328_v29, %v1324_v60  ;;  %v3443_v59 = vsel %vm3420_vm9, %v1483_v40, %v1484_v55 }
0x1173   :  { %v1203_v28 = vsel %vm1202_vm13, %v1201_v35, %v1192_v52  ;;  %v1585_v50 = vsel %vm1202_vm13, %v1584_v30, %v1578_v47  ;;  %v1556_v35 = vsel %vm1202_vm13, %v1555_v58, %v1551_v31  ;;  %v3453_v29 = vrot.slane %v3436_v34, 7 }
0x1174   :  { %v1205_v27 = vsel %vm1204_vm14, %v1203_v28, %v1194_v33  ;;  %v1586_v61 = vsel %vm1204_vm14, %v1585_v50, %v1580_v32  ;;  %v3456_v60 = vrot.slane %v3443_v59, 1 }
0x1175   :  { %v1207_v54 = vsel %vm1206_vm15, %v1205_v27, %v1192_v52  ;;  %v1587_v51 = vsel %vm1206_vm15, %v1586_v61, %v1578_v47  ;;  %v1330_v27 = vsel %vm1206_vm15, %v1329_v41, %v1326_v56  ;;  %v3450_v52 = vrot.slane %v3436_v34, 1 }
0x1176   :  { %v1209_v30 = vsel %vm1208_vm1, %v1207_v54, %v1194_v33  ;;  %v1588_v28 = vsel %vm1208_vm1, %v1587_v51, %v1580_v32  ;;  %v1557_v56 = vsel %vm1206_vm15, %v1556_v35, %v1553_v49  ;;  %v1331_v55 = vmin.f32 %v3398_v48, %v1330_v27 }
0x1177   :  { %v1210_v50 = vmin.f32 %v1190_v53, %v1209_v30  ;;  %v1211_v26 = vmax.f32 %v1190_v53, %v1209_v30  ;;  %v1589_v38 = vmin.f32 %v1576_v57, %v1588_v28  ;;  %v1590_v63 = vmax.f32 %v1576_v57, %v1588_v28 }
0x1178   :  { %v3463_v53 = vrot.slane %v3443_v59, 7  ;;  %v1332_v58 = vmax.f32 %v3398_v48, %v1330_v27  ;;  %v1558_v37 = vmin.f32 %v3404_v46, %v1557_v56  ;;  %v1559_v54 = vmax.f32 %v3404_v46, %v1557_v56 }
0x1179   :  { %v1212_v33 = vsel %vm3278_vm6, %v1210_v50, %v1211_v26  ;;  %v1591_v47 = vsel %vm3278_vm6, %v1589_v38, %v1590_v63  ;;  %v1416_v48 = vsel %vm1196_vm10, %v3450_v52, %v3453_v29 }
0x117a   :  { %v1214_v57 = vrot.slane %v1212_v33, 2  ;;  %v1216_v32 = vrot.slane %v1212_v33, 6  ;;  %v1593_v31 = vrot.slane %v1591_v47, 2  ;;  %v1595_v40 = vrot.slane %v1591_v47, 6 }
0x117b   :  { %v1491_v28 = vsel %vm1196_vm10, %v3456_v60, %v3463_v53  ;;  %v3484_v63 = vsel %vm3420_vm9, %v1331_v55, %v1332_v58  ;;  %v3488_v27 = vsel %vm3420_vm9, %v1558_v37, %v1559_v54 }
0x117c   :  { %v1218_v61 = vsel %vm1198_vm11, %v1214_v57, %v1216_v32  ;;  %v1597_v26 = vsel %vm1198_vm11, %v1593_v31, %v1595_v40  ;;  %v3499_v58 = vrot.slane %v3484_v63, 1  ;;  %v3508_v39 = vrot.slane %v3488_v27, 7 }
0x117d   :  { %v1219_v51 = vsel %vm1202_vm13, %v1218_v61, %v1214_v57  ;;  %v1598_v49 = vsel %vm1202_vm13, %v1597_v26, %v1593_v31  ;;  %v3502_v61 = vrot.slane %v3484_v63, 7  ;;  %v3505_v26 = vrot.slane %v3488_v27, 1 }
0x117e   :  { %v1220_v41 = vsel %vm1206_vm15, %v1219_v51, %v1216_v32  ;;  %v1599_v30 = vsel %vm1206_vm15, %v1598_v49, %v1595_v40  ;;  %v1417_v32 = vsel %vm1198_vm11, %v1416_v48, %v3450_v52 }
0x117f   :  { %v1221_v35 = vmin.f32 %v1212_v33, %v1220_v41  ;;  %v1222_v50 = vmax.f32 %v1212_v33, %v1220_v41  ;;  %v1600_v38 = vmin.f32 %v1591_v47, %v1599_v30  ;;  %v1601_v46 = vmax.f32 %v1591_v47, %v1599_v30 }
0x1180   :  { %v1492_v33 = vsel %vm1198_vm11, %v1491_v28, %v3456_v60 }
0x1181   :  { %v1223_v56 = vsel %vm3317_vm0, %v1221_v35, %v1222_v50  ;;  %v1602_v57 = vsel %vm3317_vm0, %v1600_v38, %v1601_v46  ;;  %vm3861_vm0 = vmmov %vm3859_vm3  ;;  %v1339_v38 = vsel %vm1196_vm10, %v3499_v58, %v3502_v61  ;;  %v1566_v46 = vsel %vm1196_vm10, %v3505_v26, %v3508_v39 }
0x1182   :  { %v1225_v47 = vrot.slane %v1223_v56, 1  ;;  %v1227_v31 = vrot.slane %v1223_v56, 7  ;;  %v1604_v40 = vrot.slane %v1602_v57, 1  ;;  %v1606_v55 = vrot.slane %v1602_v57, 7  ;;  %vm3862_vm6 = vmmov %vm3861_vm0 }
0x1183   :  { %vm3863_vm4 = vmmov %vm3861_vm0  ;;  %v1340_v43 = vsel %vm1198_vm11, %v1339_v38, %v3499_v58 }
0x1184   :  { %v1229_v37 = vsel %vm1196_vm10, %v1225_v47, %v1227_v31  ;;  %v1608_v54 = vsel %vm1196_vm10, %v1604_v40, %v1606_v55  ;;  %v1418_v48 = vsel %vm3863_vm4, %v1417_v32, %v3453_v29  ;;  %vm3864_vm3 = vmmov %vm3861_vm0 }
0x1185   :  { %v1230_v51 = vsel %vm1198_vm11, %v1229_v37, %v1225_v47  ;;  %v1609_v49 = vsel %vm1198_vm11, %v1608_v54, %v1604_v40  ;;  %v1493_v28 = vsel %vm3864_vm3, %v1492_v33, %v3463_v53  ;;  %vm3865_vm7 = vmmov %vm3861_vm0 }
0x1186   :  { %v1231_v41 = vsel %vm3861_vm0, %v1230_v51, %v1227_v31  ;;  %v1610_v30 = vsel %vm3862_vm6, %v1609_v49, %v1606_v55  ;;  %v1419_v51 = vsel %vm1202_vm13, %v1418_v48, %v3450_v52  ;;  %v1494_v49 = vsel %vm1202_vm13, %v1493_v28, %v3456_v60  ;;  %vm3873_vm6 = vmmov %vm3861_vm0 }
0x1187   :  { %v1232_v35 = vsel %vm1202_vm13, %v1231_v41, %v1225_v47  ;;  %v1611_v50 = vsel %vm1202_vm13, %v1610_v30, %v1604_v40  ;;  %v1420_v48 = vsel %vm1204_vm14, %v1419_v51, %v3453_v29  ;;  %v1495_v28 = vsel %vm1204_vm14, %v1494_v49, %v3463_v53  ;;  %vm3874_vm4 = vmmov %vm3861_vm0 }
0x1188   :  { %v1233_v37 = vsel %vm1204_vm14, %v1232_v35, %v1227_v31  ;;  %v1612_v54 = vsel %vm1204_vm14, %v1611_v50, %v1606_v55  ;;  %v1567_v35 = vsel %vm1198_vm11, %v1566_v46, %v3505_v26  ;;  %v1341_v46 = vsel %vm3865_vm7, %v1340_v43, %v3502_v61  ;;  %vm3875_vm3 = vmmov %vm3861_vm0 }
0x1189   :  { %v1234_v32 = vsel %vm1206_vm15, %v1233_v37, %v1225_v47  ;;  %v1613_v33 = vsel %vm1206_vm15, %v1612_v54, %v1604_v40  ;;  %v1342_v42 = vsel %vm1202_vm13, %v1341_v46, %v3499_v58  ;;  %vm1769_vm7 = vcmask 785408  }
0x118a   :  { %v1235_v41 = vsel %vm1208_vm1, %v1234_v32, %v1227_v31  ;;  %v1614_v30 = vsel %vm1208_vm1, %v1613_v33, %v1606_v55  ;;  %v1496_v32 = vsel %vm1206_vm15, %v1495_v28, %v3456_v60 }
0x118b   :  { %v1236_v50 = vmin.f32 %v1223_v56, %v1235_v41  ;;  %v1237_v47 = vmax.f32 %v1223_v56, %v1235_v41  ;;  %v1615_v37 = vmin.f32 %v1602_v57, %v1614_v30  ;;  %v1616_v40 = vmax.f32 %v1602_v57, %v1614_v30 }
0x118c   :  { %v1568_v56 = vsel %vm3861_vm0, %v1567_v35, %v3508_v39  ;;  %v1421_v57 = vsel %vm1206_vm15, %v1420_v48, %v3450_v52  ;;  %v1497_v52 = vsel %vm1208_vm1, %v1496_v32, %v3463_v53  ;;  %v1343_v48 = vsel %vm1204_vm14, %v1342_v42, %v3502_v61 }
0x118d   :  { %v1238_v31 = vsel %vm3361_vm8, %v1236_v50, %v1237_v47  ;;  %v1617_v55 = vsel %vm3361_vm8, %v1615_v37, %v1616_v40  ;;  %v1569_v30 = vsel %vm1202_vm13, %v1568_v56, %v3505_v26  ;;  %v1422_v35 = vsel %vm1208_vm1, %v1421_v57, %v3453_v29  ;;  %vm1182_vm8 = vmxor %vm3258_vm2, %vm2763_vm5 }
0x118e   :  { %v1240_v38 = vrot.slane %v1238_v31, 4  ;;  %v1619_v54 = vrot.slane %v1617_v55, 4  ;;  %v1570_v28 = vsel %vm1204_vm14, %v1569_v30, %v3508_v39  ;;  %v1423_v29 = vmin.f32 %v3436_v34, %v1422_v35  ;;  %vm3868_vm2 = vmmov %vm3861_vm0 }
0x118f   :  { %v1344_v57 = vsel %vm1206_vm15, %v1343_v48, %v3499_v58 }
0x1190   :  { %v1243_v33 = vmin.f32 %v1238_v31, %v1240_v38  ;;  %v1244_v51 = vmax.f32 %v1238_v31, %v1240_v38  ;;  %v1622_v49 = vmin.f32 %v1617_v55, %v1619_v54  ;;  %v1623_v41 = vmax.f32 %v1617_v55, %v1619_v54 }
0x1191   :  { %v1424_v55 = vmax.f32 %v3436_v34, %v1422_v35  ;;  %v1498_v38 = vmin.f32 %v3443_v59, %v1497_v52  ;;  %v1499_v54 = vmax.f32 %v3443_v59, %v1497_v52  ;;  %v1571_v34 = vsel %vm1206_vm15, %v1570_v28, %v3505_v26 }
0x1192   :  { %v1245_v43 = vsel %vm3380_vm12, %v1243_v33, %v1244_v51  ;;  %v1624_v60 = vsel %vm3380_vm12, %v1622_v49, %v1623_v41  ;;  %vm3592_vm12 = vmxor %vm1182_vm8, %vm2763_vm5  ;;  %v1345_v58 = vsel %vm1208_vm1, %v1344_v57, %v3502_v61  ;;  %v1572_v26 = vsel %vm1208_vm1, %v1571_v34, %v3508_v39 }
0x1193   :  { %v1247_v50 = vrot.slane %v1245_v43, 2  ;;  %v1249_v47 = vrot.slane %v1245_v43, 6  ;;  %v1626_v37 = vrot.slane %v1624_v60, 2  ;;  %v1628_v40 = vrot.slane %v1624_v60, 6  ;;  %vm3869_vm5 = vmmov %vm3861_vm0 }
0x1194   :  { %v1347_v39 = vmax.f32 %v3484_v63, %v1345_v58  ;;  %v1574_v48 = vmax.f32 %v3488_v27, %v1572_v26 }
0x1195   :  { %v1251_v31 = vsel %vm1198_vm11, %v1247_v50, %v1249_v47  ;;  %v1630_v53 = vsel %vm1198_vm11, %v1626_v37, %v1628_v40 }
0x1196   :  { %v1252_v45 = vsel %vm1202_vm13, %v1251_v31, %v1247_v50  ;;  %v1631_v46 = vsel %vm1202_vm13, %v1630_v53, %v1626_v37  ;;  %v3610_v50 = vsel %vm3592_vm12, %v1498_v38, %v1499_v54 }
0x1197   :  { %v1253_v56 = vsel %vm1206_vm15, %v1252_v45, %v1249_v47  ;;  %v1632_v32 = vsel %vm1206_vm15, %v1631_v46, %v1628_v40  ;;  %v1346_v47 = vmin.f32 %v3484_v63, %v1345_v58  ;;  %v1573_v40 = vmin.f32 %v3488_v27, %v1572_v26 }
0x1198   :  { %v1254_v62 = vmin.f32 %v1245_v43, %v1253_v56  ;;  %v1255_v33 = vmax.f32 %v1245_v43, %v1253_v56  ;;  %v1633_v51 = vmin.f32 %v1624_v60, %v1632_v32  ;;  %v1634_v49 = vmax.f32 %v1624_v60, %v1632_v32 }
0x1199   :  { %v3606_v60 = vsel %vm3592_vm12, %v1423_v29, %v1424_v55  ;;  %v1697_v45 = vrot.slane %v3610_v50, 2  ;;  %v1680_v46 = vrot.slane %v3610_v50, 3  ;;  %v1740_v56 = vrot.slane %v3610_v50, 7 }
0x119a   :  { %v1256_v59 = vsel %vm3420_vm9, %v1254_v62, %v1255_v33  ;;  %v1635_v42 = vsel %vm3420_vm9, %v1633_v51, %v1634_v49  ;;  %v1695_v55 = vrot.slane %v3606_v60, 3  ;;  %v1678_v38 = vrot.slane %v3606_v60, 4  ;;  %vm3872_vm9 = vmmov %vm3861_vm0 }
0x119b   :  { %v1258_v30 = vrot.slane %v1256_v59, 1  ;;  %v1260_v43 = vrot.slane %v1256_v59, 7  ;;  %v1637_v35 = vrot.slane %v1635_v42, 1  ;;  %v1639_v52 = vrot.slane %v1635_v42, 7 }
0x119c   :  { %v1348_v34 = vsel %vm3592_vm12, %v1346_v47, %v1347_v39  ;;  %v3636_v32 = vsel %vm3592_vm12, %v1573_v40, %v1574_v48  ;;  %v1708_v49 = vrot.slane %v3606_v60, 6  ;;  %v1710_v58 = vrot.slane %v3610_v50, 5 }
0x119d   :  { %v1262_v61 = vsel %vm1196_vm10, %v1258_v30, %v1260_v43  ;;  %v1641_v36 = vsel %vm1196_vm10, %v1637_v35, %v1639_v52  ;;  %v1699_v47 = vrot.slane %v3636_v32, 1  ;;  %v1658_v39 = vrot.slane %v3606_v60, 5 }
0x119e   :  { %v1263_v37 = vsel %vm1198_vm11, %v1262_v61, %v1258_v30  ;;  %v1642_v28 = vsel %vm1198_vm11, %v1641_v36, %v1637_v35  ;;  %v1661_v40 = vrot.slane %v3610_v50, 4  ;;  %v1706_v48 = vrot.slane %v1348_v34, 7 }
0x119f   :  { %v1264_v31 = vsel %vm3868_vm2, %v1263_v37, %v1260_v43  ;;  %v1643_v29 = vsel %vm3869_vm5, %v1642_v28, %v1639_v52  ;;  %v1693_v37 = vrot.slane %v1348_v34, 4 }
0x11a0   :  { %v1265_v53 = vsel %vm1202_vm13, %v1264_v31, %v1258_v30  ;;  %v1644_v63 = vsel %vm1202_vm13, %v1643_v29, %v1637_v35  ;;  %v1738_v29 = vrot.slane %v1348_v34, 1 }
0x11a1   :  { %v1266_v54 = vsel %vm1204_vm14, %v1265_v53, %v1260_v43  ;;  %v1645_v27 = vsel %vm1204_vm14, %v1644_v63, %v1639_v52  ;;  %v1742_v63 = vrot.slane %v3636_v32, 6 }
0x11a2   :  { %v1267_v57 = vsel %vm1206_vm15, %v1266_v54, %v1258_v30  ;;  %v1646_v62 = vsel %vm1206_vm15, %v1645_v27, %v1637_v35  ;;  %vm3870_vm15 = vmmov %vm3861_vm0 }
0x11a3   :  { %v1268_v33 = vsel %vm1208_vm1, %v1267_v57, %v1260_v43  ;;  %v1647_v51 = vsel %vm1208_vm1, %v1646_v62, %v1639_v52  ;;  %v1676_v52 = vrot.slane %v1348_v34, 5  ;;  %vm3871_vm1 = vmmov %vm3861_vm0 }
0x11a4   :  { %v1269_v26 = vmin.f32 %v1256_v59, %v1268_v33  ;;  %v1270_v61 = vmax.f32 %v1256_v59, %v1268_v33  ;;  %v1648_v30 = vmin.f32 %v1635_v42, %v1647_v51  ;;  %v1649_v36 = vmax.f32 %v1635_v42, %v1647_v51 }
0x11a5   :  { %v1682_v42 = vrot.slane %v3636_v32, 2 }
0x11a6   :  { %v1271_v43 = vsel %vm3592_vm12, %v1269_v26, %v1270_v61  ;;  %v1650_v35 = vsel %vm3592_vm12, %v1648_v30, %v1649_v36 }
0x11a7   :  { %v1691_v28 = vrot.slane %v1271_v43, 5  ;;  %v1674_v31 = vrot.slane %v1271_v43, 6  ;;  %v1736_v59 = vrot.slane %v1271_v43, 2  ;;  %v1684_v53 = vrot.slane %v1650_v35, 1 }
0x11a8   :  { %v1716_v54 = vsel %vm1196_vm10, %v1271_v43, %v1706_v48  ;;  %v1652_v61 = vrot.slane %v1271_v43, 7 }
0x11a9   :  { %v1701_v27 = vsel %vm1196_vm10, %v1691_v28, %v1693_v37  ;;  %v1686_v57 = vsel %vm1196_vm10, %v1674_v31, %v1676_v52  ;;  %v1746_v41 = vsel %vm1196_vm10, %v1736_v59, %v1738_v29  ;;  %v1717_v62 = vsel %vm1198_vm11, %v1716_v54, %v1708_v49 }
0x11aa   :  { %v1702_v33 = vsel %vm1198_vm11, %v1701_v27, %v1695_v55  ;;  %v1687_v51 = vsel %vm1198_vm11, %v1686_v57, %v1678_v38  ;;  %v1747_v26 = vsel %vm1198_vm11, %v1746_v41, %v3606_v60  ;;  %v1718_v52 = vsel %vm3873_vm6, %v1717_v62, %v1710_v58 }
0x11ab   :  { %v1703_v30 = vsel %vm3870_vm15, %v1702_v33, %v1697_v45  ;;  %v1688_v36 = vsel %vm3871_vm1, %v1687_v51, %v1680_v46  ;;  %v1748_v37 = vsel %vm3872_vm9, %v1747_v26, %v1740_v56  ;;  %v1712_v55 = vrot.slane %v3636_v32, 4 }
0x11ac   :  { %v1704_v48 = vsel %vm1202_vm13, %v1703_v30, %v1699_v47  ;;  %v1689_v49 = vsel %vm1202_vm13, %v1688_v36, %v1682_v42  ;;  %v1655_v28 = vrot.slane %v1348_v34, 6  ;;  %v1723_v59 = vrot.slane %v3606_v60, 7 }
0x11ad   :  { %v1705_v38 = vsel %vm1204_vm14, %v1704_v48, %v1650_v35  ;;  %v1690_v31 = vsel %vm1204_vm14, %v1689_v49, %v1684_v53  ;;  %v1725_v45 = vrot.slane %v3610_v50, 6  ;;  %v1749_v46 = vsel %vm1202_vm13, %v1748_v37, %v1742_v63 }
0x11ae   :  { %1756 = vrot.lane.b32.xlu1 %v1705_v38, %s2762_s16  ;;  %1752 = vrot.lane.b32.xlu0 %v1690_v31, %s2761_s3  ;;  %v1719_v56 = vsel %vm1202_vm13, %v1718_v52, %v1712_v55  ;;  %v1669_v58 = vsel %vm1196_vm10, %v1652_v61, %v1655_v28  ;;  %v1721_v47 = vrot.slane %v1271_v43, 1  ;;  %v1744_v29 = vrot.slane %v1650_v35, 5 }
0x11af   :  { %v1714_v42 = vrot.slane %v1650_v35, 3  ;;  %v1664_v54 = vrot.slane %v3636_v32, 3  ;;  %v1670_v53 = vsel %vm1198_vm11, %v1669_v58, %v1658_v39  ;;  %v1667_v60 = vrot.slane %v1650_v35, 2 }
0x11b0   :  { %v1671_v50 = vsel %vm3874_vm4, %v1670_v53, %v1661_v40  ;;  %v1727_v27 = vrot.slane %v3636_v32, 5  ;;  %v1731_v57 = vsel %vm1196_vm10, %v1721_v47, %v1348_v34  ;;  %v1750_v63 = vsel %vm1204_vm14, %v1749_v46, %v1744_v29 }
0x11b1   :  { %v1720_v41 = vsel %vm1204_vm14, %v1719_v56, %v1714_v42  ;;  %v1672_v62 = vsel %vm1202_vm13, %v1671_v50, %v1664_v54  ;;  %v1732_v43 = vsel %vm1198_vm11, %v1731_v57, %v1723_v59  ;;  %v1729_v33 = vrot.slane %v1650_v35, 4 }
0x11b2   :  { %1764 = vrot.lane.b32.xlu1 %v1750_v63, %s2761_s3  ;;  %1760 = vrot.lane.b32.xlu0 %v1720_v41, %s2764_s17  ;;  %v1673_v39 = vsel %vm1204_vm14, %v1672_v62, %v1667_v60  ;;  %v1733_v40 = vsel %vm3875_vm3, %v1732_v43, %v1725_v45  ;;  %vm3876_vm10 = vcmask 261120   ;;  %vm3877_vm11 = vcmask 523264  }
0x11b3   :  { %v1734_v32 = vsel %vm1202_vm13, %v1733_v40, %v1727_v27  ;;  %vm3878_vm0 = vmmov %vm3876_vm10  ;;  %v2473_v35 = vpack.c.bf16 %v2900_v1, %v2895_v0 }
0x11b4   :  { %v1735_v34 = vsel %vm1204_vm14, %v1734_v32, %v1729_v33 }
0x1220   :  { %v1757_v51 = vpop.permute.xlu1 %1756  ;;  %v1753_v26 = vpop.permute.xlu0 %1752 }
0x1221   :  { %v1767_v61 = vsel %vm3876_vm10, %v1673_v39, %v1753_v26 }
0x1222   :  { %v1768_v37 = vsel %vm3877_vm11, %v1767_v61, %v1757_v51 }
0x1224   :  { %v1765_v30 = vpop.permute.xlu1 %1764  ;;  %v1761_v36 = vpop.permute.xlu0 %1760 }
0x1225   :  { %v1771_v52 = vsel %vm3878_vm0, %v1735_v34, %v1765_v30  ;;  %v1770_v48 = vsel %vm1769_vm7, %v1768_v37, %v1761_v36 }
0x1226   :  { %2745 = dma.done.wait [#allocation4], 3072 }
0x1227   :  { %2746 = vsyncadd [#allocation4], 4294964224  ;;  %2474 = vmatpush1.bf16.msra.mxu0 %v2473_v35  ;;  %v2476_v49 = vpack.c.bf16 %v2910_v3, %v2905_v2  ;;  %v2479_v55 = vpack.c.bf16 %v2920_v5, %v2915_v4  ;;  %v2482_v0 = vpack.c.bf16 %v2930_v7, %v2925_v6  ;;  %v2485_v1 = vpack.c.bf16 %v2940_v9, %v2935_v8  ;;  %v2143_v9 = vld [vmem:[%s3809_s6] ss:$0 sm:$0xff] }
0x1228   :  { %vm3879_vm13 = vmmov %vm3877_vm11  ;;  %2475 = vmatprep.subr.bf16.mxu0 %v3842_v44  ;;  %v2488_v2 = vpack.c.bf16 %v2950_v11, %v2945_v10  ;;  %v2491_v3 = vpack.c.bf16 %v2960_v13, %v2955_v12  ;;  %v2494_v4 = vpack.c.bf16 %v2970_v15, %v2965_v14  ;;  %v2497_v5 = vpack.c.bf16 %v2980_v17, %v2975_v16 }
0x1229   :  { %2144 = vmatprep.mubr.msk.f32.mxu0 %vm3879_vm13, %v1771_v52  ;;  %v2500_v6 = vpack.c.bf16 %v2990_v19, %v2985_v18  ;;  %v2503_v7 = vpack.c.bf16 %v3000_v21, %v2995_v20  ;;  %v2506_v8 = vpack.c.bf16 %v3010_v23, %v3005_v22  ;;  %2508 = vmatprep.subr.bf16.mxu1 %v3842_v44 }
0x122a   :  { %v2509_v14 = vpack.c.bf16 %v3020_v25, %v3015_v24 }
0x122b   :  { %2477 = vmatpush1.bf16.msra.mxu0 %v2476_v49 }
0x122c   :  { %2478 = vmatprep.subr.bf16.mxu0 %v3842_v44 }
0x122f   :  { %2480 = vmatpush1.bf16.msra.mxu0 %v2479_v55 }
0x1230   :  { %2481 = vmatprep.subr.bf16.mxu0 %v3842_v44 }
0x1233   :  { %2483 = vmatpush1.bf16.msra.mxu0 %v2482_v0 }
0x1234   :  { %2484 = vmatprep.subr.bf16.mxu0 %v3842_v44 }
0x1237   :  { %2486 = vmatpush1.bf16.msra.mxu0 %v2485_v1 }
0x1238   :  { %2487 = vmatprep.subr.bf16.mxu0 %v3842_v44 }
0x123b   :  { %2489 = vmatpush1.bf16.msra.mxu0 %v2488_v2 }
0x123c   :  { %2490 = vmatprep.subr.bf16.mxu0 %v3842_v44 }
0x123f   :  { %2492 = vmatpush1.bf16.msra.mxu0 %v2491_v3 }
0x1240   :  { %2493 = vmatprep.subr.bf16.mxu0 %v3842_v44 }
0x1243   :  { %2495 = vmatpush1.bf16.msra.mxu0 %v2494_v4 }
0x1244   :  { %2496 = vmatprep.subr.bf16.mxu0 %v3842_v44 }
0x1247   :  { %2498 = vmatpush1.bf16.msra.mxu0 %v2497_v5 }
0x1248   :  { %2499 = vmatprep.subr.bf16.mxu0 %v3842_v44 }
0x124b   :  { %2501 = vmatpush1.bf16.msra.mxu0 %v2500_v6 }
0x124c   :  { %2502 = vmatprep.subr.bf16.mxu0 %v3842_v44 }
0x124f   :  { %2504 = vmatpush1.bf16.msra.mxu0 %v2503_v7 }
0x1250   :  { %2505 = vmatprep.subr.bf16.mxu0 %v3842_v44 }
0x1253   :  { %2507 = vmatpush1.bf16.msra.mxu0 %v2506_v8 }
0x1256   :  { %1874 = vmatmul.mubr.f32.vlgmr.msra.gmra.mrb[12].mxu0 %v1770_v48 }
0x1329   :  { %v1875_v10 = vpop.f32.mrb[12].mxu0 }
0x132a   :  { %v1876_v11 = vadd.f32 %v2143_v9, %v1875_v10  ;;  %v1877_v12 = vpop.f32.mrb[13].mxu0 }
0x132c   :  { %v1879_v13 = vmax.f32 %v1876_v11, 0.0 }
0x132d   :  { %2747 = dma.done.wait [#allocation4 + $0x1], 2048 }
0x132e   :  { %2748 = vsyncadd [#allocation4 + $0x1], 4294965248  ;;  %v3880_v15 = vmov 0.0   ;;  %vm3881_vm14 = vmmov 0   ;;  %2510 = vmatpush3.bf16.msra.mxu1 %v2509_v14  ;;  %v3882_v16 = vld [vmem:[#allocation23_spill] sm:$0xff]  ;;  %v3883_v17 = vld [vmem:[#allocation24_spill] sm:$0xff] }
0x132f   :  { %2382 = vmatprep.mubr.msk.f32.mxu1 %vm3881_vm14, %v3880_v15  ;;  %v2512_v18 = vpack.c.bf16 %v3883_v17, %v3882_v16  ;;  %2511 = vmatprep.subr.bf16.mxu1 %v3842_v44  ;;  %v3884_v19 = vld [vmem:[#allocation25_spill] sm:$0xff]  ;;  %v3885_v20 = vld [vmem:[#allocation26_spill] sm:$0xff]  ;;  %v3886_v22 = vld [vmem:[#allocation27_spill] sm:$0xff]  ;;  %s2765_s5 = smov [#allocation14]   ;;  %vm2065_vm12 = vcmask 62464  }
0x1330   :  { %v2515_v21 = vpack.c.bf16 %v3885_v20, %v3884_v19  ;;  %v3887_v23 = vld [vmem:[#allocation28_spill] sm:$0xff]  ;;  %v3888_v25 = vld [vmem:[#allocation29_spill] sm:$0xff]  ;;  %v3889_v28 = vld [vmem:[#allocation30_spill] sm:$0xff]  ;;  %s2073_s29 = sshll.u32 %s2765_s5, 4  ;;  %s2074_s29 = int_to_ptr.vmem [resolvable:$true] %s2073_s29 }
0x1331   :  { %v2518_v24 = vpack.c.bf16 %v3887_v23, %v3886_v22  ;;  %v2521_v38 = vpack.c.bf16 %v3889_v28, %v3888_v25  ;;  %v3890_v31 = vld [vmem:[#allocation31_spill] sm:$0xff]  ;;  %v3891_v59 = vld [vmem:[#allocation32_spill] sm:$0xff]  ;;  %v3892_v46 = vld [vmem:[#allocation33_spill] sm:$0xff]  ;;  %s2717_s30 = scalar_lea.vmem %s2074_s29, 128  ;;  %p2722_p13 = scmp.lt.s32.totalorder %s2074_s29, %s2074_s29 }
0x1332   :  { %2513 = vmatpush3.bf16.msra.mxu1 %v2512_v18  ;;  %v2524_v45 = vpack.c.bf16 %v3891_v59, %v3890_v31  ;;  %v3893_v56 = vld [vmem:[#allocation34_spill] sm:$0xff]  ;;  %v3894_v47 = vld [vmem:[#allocation35_spill] sm:$0xff]  ;;  %v3895_v29 = vld [vmem:[#allocation36_spill] sm:$0xff]  ;;  %p2718_p12 = scmp.ne.s32.totalorder %s2074_s29, %s2717_s30  ;;  %p2723_p0 = scmp.lt.s32.totalorder %s2717_s30, %s2717_s30 }
0x1333   :  { %2514 = vmatprep.subr.bf16.mxu1 %v3842_v44  ;;  %v2527_v58 = vpack.c.bf16 %v3893_v56, %v3892_v46  ;;  %v2530_v42 = vpack.c.bf16 %v3895_v29, %v3894_v47  ;;  %v1977_v54 = vld [vmem:[%s3812_s9] sm:$0xff]  ;;  %v1978_v53 = vld [vmem:[%s3812_s9 + $0x8] sm:$0xff]  ;;  %v1979_v50 = vld [vmem:[%s3812_s9 + $0x10] sm:$0xff] }
0x1334   :  { %v2533_v60 = vpack.c.bf16 %v1978_v53, %v1977_v54  ;;  %v1980_v27 = vld [vmem:[%s3812_s9 + $0x18] sm:$0xff]  ;;  %v1981_v63 = vld [vmem:[%s3812_s9 + $0x20] sm:$0xff]  ;;  %v1982_v41 = vld [vmem:[%s3812_s9 + $0x28] sm:$0xff]  ;;  %p2724_p1 = por %p2723_p0, %p2722_p13 }
0x1335   :  { %v2536_v57 = vpack.c.bf16 %v1980_v27, %v1979_v50  ;;  %v2539_v62 = vpack.c.bf16 %v1982_v41, %v1981_v63  ;;  %v1983_v43 = vld [vmem:[%s3812_s9 + $0x30] sm:$0xff]  ;;  %v1984_v39 = vld [vmem:[%s3812_s9 + $0x38] sm:$0xff]  ;;  %v2145_v40 = vld [vmem:[#allocation11] ss:$0 sm:$0xff] }
0x1336   :  { %2516 = vmatpush3.bf16.msra.mxu1 %v2515_v21  ;;  %v2542_v33 = vpack.c.bf16 %v1984_v39, %v1983_v43  ;;  %vm3896_vm8 = vmmov %vm3877_vm11  ;;  %v2146_v61 = vld [vmem:[#allocation13] ss:$0 sm:$0xff]  ;;  %p2725_p2 = pnand %p2724_p1, %p2718_p12 }
0x1337   :  { %2517 = vmatprep.subr.bf16.mxu1 %v3842_v44 }
0x133a   :  { %2519 = vmatpush3.bf16.msra.mxu1 %v2518_v24 }
0x133b   :  { %2520 = vmatprep.subr.bf16.mxu1 %v3842_v44 }
0x133e   :  { %2522 = vmatpush3.bf16.msra.mxu1 %v2521_v38 }
0x133f   :  { %2523 = vmatprep.subr.bf16.mxu1 %v3842_v44 }
0x1342   :  { %2525 = vmatpush3.bf16.msra.mxu1 %v2524_v45 }
0x1343   :  { %2526 = vmatprep.subr.bf16.mxu1 %v3842_v44 }
0x1346   :  { %2528 = vmatpush3.bf16.msra.mxu1 %v2527_v58 }
0x1347   :  { %2529 = vmatprep.subr.bf16.mxu1 %v3842_v44 }
0x134a   :  { %2531 = vmatpush3.bf16.msra.mxu1 %v2530_v42 }
0x134b   :  { %2532 = vmatprep.subr.bf16.mxu1 %v3842_v44 }
0x134d   :  { %2383 = vmatmul.mubr.f32.vlgmr.msra.gmra.mrb[12].mxu1 %v1879_v13 }
0x134e   :  { %2534 = vmatpush3.bf16.msra.mxu1 %v2533_v60  ;;  %2401 = vmatprep.mubr.msk.f32.mxu1 %vm3881_vm14, %v3880_v15 }
0x134f   :  { %2535 = vmatprep.subr.bf16.mxu1 %v3842_v44 }
0x1352   :  { %2537 = vmatpush3.bf16.msra.mxu1 %v2536_v57 }
0x1353   :  { %2538 = vmatprep.subr.bf16.mxu1 %v3842_v44 }
0x1356   :  { %2540 = vmatpush3.bf16.msra.mxu1 %v2539_v62 }
0x1357   :  { %2541 = vmatprep.subr.bf16.mxu1 %v3842_v44 }
0x135a   :  { %2543 = vmatpush3.bf16.msra.mxu1 %v2542_v33 }
0x1420   :  { %v1972_v32 = vpop.f32.mrb[12].mxu1 }
0x1421   :  { %v1973_v34 = vadd.f32 %v2145_v40, %v1972_v32  ;;  %v2384_v51 = vpop.f32.mrb[13].mxu1 }
0x1423   :  { %v1976_v26 = vmax.f32 %v1973_v34, 0.0 }
0x1425   :  { %2402 = vmatmul.mubr.msk.f32.vlgmr.msra.gmra.mrb[14].mxu1 %vm3896_vm8, %v1976_v26 }
0x14f8   :  { %v2061_v44 = vpop.f32.mrb[14].mxu1 }
0x14f9   :  { %v2062_v30 = vadd.f32 %v2146_v61, %v2061_v44  ;;  %v2403_v36 = vpop.f32.mrb[15].mxu1 }
0x14fb   :  { %2066 = vst.msk [vmem:[#allocation14] sm:$0x3f] %vm2065_vm12, %v2062_v30 }
0x14fc   :  { %2728 = shalt.err (!%p2725_p2)
}
0x14fd   :  { %s2729_s15 = scalar_lea.hbm %s3814_s11, 128 }
0x14fe   :  { %p2730_p3 = scmp.ne.s32.totalorder %s3814_s11, %s2729_s15  ;;  %p2733_p4 = scmp.lt.u32.totalorder %s2729_s15, %s3814_s11 }
0x1500   :  { %p2735_p5 = pnand %p2733_p4, %p2730_p3 }
0x1502   :  { %2738 = shalt.err (!%p2735_p5)
}
0x1503   :  { %2076 = dma.vmem_to_hbm [thread:$0]  %s2074_s29, 128, %s3814_s11, [#allocation7]  }
0x1504   :  { %2749 = dma.done.wait [#allocation7], 128  }
0x1505   :  { %2750 = vsyncadd [#allocation7], 4294967168 }
0x1506   :  { %2080 = vsyncpa [#allocation6], 1 }
0x1507   :  { %2081 = vsyncpa [#allocation9], 1 }
0x1508   :  { %2082 = vsyncpa [#allocation12], 1 }
0x1509   :  { %2083 = vsyncpa [#allocation7], 1 }
0x150a   :  { %2084 = vsyncmov [#allocation4] }
0x150d   :  { %s2085_s19 = vpop.sfrf %2084 }
0x150e   :  { %p2148_p6 = scmp.ne.s32.totalorder %s2085_s19, 0 }
0x1510   :  { %2089 = shalt.err (%p2148_p6)  }
0x1511   :  { %2091 = vsyncmov [#allocation4 + $0x1] }
0x1514   :  { %s2092_s8 = vpop.sfrf %2091 }
0x1515   :  { %p2149_p7 = scmp.ne.s32.totalorder %s2092_s8, 0 }
0x1517   :  { %2096 = shalt.err (%p2149_p7)  }

</bundles_post_ra>
